<compile_context>
chip_gen: v6e
topology: v6e:2x2x1
jax: 0.10.0
libtpu: 0.0.40
codegen_flags: <defaults>
</compile_context>

<pallas_src>
import functools

import jax
import jax.numpy as jnp
from jax import lax
from jax.experimental import pallas as pl
from jax.experimental.pallas import tpu as pltpu


def bottleneck_kernel(x_ref, xtop_ref, xbot_ref,
                      w1_ref, b1_ref, w2_ref, b2_ref, w3_ref, b3_ref,
                      out_ref, pad_ref, *, TR, W):
    """One (batch, row-tile) grid step.

    x_ref    : (1, TR, W, Cin) bf16  interior rows of the tile
    xtop_ref : (1, 1,  W, Cin) bf16  row above the tile (clamped at image top)
    xbot_ref : (1, 1,  W, Cin) bf16  row below the tile (clamped at image bottom)
    w1_ref   : (Cin, P)   bf16 (BN1 scale folded)    b1_ref: (1, P)    f32
    w2_ref   : (9*P, P)   bf16 (BN2 scale folded)    b2_ref: (1, P)    f32
    w3_ref   : (P, Cout)  bf16 (BN3 scale folded)    b3_ref: (1, Cout) f32
    out_ref  : (1, TR, W, Cout) bf16
    pad_ref  : (TR+2, W+2, P)   bf16 VMEM scratch (spatially zero-padded h1)
    """
    Cin = x_ref.shape[-1]
    P = w1_ref.shape[-1]
    Cout = w3_ref.shape[-1]
    r = pl.program_id(1)
    last_r = pl.num_programs(1) - 1

    # ---- conv1 (1x1, BN-folded) + bias + relu: halo + interior rows in ONE matmul ----
    x_all = jnp.concatenate(
        [xtop_ref[...].reshape(1, W, Cin),
         x_ref[...].reshape(TR, W, Cin),
         xbot_ref[...].reshape(1, W, Cin)],
        axis=0).reshape((TR + 2) * W, Cin)                       # bf16
    h1 = jnp.dot(x_all, w1_ref[...], preferred_element_type=jnp.float32)
    h1 = jnp.maximum(h1 + b1_ref[...], 0.0).astype(jnp.bfloat16)  # bf16 intermediate
    h1 = h1.reshape(TR + 2, W, P)

    # ---- stage h1 into the zero-padded bf16 VMEM scratch ----
    # Interior [:, 1:W+1, :] is fully overwritten each step, so only the two
    # W-border columns need zeroing here; the corners are covered by these
    # column writes (full TR+2 rows).
    zcol = jnp.zeros((TR + 2, 1, P), dtype=jnp.bfloat16)
    pad_ref[:, 0:1, :] = zcol
    pad_ref[:, W + 1:W + 2, :] = zcol
    pad_ref[:, 1:W + 1, :] = h1

    # Rows that fall outside the image are zero padding for the 3x3 conv
    # (must come AFTER the interior store above).
    @pl.when(r == 0)
    def _():
        pad_ref[0:1, :, :] = jnp.zeros((1, W + 2, P), dtype=jnp.bfloat16)

    @pl.when(r == last_r)
    def _():
        pad_ref[TR + 1:TR + 2, :, :] = jnp.zeros((1, W + 2, P), dtype=jnp.bfloat16)

    # ---- conv2 (3x3, stride=1, pad=1, BN-folded): one im2col matmul, K = 9*P ----
    padded = pad_ref[...]                                        # (TR+2, W+2, P) bf16
    taps = [padded[ky:ky + TR, kx:kx + W, :]                     # (TR, W, P) each
            for ky in range(3) for kx in range(3)]
    lhs = jnp.concatenate(taps, axis=-1).reshape(TR * W, 9 * P)  # bf16, no extra cast
    h2 = jnp.dot(lhs, w2_ref[...], preferred_element_type=jnp.float32)
    h2 = jnp.maximum(h2 + b2_ref[...], 0.0).astype(jnp.bfloat16)  # (TR*W, P)

    # ---- conv3 (1x1, BN-folded) + bias + residual + relu (f32 accumulation) ----
    h3 = jnp.dot(h2, w3_ref[...], preferred_element_type=jnp.float32)
    h3 = h3 + b3_ref[...]
    # Re-read the resident input tile for the residual (short live range), in f32.
    h3 = h3 + x_ref[...].reshape(TR * W, Cin).astype(jnp.float32)
    # Downcast only at the final store (bf16 output halves the largest HBM stream).
    out_ref[...] = jnp.maximum(h3, 0.0).reshape(1, TR, W, Cout).astype(out_ref.dtype)


def _vmem_capacity_bytes():
    """Per-core VMEM capacity; conservative 64 MiB fallback (v7x per-TC)."""
    try:
        info = pltpu.get_tpu_info()
        cap = getattr(info, "vmem_capacity_bytes", None)
        if cap:
            return int(cap)
    except Exception:
        pass
    return 64 * 2**20


def _per_row_bytes(W, Cin, Cout, P):
    """Rough per-image-row working-set bytes (I/O double buffers + scratch + temps)."""
    return (2 * W * Cin * 2              # input tile, bf16, double-buffered
            + 2 * W * Cout * 2           # output tile, bf16, double-buffered
            + (W + 2) * P * 2            # padded-h1 scratch, bf16
            + W * 9 * P * 2              # im2col LHS, bf16
            + W * (2 * P + Cout) * 4)    # f32 h1/h2/h3 temporaries


def _pick_row_tile(H, W, Cin, Cout, P, budget_bytes):
    per_row = _per_row_bytes(W, Cin, Cout, P)
    best = 1
    for cand in range(1, min(H, 64) + 1):     # cap at 64 rows per step
        if H % cand == 0 and (cand + 2) * per_row <= budget_bytes:
            best = cand
    return best


def bottleneck_pallas(x_nhwc, params, *, row_tile=None):
    """x_nhwc: (N, H, W, Cin); params: BN-folded weights/biases from make_params."""
    N, H, W, Cin = x_nhwc.shape
    P = params["b1"].shape[-1]
    Cout = params["w3"].shape[-1]
    assert Cout == Cin, "downsample is None -> residual add requires Cin == 4*planes"

    nbytes = lambda a: a.size * a.dtype.itemsize
    param_bytes = sum(nbytes(params[k]) for k in ("w1", "b1", "w2", "b2", "w3", "b3"))

    vmem_cap = _vmem_capacity_bytes()
    if row_tile is None:
        # Pick the largest row tile whose working set fits ~1/3 of VMEM
        # (leaves room for weights, compiler scratch, pipeline slack).
        TR = _pick_row_tile(H, W, Cin, Cout, P,
                            budget_bytes=max(vmem_cap // 3 - param_bytes, 1 << 20))
    else:
        TR = min(row_tile, H)
    assert H % TR == 0, "row tile must divide H"
    R = H // TR

    x_bf = x_nhwc.astype(jnp.bfloat16)

    # Untiled, whole-array VMEM residency for weights/biases: constant across the
    # grid, so no per-step DMA and no double-buffer allocation.
    vmem_full = pl.BlockSpec(memory_space=pltpu.MemorySpace.VMEM)

    kernel = functools.partial(bottleneck_kernel, TR=TR, W=W)

    # Advisory cost estimate for XLA scheduling around the custom call.
    flops = 2 * N * H * W * (Cin * P + 9 * P * P + P * Cout)
    cost = pl.CostEstimate(
        flops=flops, transcendentals=0,
        bytes_accessed=nbytes(x_bf) + 2 * N * H * W * Cout + param_bytes)

    # Explicit VMEM budget: double-buffered bf16 I/O row-tiles + resident weights
    # (counted once) + bf16 padded-h1 scratch + headroom for im2col / f32 temps.
    io_bytes = 2 * ((TR + 2) * W * Cin * 2 + TR * W * Cout * 2)
    scratch_bytes = (TR + 2) * (W + 2) * P * 2
    work_bytes = TR * W * (9 * P * 2 + (2 * P + Cout) * 4)
    want = 2 * (io_bytes + scratch_bytes + work_bytes) + param_bytes
    vmem_limit = int(min(max(want, 16 * 2**20),
                         min(48 * 2**20, (5 * vmem_cap) // 8)))

    return pl.pallas_call(
        kernel,
        out_shape=jax.ShapeDtypeStruct((N, H, W, Cout), jnp.bfloat16),
        grid_spec=pltpu.PrefetchScalarGridSpec(
            num_scalar_prefetch=0,
            grid=(N, R),
            in_specs=[
                # interior rows of the tile
                pl.BlockSpec((1, TR, W, Cin), lambda n, r: (n, r, 0, 0)),
                # one-row halos (clamped at image borders; kernel zeroes them there)
                pl.BlockSpec((1, 1, W, Cin),
                             lambda n, r: (n, jnp.maximum(r * TR - 1, 0), 0, 0)),
                pl.BlockSpec((1, 1, W, Cin),
                             lambda n, r: (n, jnp.minimum(r * TR + TR, H - 1), 0, 0)),
                vmem_full, vmem_full,   # w1, b1
                vmem_full, vmem_full,   # w2, b2
                vmem_full, vmem_full,   # w3, b3
            ],
            out_specs=pl.BlockSpec((1, TR, W, Cout), lambda n, r: (n, r, 0, 0)),
            scratch_shapes=[pltpu.VMEM((TR + 2, W + 2, P), jnp.bfloat16)],
        ),
        compiler_params=pltpu.CompilerParams(
            dimension_semantics=("parallel", "parallel"),
            vmem_limit_bytes=vmem_limit),
        cost_estimate=cost,
    )(x_bf, x_bf, x_bf,
      params["w1"], params["b1"], params["w2"], params["b2"],
      params["w3"], params["b3"])


# ---------------------------------------------------------------------------
# Parameter construction (deterministic, in-script) + BN folding into weights
# ---------------------------------------------------------------------------
def make_params(key, inplanes, planes, eps=1e-5):
    expansion = 4
    ks = jax.random.split(key, 6)

    def bn_fold(k, c):
        kg, kb, km, kv = jax.random.split(k, 4)
        gamma = 1.0 + 0.1 * jax.random.normal(kg, (c,), jnp.float32)
        beta = 0.1 * jax.random.normal(kb, (c,), jnp.float32)
        mean = 0.1 * jax.random.normal(km, (c,), jnp.float32)
        var = jnp.abs(jax.random.normal(kv, (c,), jnp.float32)) + 0.5
        scale = gamma / jnp.sqrt(var + eps)
        bias = beta - mean * scale
        return scale.reshape(1, c), bias.reshape(1, c)

    # Matmul-friendly conv weight layouts:
    #   w1: (Cin, P)   1x1;  w2: (9*P, P) 3x3 rows ordered (ky, kx, c_in);  w3: (P, 4*P) 1x1
    w1 = 0.1 * jax.random.normal(ks[0], (inplanes, planes), jnp.float32)
    w2 = 0.1 * jax.random.normal(ks[1], (9 * planes, planes), jnp.float32)
    w3 = 0.1 * jax.random.normal(ks[2], (planes, planes * expansion), jnp.float32)

    s1, b1 = bn_fold(ks[3], planes)
    s2, b2 = bn_fold(ks[4], planes)
    s3, b3 = bn_fold(ks[5], planes * expansion)

    # Fold BN scale into conv output channels; keep only biases. Weights -> bf16.
    return dict(
        w1=(w1 * s1).astype(jnp.bfloat16), b1=b1,
        w2=(w2 * s2).astype(jnp.bfloat16), b2=b2,
        w3=(w3 * s3).astype(jnp.bfloat16), b3=b3,
    )


# Pure-JAX reference (NHWC, f32, highest precision) for validation.
def bottleneck_ref(x_any, p):
    x = x_any.astype(jnp.float32)
    w1 = p["w1"].astype(jnp.float32)
    w2 = p["w2"].astype(jnp.float32)
    w3 = p["w3"].astype(jnp.float32)
    b1, b2, b3 = p["b1"][0], p["b2"][0], p["b3"][0]
    P = w1.shape[-1]

    h = jnp.einsum("nhwc,cp->nhwp", x, w1, precision=lax.Precision.HIGHEST)
    h = jnp.maximum(h + b1, 0.0)
    w2_hwio = w2.reshape(3, 3, P, P)     # rows (ky, kx, c_in) -> HWIO
    h = lax.conv_general_dilated(h, w2_hwio, (1, 1), ((1, 1), (1, 1)),
                                 dimension_numbers=("NHWC", "HWIO", "NHWC"),
                                 precision=lax.Precision.HIGHEST)
    h = jnp.maximum(h + b2, 0.0)
    h = jnp.einsum("nhwp,pq->nhwq", h, w3, precision=lax.Precision.HIGHEST)
    h = h + b3 + x
    return jnp.maximum(h, 0.0)


if __name__ == "__main__":
    # Small but lane-dense shapes: batch=2, inplanes=128 (=Cout, so the output
    # store is 128-lane dense), planes=32, spatial 16x16, stride=1, rate=1.
    N, H, W = 2, 16, 16
    inplanes, planes = 128, 32

    key = jax.random.PRNGKey(0)
    kx, kp = jax.random.split(key)
    # PyTorch input would be NCHW; the kernel uses NHWC + bf16.
    x_nchw = jax.random.normal(kx, (N, inplanes, H, W), jnp.float32)
    x_nhwc = jnp.transpose(x_nchw, (0, 2, 3, 1))
    x_bf16 = x_nhwc.astype(jnp.bfloat16)

    params = make_params(kp, inplanes, planes)

    out = bottleneck_pallas(x_bf16, params)   # row tile auto-sized (full H here)
    out = jax.block_until_ready(out)

    ref = bottleneck_ref(x_bf16, params)
    assert out.shape == (N, H, W, planes * 4)
    assert out.dtype == jnp.bfloat16
    err = jnp.abs(out.astype(jnp.float32) - ref)
    assert float(err.max()) < 2e-1, "max error too large vs JAX reference"
    assert float(err.mean()) < 3e-2, "mean error too large vs JAX reference"

    print("KERNEL_OK")
</pallas_src>

<mosaic_0001>
module attributes {stable_mosaic.version = 11 : i64} {
  func.func @bottleneck_kernel(%arg0: i32, %arg1: i32, %arg2: memref<1x16x16x128xbf16, #tpu.memory_space<vmem>>, %arg3: memref<1x1x16x128xbf16, #tpu.memory_space<vmem>>, %arg4: memref<1x1x16x128xbf16, #tpu.memory_space<vmem>>, %arg5: memref<128x32xbf16, #tpu.memory_space<vmem>>, %arg6: memref<1x32xf32, #tpu.memory_space<vmem>>, %arg7: memref<288x32xbf16, #tpu.memory_space<vmem>>, %arg8: memref<1x32xf32, #tpu.memory_space<vmem>>, %arg9: memref<32x128xbf16, #tpu.memory_space<vmem>>, %arg10: memref<1x128xf32, #tpu.memory_space<vmem>>, %arg11: memref<1x16x16x128xbf16, #tpu.memory_space<vmem>>, %arg12: memref<18x18x32xbf16, #tpu.memory_space<vmem>>) attributes {dimension_semantics = [#tpu.dimension_semantics<parallel>, #tpu.dimension_semantics<parallel>], iteration_bounds = array<i64: 2, 1>, scalar_prefetch = 0 : i64, scratch_operands = 1 : i64, tpu.core_type = #tpu.core_type<tc>, window_params = [{transform_indices = @transform_0, window_bounds = array<i64: 1, 16, 16, 128>}, {transform_indices = @transform_1, window_bounds = array<i64: 1, 1, 16, 128>}, {transform_indices = @transform_2, window_bounds = array<i64: 1, 1, 16, 128>}, {pipeline_mode = #tpu.pipeline_mode<synchronous>, transform_indices = @transform_3, window_bounds = array<i64: 128, 32>}, {pipeline_mode = #tpu.pipeline_mode<synchronous>, transform_indices = @transform_4, window_bounds = array<i64: 1, 32>}, {pipeline_mode = #tpu.pipeline_mode<synchronous>, transform_indices = @transform_5, window_bounds = array<i64: 288, 32>}, {pipeline_mode = #tpu.pipeline_mode<synchronous>, transform_indices = @transform_6, window_bounds = array<i64: 1, 32>}, {pipeline_mode = #tpu.pipeline_mode<synchronous>, transform_indices = @transform_7, window_bounds = array<i64: 32, 128>}, {pipeline_mode = #tpu.pipeline_mode<synchronous>, transform_indices = @transform_8, window_bounds = array<i64: 1, 128>}, {transform_indices = @transform_9, window_bounds = array<i64: 1, 16, 16, 128>}]} {
    %c0 = arith.constant 0 : index
    %c0_0 = arith.constant 0 : index
    %c0_1 = arith.constant 0 : index
    %c0_2 = arith.constant 0 : index
    %0 = vector.load %arg3[%c0, %c0_0, %c0_1, %c0_2] : memref<1x1x16x128xbf16, #tpu.memory_space<vmem>>, vector<1x1x16x128xbf16>
    %1 = vector.shape_cast %0 : vector<1x1x16x128xbf16> to vector<1x16x128xbf16>
    %c0_3 = arith.constant 0 : index
    %c0_4 = arith.constant 0 : index
    %c0_5 = arith.constant 0 : index
    %c0_6 = arith.constant 0 : index
    %2 = vector.load %arg2[%c0_3, %c0_4, %c0_5, %c0_6] : memref<1x16x16x128xbf16, #tpu.memory_space<vmem>>, vector<1x16x16x128xbf16>
    %3 = vector.shape_cast %2 : vector<1x16x16x128xbf16> to vector<16x16x128xbf16>
    %c0_7 = arith.constant 0 : index
    %c0_8 = arith.constant 0 : index
    %c0_9 = arith.constant 0 : index
    %c0_10 = arith.constant 0 : index
    %4 = vector.load %arg4[%c0_7, %c0_8, %c0_9, %c0_10] : memref<1x1x16x128xbf16, #tpu.memory_space<vmem>>, vector<1x1x16x128xbf16>
    %5 = vector.shape_cast %4 : vector<1x1x16x128xbf16> to vector<1x16x128xbf16>
    %6 = tpu.concatenate %1, %3, %5 in 0 : vector<1x16x128xbf16>, vector<16x16x128xbf16>, vector<1x16x128xbf16> -> vector<18x16x128xbf16>
    %7 = vector.shape_cast %6 : vector<18x16x128xbf16> to vector<288x128xbf16>
    %c0_11 = arith.constant 0 : index
    %c0_12 = arith.constant 0 : index
    %8 = vector.load %arg5[%c0_11, %c0_12] : memref<128x32xbf16, #tpu.memory_space<vmem>>, vector<128x32xbf16>
    %cst = arith.constant dense<0.000000e+00> : vector<288x32xf32>
    %9 = tpu.matmul %7, %8, %cst {dimension_numbers = #tpu.dot_dimension_numbers<[1], [0], [0], [1], [0, 0, 1, 1], [], []>} : vector<288x128xbf16>, vector<128x32xbf16>, vector<288x32xf32> -> vector<288x32xf32>
    %c0_13 = arith.constant 0 : index
    %c0_14 = arith.constant 0 : index
    %10 = vector.load %arg6[%c0_13, %c0_14] : memref<1x32xf32, #tpu.memory_space<vmem>>, vector<1x32xf32>
    %11 = vector.broadcast %10 : vector<1x32xf32> to vector<288x32xf32>
    %12 = arith.addf %9, %11 : vector<288x32xf32>
    %cst_15 = arith.constant 0.000000e+00 : f32
    %13 = vector.broadcast %cst_15 : f32 to vector<288x32xf32>
    %14 = arith.maximumf %12, %13 : vector<288x32xf32>
    %15 = arith.truncf %14 : vector<288x32xf32> to vector<288x32xbf16>
    %16 = vector.shape_cast %15 : vector<288x32xbf16> to vector<18x16x32xbf16>
    %cst_16 = arith.constant 0.000000e+00 : bf16
    %17 = vector.broadcast %cst_16 : bf16 to vector<18x1x32xbf16>
    %c0_17 = arith.constant 0 : index
    %c0_18 = arith.constant 0 : index
    %c0_19 = arith.constant 0 : index
    %18 = vector.load %arg12[%c0_17, %c0_18, %c0_19] : memref<18x18x32xbf16, #tpu.memory_space<vmem>>, vector<18x1x32xbf16>
    tpu.vector_store %arg12[%c0_17, %c0_18, %c0_19], %17 {strides = array<i32>} : memref<18x18x32xbf16, #tpu.memory_space<vmem>>, vector<18x1x32xbf16>,
    %c0_20 = arith.constant 0 : index
    %c17 = arith.constant 17 : index
    %c0_21 = arith.constant 0 : index
    %19 = vector.load %arg12[%c0_20, %c17, %c0_21] : memref<18x18x32xbf16, #tpu.memory_space<vmem>>, vector<18x1x32xbf16>
    tpu.vector_store %arg12[%c0_20, %c17, %c0_21], %17 {strides = array<i32>} : memref<18x18x32xbf16, #tpu.memory_space<vmem>>, vector<18x1x32xbf16>,
    %c0_22 = arith.constant 0 : index
    %c1 = arith.constant 1 : index
    %c0_23 = arith.constant 0 : index
    %20 = vector.load %arg12[%c0_22, %c1, %c0_23] : memref<18x18x32xbf16, #tpu.memory_space<vmem>>, vector<18x16x32xbf16>
    tpu.vector_store %arg12[%c0_22, %c1, %c0_23], %16 {strides = array<i32>} : memref<18x18x32xbf16, #tpu.memory_space<vmem>>, vector<18x16x32xbf16>,
    %c0_i32 = arith.constant 0 : i32
    %21 = arith.cmpi eq, %arg1, %c0_i32 : i32
    %22 = arith.extui %21 : i1 to i32
    %c0_i32_24 = arith.constant 0 : i32
    %23 = arith.cmpi ne, %22, %c0_i32_24 : i32
    scf.if %23 {
      %cst_50 = arith.constant 0.000000e+00 : bf16
      %61 = vector.broadcast %cst_50 : bf16 to vector<1x18x32xbf16>
      %c0_51 = arith.constant 0 : index
      %c0_52 = arith.constant 0 : index
      %c0_53 = arith.constant 0 : index
      %62 = vector.load %arg12[%c0_51, %c0_52, %c0_53] : memref<18x18x32xbf16, #tpu.memory_space<vmem>>, vector<1x18x32xbf16>
      tpu.vector_store %arg12[%c0_51, %c0_52, %c0_53], %61 {strides = array<i32>} : memref<18x18x32xbf16, #tpu.memory_space<vmem>>, vector<1x18x32xbf16>,
    } else {
    }
    %c0_i32_25 = arith.constant 0 : i32
    %24 = arith.cmpi eq, %arg1, %c0_i32_25 : i32
    %25 = arith.extui %24 : i1 to i32
    %c0_i32_26 = arith.constant 0 : i32
    %26 = arith.cmpi ne, %25, %c0_i32_26 : i32
    scf.if %26 {
      %cst_50 = arith.constant 0.000000e+00 : bf16
      %61 = vector.broadcast %cst_50 : bf16 to vector<1x18x32xbf16>
      %c17_51 = arith.constant 17 : index
      %c0_52 = arith.constant 0 : index
      %c0_53 = arith.constant 0 : index
      %62 = vector.load %arg12[%c17_51, %c0_52, %c0_53] : memref<18x18x32xbf16, #tpu.memory_space<vmem>>, vector<1x18x32xbf16>
      tpu.vector_store %arg12[%c17_51, %c0_52, %c0_53], %61 {strides = array<i32>} : memref<18x18x32xbf16, #tpu.memory_space<vmem>>, vector<1x18x32xbf16>,
    } else {
    }
    %c0_27 = arith.constant 0 : index
    %c0_28 = arith.constant 0 : index
    %c0_29 = arith.constant 0 : index
    %27 = vector.load %arg12[%c0_27, %c0_28, %c0_29] : memref<18x18x32xbf16, #tpu.memory_space<vmem>>, vector<18x18x32xbf16>
    %28 = vector.extract_strided_slice %27 {offsets = [0, 0, 0], sizes = [16, 16, 32], strides = [1, 1, 1]} : vector<18x18x32xbf16> to vector<16x16x32xbf16>
    %29 = vector.extract_strided_slice %27 {offsets = [0, 1, 0], sizes = [16, 16, 32], strides = [1, 1, 1]} : vector<18x18x32xbf16> to vector<16x16x32xbf16>
    %30 = vector.extract_strided_slice %27 {offsets = [0, 2, 0], sizes = [16, 16, 32], strides = [1, 1, 1]} : vector<18x18x32xbf16> to vector<16x16x32xbf16>
    %31 = vector.extract_strided_slice %27 {offsets = [1, 0, 0], sizes = [16, 16, 32], strides = [1, 1, 1]} : vector<18x18x32xbf16> to vector<16x16x32xbf16>
    %32 = vector.extract_strided_slice %27 {offsets = [1, 1, 0], sizes = [16, 16, 32], strides = [1, 1, 1]} : vector<18x18x32xbf16> to vector<16x16x32xbf16>
    %33 = vector.extract_strided_slice %27 {offsets = [1, 2, 0], sizes = [16, 16, 32], strides = [1, 1, 1]} : vector<18x18x32xbf16> to vector<16x16x32xbf16>
    %34 = vector.extract_strided_slice %27 {offsets = [2, 0, 0], sizes = [16, 16, 32], strides = [1, 1, 1]} : vector<18x18x32xbf16> to vector<16x16x32xbf16>
    %35 = vector.extract_strided_slice %27 {offsets = [2, 1, 0], sizes = [16, 16, 32], strides = [1, 1, 1]} : vector<18x18x32xbf16> to vector<16x16x32xbf16>
    %36 = vector.extract_strided_slice %27 {offsets = [2, 2, 0], sizes = [16, 16, 32], strides = [1, 1, 1]} : vector<18x18x32xbf16> to vector<16x16x32xbf16>
    %37 = tpu.concatenate %28, %29, %30, %31, %32, %33, %34, %35, %36 in 2 : vector<16x16x32xbf16>, vector<16x16x32xbf16>, vector<16x16x32xbf16>, vector<16x16x32xbf16>, vector<16x16x32xbf16>, vector<16x16x32xbf16>, vector<16x16x32xbf16>, vector<16x16x32xbf16>, vector<16x16x32xbf16> -> vector<16x16x288xbf16>
    %38 = vector.shape_cast %37 : vector<16x16x288xbf16> to vector<256x288xbf16>
    %c0_30 = arith.constant 0 : index
    %c0_31 = arith.constant 0 : index
    %39 = vector.load %arg7[%c0_30, %c0_31] : memref<288x32xbf16, #tpu.memory_space<vmem>>, vector<288x32xbf16>
    %cst_32 = arith.constant dense<0.000000e+00> : vector<256x32xf32>
    %40 = tpu.matmul %38, %39, %cst_32 {dimension_numbers = #tpu.dot_dimension_numbers<[1], [0], [0], [1], [0, 0, 1, 1], [], []>} : vector<256x288xbf16>, vector<288x32xbf16>, vector<256x32xf32> -> vector<256x32xf32>
    %c0_33 = arith.constant 0 : index
    %c0_34 = arith.constant 0 : index
    %41 = vector.load %arg8[%c0_33, %c0_34] : memref<1x32xf32, #tpu.memory_space<vmem>>, vector<1x32xf32>
    %42 = vector.broadcast %41 : vector<1x32xf32> to vector<256x32xf32>
    %43 = arith.addf %40, %42 : vector<256x32xf32>
    %cst_35 = arith.constant 0.000000e+00 : f32
    %44 = vector.broadcast %cst_35 : f32 to vector<256x32xf32>
    %45 = arith.maximumf %43, %44 : vector<256x32xf32>
    %46 = arith.truncf %45 : vector<256x32xf32> to vector<256x32xbf16>
    %c0_36 = arith.constant 0 : index
    %c0_37 = arith.constant 0 : index
    %47 = vector.load %arg9[%c0_36, %c0_37] : memref<32x128xbf16, #tpu.memory_space<vmem>>, vector<32x128xbf16>
    %cst_38 = arith.constant dense<0.000000e+00> : vector<256x128xf32>
    %48 = tpu.matmul %46, %47, %cst_38 {dimension_numbers = #tpu.dot_dimension_numbers<[1], [0], [0], [1], [0, 0, 1, 1], [], []>} : vector<256x32xbf16>, vector<32x128xbf16>, vector<256x128xf32> -> vector<256x128xf32>
    %c0_39 = arith.constant 0 : index
    %c0_40 = arith.constant 0 : index
    %49 = vector.load %arg10[%c0_39, %c0_40] : memref<1x128xf32, #tpu.memory_space<vmem>>, vector<1x128xf32>
    %50 = vector.broadcast %49 : vector<1x128xf32> to vector<256x128xf32>
    %51 = arith.addf %48, %50 : vector<256x128xf32>
    %c0_41 = arith.constant 0 : index
    %c0_42 = arith.constant 0 : index
    %c0_43 = arith.constant 0 : index
    %c0_44 = arith.constant 0 : index
    %52 = vector.load %arg2[%c0_41, %c0_42, %c0_43, %c0_44] : memref<1x16x16x128xbf16, #tpu.memory_space<vmem>>, vector<1x16x16x128xbf16>
    %53 = vector.shape_cast %52 : vector<1x16x16x128xbf16> to vector<256x128xbf16>
    %54 = arith.extf %53 : vector<256x128xbf16> to vector<256x128xf32>
    %55 = arith.addf %51, %54 : vector<256x128xf32>
    %cst_45 = arith.constant 0.000000e+00 : f32
    %56 = vector.broadcast %cst_45 : f32 to vector<256x128xf32>
    %57 = arith.maximumf %55, %56 : vector<256x128xf32>
    %58 = vector.shape_cast %57 : vector<256x128xf32> to vector<1x16x16x128xf32>
    %59 = arith.truncf %58 : vector<1x16x16x128xf32> to vector<1x16x16x128xbf16>
    %c0_46 = arith.constant 0 : index
    %c0_47 = arith.constant 0 : index
    %c0_48 = arith.constant 0 : index
    %c0_49 = arith.constant 0 : index
    %60 = vector.load %arg11[%c0_46, %c0_47, %c0_48, %c0_49] : memref<1x16x16x128xbf16, #tpu.memory_space<vmem>>, vector<1x16x16x128xbf16>
    tpu.vector_store %arg11[%c0_46, %c0_47, %c0_48, %c0_49], %59 {strides = array<i32>} : memref<1x16x16x128xbf16, #tpu.memory_space<vmem>>, vector<1x16x16x128xbf16>,
    return
  }
  func.func @transform_0(%arg0: i32, %arg1: i32) -> (i32, i32, i32, i32) {
    %c0_i32 = arith.constant 0 : i32
    %c0_i32_0 = arith.constant 0 : i32
    %c0_i32_1 = arith.constant 0 : i32
    return %arg0, %arg1, %c0_i32, %c0_i32_0 : i32, i32, i32, i32
  }
  func.func @transform_1(%arg0: i32, %arg1: i32) -> (i32, i32, i32, i32) {
    %c16_i32 = arith.constant 16 : i32
    %0 = arith.muli %arg1, %c16_i32 : i32
    %c1_i32 = arith.constant 1 : i32
    %1 = arith.subi %0, %c1_i32 : i32
    %c0_i32 = arith.constant 0 : i32
    %2 = arith.maxsi %1, %c0_i32 : i32
    %c0_i32_0 = arith.constant 0 : i32
    %c0_i32_1 = arith.constant 0 : i32
    %c0_i32_2 = arith.constant 0 : i32
    return %arg0, %2, %c0_i32_0, %c0_i32_1 : i32, i32, i32, i32
  }
  func.func @transform_2(%arg0: i32, %arg1: i32) -> (i32, i32, i32, i32) {
    %c16_i32 = arith.constant 16 : i32
    %0 = arith.muli %arg1, %c16_i32 : i32
    %c16_i32_0 = arith.constant 16 : i32
    %1 = arith.addi %0, %c16_i32_0 : i32
    %c15_i32 = arith.constant 15 : i32
    %2 = arith.minsi %1, %c15_i32 : i32
    %c0_i32 = arith.constant 0 : i32
    %c0_i32_1 = arith.constant 0 : i32
    %c0_i32_2 = arith.constant 0 : i32
    return %arg0, %2, %c0_i32, %c0_i32_1 : i32, i32, i32, i32
  }
  func.func @transform_3(%arg0: i32, %arg1: i32) -> (i32, i32) {
    %c0_i32 = arith.constant 0 : i32
    %c0_i32_0 = arith.constant 0 : i32
    %c0_i32_1 = arith.constant 0 : i32
    return %c0_i32, %c0_i32_0 : i32, i32
  }
  func.func @transform_4(%arg0: i32, %arg1: i32) -> (i32, i32) {
    %c0_i32 = arith.constant 0 : i32
    %c0_i32_0 = arith.constant 0 : i32
    %c0_i32_1 = arith.constant 0 : i32
    return %c0_i32, %c0_i32_0 : i32, i32
  }
  func.func @transform_5(%arg0: i32, %arg1: i32) -> (i32, i32) {
    %c0_i32 = arith.constant 0 : i32
    %c0_i32_0 = arith.constant 0 : i32
    %c0_i32_1 = arith.constant 0 : i32
    return %c0_i32, %c0_i32_0 : i32, i32
  }
  func.func @transform_6(%arg0: i32, %arg1: i32) -> (i32, i32) {
    %c0_i32 = arith.constant 0 : i32
    %c0_i32_0 = arith.constant 0 : i32
    %c0_i32_1 = arith.constant 0 : i32
    return %c0_i32, %c0_i32_0 : i32, i32
  }
  func.func @transform_7(%arg0: i32, %arg1: i32) -> (i32, i32) {
    %c0_i32 = arith.constant 0 : i32
    %c0_i32_0 = arith.constant 0 : i32
    %c0_i32_1 = arith.constant 0 : i32
    return %c0_i32, %c0_i32_0 : i32, i32
  }
  func.func @transform_8(%arg0: i32, %arg1: i32) -> (i32, i32) {
    %c0_i32 = arith.constant 0 : i32
    %c0_i32_0 = arith.constant 0 : i32
    %c0_i32_1 = arith.constant 0 : i32
    return %c0_i32, %c0_i32_0 : i32, i32
  }
  func.func @transform_9(%arg0: i32, %arg1: i32) -> (i32, i32, i32, i32) {
    %c0_i32 = arith.constant 0 : i32
    %c0_i32_0 = arith.constant 0 : i32
    %c0_i32_1 = arith.constant 0 : i32
    return %arg0, %arg1, %c0_i32, %c0_i32_0 : i32, i32, i32, i32
  }
}

</mosaic_0001>

<bundles_post_ra>
// kernel: tpu_custom_call.1
= control target key start
LH: loop header
LB: loop body
LE: loop exit
PB: predicated region body
PF: predicated region fallthrough
CT: control target
= control target key end

     0   :  { %s6260_s0 = inlined_call_operand.vmem [shape: bf16[2,16,16,128], index: 0, kind: input, shape index: {}]   ;;  %s6261_s1 = inlined_call_operand.hbm [shape: bf16[2,16,16,128], index: 1, kind: input, shape index: {}]   ;;  %s6262_s2 = inlined_call_operand.hbm [shape: bf16[2,16,16,128], index: 2, kind: input, shape index: {}]   ;;  %s6263_s3 = inlined_call_operand.vmem [shape: bf16[128,32], index: 3, kind: input, shape index: {}]   ;;  %s6264_s4 = inlined_call_operand.vmem [shape: f32[1,32], index: 4, kind: input, shape index: {}]   ;;  %s6265_s5 = inlined_call_operand.vmem [shape: bf16[288,32], index: 5, kind: input, shape index: {}]   ;;  %s6266_s6 = inlined_call_operand.vmem [shape: f32[1,32], index: 6, kind: input, shape index: {}]   ;;  %s6267_s7 = inlined_call_operand.vmem [shape: bf16[32,128], index: 7, kind: input, shape index: {}]   ;;  %s6268_s8 = inlined_call_operand.vmem [shape: f32[1,128], index: 8, kind: input, shape index: {}]   ;;  %s6269_s9 = inlined_call_operand.hbm [shape: bf16[2,16,16,128], index: 9, kind: output, shape index: {}]  }
   0x1   :  { %6278 = sst [smem:[#allocation18_spill]] %s6261_s1 }
   0x2   :  { %6279 = sst [smem:[#allocation19_spill]] %s6269_s9 }
   0x3   :  { %14 = vsyncpa [#allocation4], 0 }
   0x4   :  { %16 = vsyncpa [#allocation4 + $0x1], 0 }
   0x5   :  { %17 = vsyncpa [#allocation7], 0 }
   0x6   :  { %19 = vsyncpa [#allocation7 + $0x1], 0 }
   0x7   :  { %20 = vsyncpa [#allocation5], 0 }
   0x8   :  { %22 = vsyncpa [#allocation5 + $0x1], 0  ;;  %s4917_s30 = smov 0   ;;  %s4919_s10 = smov 0  }
   0x9   :  { %s4921_s11 = smov 0   ;;  %s4923_s12 = smov 0  }
   0xa   :  { %s4925_s13 = smov 0   ;;  %s4927_s14 = smov 0  }
   0xb LB: > { %6280 = sst [smem:[#allocation12_spill]] %s4835_s30  ;;  %s3783_s15 = sadd.s32 4294967295, %s4855_s14   ;;  %s4855_s14 = sphi %s4927_s14, %s28_s14   ;;  %s4851_s13 = sphi %s4925_s13, %s6313_s13   ;;  %s4847_s12 = sphi %s4923_s12, %s6312_s12   ;;  %s4843_s11 = sphi %s4921_s11, %s6311_s11   ;;  %s4839_s10 = sphi %s4919_s10, %s6310_s10   ;;  %s4835_s30 = sphi %s4917_s30, %s6309_s30  }
   0xc   : > { %6281 = sst [smem:[#allocation13_spill]] %s4843_s11  ;;  %s3784_s16 = sadd.s32 4294967294, %s4855_s14  }
   0xd   : > { %s40_s17 = sadd.s32 1, %s4851_s13  ;;  %s85_s18 = sadd.s32 1, %s4843_s11 }
   0xe   : > { %p42_p0 = scmp.ge.s32.totalorder %s40_s17, 2  ;;  %p92_p1 = scmp.ne.s32.totalorder %s4843_s11, %s4839_s10 }
   0xf   : > { %p93_p2 = scmp.eq.s32.totalorder %s4855_s14, 0  ;;  %p98_p3 = scmp.ne.s32.totalorder %s4839_s10, %s4835_s30 }
  0x10   : > { %s6315_s17 = smov (%p42_p0, %s40_s17), 0  ;;  %p99_p5 = scmp.eq.s32.totalorder %s3783_s15, 0 }
  0x11   : > { %6282 = sst [smem:[#allocation14_spill]] %s6315_s17  ;;  %p4958_p4 = por %p93_p2, %p92_p1 }
  0x12   : > { %s80_s20 = ssub.s32 %s4851_s13, %s6315_s17  ;;  %p286_p6 = scmp.eq.s32.totalorder %s3783_s15, 1 }
  0x13   : > { %p83_p7 = scmp.eq.s32.totalorder %s80_s20, 0  ;;  %p4964_p8 = por %p99_p5, %p98_p3 }
  0x14   : > { %p4968_p9 = por %p286_p6, %p92_p1  ;;  %p292_p10 = scmp.eq.s32.totalorder %s3784_s16, 1 }
  0x15   : > { %s4973_s23 = scalar_select %p83_p7, %s4843_s11, %s85_s18  }
  0x16   : > { %s6285_s22 = scalar_select %p4968_p9, 1, 0 }
  0x17   : > { %6287 = sst [smem:[#allocation16_spill]] %s4973_s23  ;;  %p4975_p11 = por %p292_p10, %p98_p3 }
  0x18   : > { %6286 = sst [smem:[#allocation15_spill]] %s6285_s22  ;;  %p3786_p12 = scmp.ge.s32.totalorder %s4855_s14, 2 }
  0x19   : > { %s6288_s24 = scalar_select %p4975_p11, 1, 0 }
  0x1a   : > { %p4568_p13 = scmp.lt.s32.totalorder %s4855_s14, 2  ;;  %s4982_s25 = sand.u32 1, %s4843_s11  }
  0x1b   : > { %6289 = sst [smem:[#allocation17_spill]] %s6288_s24  ;;  %s6271_s26 = sshll.u32 %s4982_s25, 3 }
  0x1c   : > { %s3989_s27 = sshll.u32 %s4851_s13, 11  ;;  %s6290_s1 = sld [smem:[#allocation18_spill]] }
  0x1d   : > { %s348_s16 = scalar_lea.vmem [#allocation3], %s6271_s26  ;;  %p4995_p0 = pnand %p4568_p13, %p4958_p4 }
  0x1e   : > { %s361_s18 = sshll.u32 %s348_s16, 4  ;;  %p3793_p1 = scmp.ge.s32.totalorder %s4855_s14, 1  ;;  %s362_s18 = int_to_ptr.vmem [resolvable:$true] %s361_s18 }
  0x1f   : > { %s345_s17 = scalar_lea.sflag [#allocation4], %s4982_s25  ;;  %p4717_p2 = pneg %p4995_p0 }
  0x20   : > { %s4728_s23 = scalar_lea.vmem %s362_s18, 128  ;;  %s4857_s28 = smov [#allocation3]  }
  0x21   : > { %p4729_p3 = scmp.ne.s32.totalorder %s362_s18, %s4728_s23  ;;  %s4733_s29 = sshll.u32 %s4857_s28, 4  ;;  %s4734_s29 = int_to_ptr.vmem [resolvable:$false] %s4733_s29 }
  0x22   : > { %s360_s15 = scalar_lea.hbm %s6290_s1, %s3989_s27  ;;  %s4735_s19 = scalar_lea.vmem %s4734_s29, 256 }
  0x23   : > { %p4731_p5 = pnand %p4729_p3, %p4717_p2  ;;  %p4736_p4 = scmp.lt.s32.totalorder %s362_s18, %s4734_s29 }
  0x24   : > { %p4737_p7 = scmp.lt.s32.totalorder %s4735_s19, %s4728_s23 }
  0x25   : > { %p4732_p6 = pneg %p4731_p5 }
  0x26   : > { %p4738_p10 = por %p4737_p7, %p4736_p4 }
  0x28   : > { %p4739_p13 = pnand %p4738_p10, %p4732_p6 }
  0x2a   : > { %4742 = shalt.err (!%p4739_p13)
}
  0x2b   : > { %s4858_s16 = smov 64   ;;  %s4859_s26 = smov 4  }
  0x2c   : > { %4560 = dma.hbm_to_vmem [thread:$0]  (!%p4995_p0), %s360_s15, 128, %s362_s18, %s345_s17, %s4858_s16, %s4858_s16, %s4859_s26  }
  0x2d   : > { %p396_p3 = scmp.lt.s32.totalorder %s4855_s14, 3  ;;  %s3991_s28 = sadd.s32 1920, %s3989_s27 }
  0x2e   : > { %s387_s1 = scalar_lea.hbm %s6262_s2, %s3991_s28  ;;  %s6293_s11 = sshll.u32 %s4982_s25, 3 }
  0x2f   : > { %p5013_p5 = pnand %p3793_p1, %p396_p3  ;;  %s375_s24 = scalar_lea.vmem [#allocation6], %s6293_s11 }
  0x30   : > { %s388_s30 = sshll.u32 %s375_s24, 4  ;;  %s372_s9 = scalar_lea.sflag [#allocation7], %s4982_s25  ;;  %s389_s30 = int_to_ptr.vmem [resolvable:$true] %s388_s30 }
  0x31   : > { %s4756_s22 = scalar_lea.vmem %s389_s30, 128  ;;  %s4860_s17 = smov [#allocation6]  }
  0x32   : > { %p4757_p6 = scmp.ne.s32.totalorder %s389_s30, %s4756_s22  ;;  %s4761_s27 = sshll.u32 %s4860_s17, 4  ;;  %s4762_s27 = int_to_ptr.vmem [resolvable:$false] %s4761_s27 }
  0x33   : > { %s4763_s15 = scalar_lea.vmem %s4762_s27, 256  ;;  %p4764_p1 = scmp.lt.s32.totalorder %s389_s30, %s4762_s27 }
  0x34   : > { %p4759_p4 = pnand %p4757_p6, %p4717_p2  ;;  %p4765_p10 = scmp.lt.s32.totalorder %s4763_s15, %s4756_s22 }
  0x36   : > { %p4760_p7 = pneg %p4759_p4  ;;  %p4766_p13 = por %p4765_p10, %p4764_p1 }
  0x38   : > { %p4767_p3 = pnand %p4766_p13, %p4760_p7 }
  0x3a   : > { %4770 = shalt.err (!%p4767_p3)
}
  0x3b   : > { %4563 = dma.hbm_to_vmem [thread:$0]  (!%p4995_p0), %s387_s1, 128, %s389_s30, %s372_s9, %s4858_s16, %s4858_s16, %s4859_s26  }
  0x3c   : > { %400 = sbr.rel (%p5013_p5) target bundleno = 1064 (0x428), region = 56  ;;  %s5031_s11 = sand.u32 (!%p5013_p5), 1, %s4839_s10  }
  0x3d   : > { %s3794_s24 = sshll.u32 (!%p5013_p5), %s5031_s11, 3  ;;  %s403_s25 = scalar_lea.sflag (!%p5013_p5), [#allocation4], %s5031_s11 }
  0x3e   : > { %s406_s18 = scalar_lea.vmem (!%p5013_p5), [#allocation3], %s3794_s24 }
  0x41   : > { %4822 = dma.done.wait (%p4964_p8), %s403_s25, 128  }
  0x42   : > { %4824 = vsyncadd (%p4964_p8), %s403_s25, 4294967168  ;;  %s412_s1 = scalar_lea.sflag [#allocation7], %s5031_s11  ;;  %s5040_s9 = scalar_lea.vmem [#allocation6], %s3794_s24 }
  0x43   : > { %4826 = dma.done.wait (%p4964_p8), %s412_s1, 128  }
  0x44   : > { %4828 = vsyncadd (%p4964_p8), %s412_s1, 4294967168  ;;  %p466_p0 = scmp.lt.s32.totalorder %s4847_s12, 1  ;;  %v4625_v0 = vld [vmem:[%s6263_s3 + $0x38] sm:$0xff]   ;;  %v4626_v1 = vld [vmem:[%s6263_s3 + $0x30] sm:$0xff]   ;;  %vm932_vm0 = vcmask 253952   ;;  %vm1497_vm5 = vcmask 257024  }
  0x45   : > { %4411 = vmatprep.subr.bf16.mxu0 %v4625_v0  ;;  %v4627_v2 = vld [vmem:[%s6263_s3 + $0x28] sm:$0xff]   ;;  %v4628_v3 = vld [vmem:[%s6263_s3 + $0x20] sm:$0xff]   ;;  %v4629_v5 = vld [vmem:[%s6263_s3 + $0x18] sm:$0xff]   ;;  %vm933_vm1 = vsmask.f32 256  ;;  %vm2045_vm9 = vcmask 1046528  }
  0x46   : > { %s467_s16 = scalar_select %p466_p0, %s4847_s12, 1  ;;  %4412 = vmatpush3.bf16.msra.mxu0 %v4625_v0  ;;  %v4633_v4 = vld [vmem:[%s406_s18] sm:$0xff]   ;;  %v4630_v6 = vld [vmem:[%s6263_s3 + $0x10] sm:$0xff]   ;;  %v4631_v7 = vld [vmem:[%s6263_s3 + $0x8] sm:$0xff]   ;;  %vm989_vm3 = vsmask.f32 7938 }
  0x47   : > { %4413 = vmatprep.subr.bf16.mxu0 %v4626_v1  ;;  %4427 = vmatprep.mubr.bf16.mxu0 %v4633_v4  ;;  %v4632_v8 = vld [vmem:[%s6263_s3] sm:$0xff]   ;;  %v4650_v25 = vld [vmem:[%s5040_s9] sm:$0xff]   ;;  %vm5096_vm2 = vmand %vm932_vm0, %vm933_vm1  ;;  %vm1135_vm6 = vsmask.f32 4368  ;;  %s4862_s25 = smov 96   ;;  %s4863_s9 = smov 32  }
  0x48   : > { %s3992_s21 = sshll.u32 %s467_s16, 7  ;;  %v938_v27 = vld [vmem:[#allocation2 + $0xc] sm:$0x1]  ;;  %v935_v29 = vld [vmem:[#allocation2] sm:$0x1]  ;;  %vm5106_vm4 = vmand %vm932_vm0, %vm989_vm3  ;;  %s4864_s16 = smov 64  }
  0x49   : > { %s5063_s15 = scalar_lea.vmem %s6260_s0, %s3992_s21  ;;  %v939_v28 = vsel %vm5096_vm2, 0, %v938_v27  ;;  %v936_v30 = vsel %vm5096_vm2, 0, %v935_v29  ;;  %v994_v32 = vld [vmem:[#allocation2 + $0x14] sm:$0x1]  ;;  %v991_v34 = vld [vmem:[#allocation2 + $0x8] sm:$0x1]  ;;  %vm5173_vm7 = vmand %vm1497_vm5, %vm989_vm3 }
  0x4a   : > { %4414 = vmatpush3.bf16.msra.mxu0 %v4626_v1  ;;  %v4634_v9 = vld [vmem:[%s5063_s15] sm:$0xff]   ;;  %v4635_v10 = vld [vmem:[%s5063_s15 + $0x8] sm:$0xff]   ;;  %v4636_v11 = vld [vmem:[%s5063_s15 + $0x10] sm:$0xff]   ;;  %940 = vst [vmem:[#allocation2 + $0xc] sm:$0x1] %v939_v28  ;;  %v995_v33 = vsel %vm5106_vm4, 0, %v994_v32 }
  0x4b   : > { %4415 = vmatprep.subr.bf16.mxu0 %v4627_v2  ;;  %v4637_v12 = vld [vmem:[%s5063_s15 + $0x18] sm:$0xff]   ;;  %v4638_v13 = vld [vmem:[%s5063_s15 + $0x20] sm:$0xff]   ;;  %v4639_v14 = vld [vmem:[%s5063_s15 + $0x28] sm:$0xff]   ;;  %937 = vst [vmem:[#allocation2] sm:$0x1] %v936_v30  ;;  %v992_v35 = vsel %vm5106_vm4, 0, %v991_v34 }
  0x4c   : > { %v4640_v15 = vld [vmem:[%s5063_s15 + $0x30] sm:$0xff]   ;;  %v4641_v16 = vld [vmem:[%s5063_s15 + $0x38] sm:$0xff]   ;;  %v4642_v17 = vld [vmem:[%s5063_s15 + $0x40] sm:$0xff]   ;;  %996 = vst [vmem:[#allocation2 + $0x14] sm:$0x1] %v995_v33  ;;  %vm2300_vm11 = vcmask 261120  }
  0x4d   : > { %v4643_v18 = vld [vmem:[%s5063_s15 + $0x48] sm:$0xff]   ;;  %v4644_v19 = vld [vmem:[%s5063_s15 + $0x50] sm:$0xff]   ;;  %v4645_v20 = vld [vmem:[%s5063_s15 + $0x58] sm:$0xff]   ;;  %993 = vst [vmem:[#allocation2 + $0x8] sm:$0x1] %v992_v35  ;;  %vm2333_vm12 = vcmask 523264  }
  0x4e   : > { %4416 = vmatpush3.bf16.msra.mxu0 %v4627_v2  ;;  %v4646_v21 = vld [vmem:[%s5063_s15 + $0x60] sm:$0xff]   ;;  %v4647_v22 = vld [vmem:[%s5063_s15 + $0x68] sm:$0xff]   ;;  %v4648_v23 = vld [vmem:[%s5063_s15 + $0x70] sm:$0xff]   ;;  %vm1820_vm10 = vsmask.f32 7424  ;;  %vm2366_vm13 = vcmask 785408  }
  0x4f   : > { %4417 = vmatprep.subr.bf16.mxu0 %v4628_v3  ;;  %v4649_v24 = vld [vmem:[%s5063_s15 + $0x78] sm:$0xff]   ;;  %v944_v36 = vld [vmem:[#allocation2 + $0x24] sm:$0x1]  ;;  %v1000_v40 = vld [vmem:[#allocation2 + $0x2c] sm:$0x1]  ;;  %s3796_s21 = sshll.u32 %s5031_s11, 7 }
  0x50   : > { %v945_v37 = vsel %vm5096_vm2, 0, %v944_v36  ;;  %v941_v38 = vld [vmem:[#allocation2 + $0x18] sm:$0x1]  ;;  %v1001_v41 = vsel %vm5106_vm4, 0, %v1000_v40  ;;  %v997_v42 = vld [vmem:[#allocation2 + $0x20] sm:$0x1]  ;;  %vm5183_vm8 = vmor %vm933_vm1, %vm1135_vm6 }
  0x51   : > { %946 = vst [vmem:[#allocation2 + $0x24] sm:$0x1] %v945_v37  ;;  %v942_v39 = vsel %vm5096_vm2, 0, %v941_v38  ;;  %1002 = vst [vmem:[#allocation2 + $0x2c] sm:$0x1] %v1001_v41  ;;  %v998_v43 = vsel %vm5106_vm4, 0, %v997_v42 }
  0x52   : > { %4418 = vmatpush3.bf16.msra.mxu0 %v4628_v3  ;;  %943 = vst [vmem:[#allocation2 + $0x18] sm:$0x1] %v942_v39  ;;  %999 = vst [vmem:[#allocation2 + $0x20] sm:$0x1] %v998_v43  ;;  %v950_v44 = vld [vmem:[#allocation2 + $0x3c] sm:$0x1] }
  0x53   : > { %4419 = vmatprep.subr.bf16.mxu0 %v4629_v5  ;;  %v951_v45 = vsel %vm5096_vm2, 0, %v950_v44  ;;  %v947_v46 = vld [vmem:[#allocation2 + $0x30] sm:$0x1]  ;;  %v1006_v48 = vld [vmem:[#allocation2 + $0x44] sm:$0x1]  ;;  %s6147_s29 = scalar_lea.vmem [#allocation8], %s3796_s21 }
  0x54   : > { %952 = vst [vmem:[#allocation2 + $0x3c] sm:$0x1] %v951_v45  ;;  %v948_v47 = vsel %vm5096_vm2, 0, %v947_v46  ;;  %v1007_v49 = vsel %vm5106_vm4, 0, %v1006_v48  ;;  %v1003_v50 = vld [vmem:[#allocation2 + $0x38] sm:$0x1] }
  0x55   : > { %949 = vst [vmem:[#allocation2 + $0x30] sm:$0x1] %v948_v47  ;;  %1008 = vst [vmem:[#allocation2 + $0x44] sm:$0x1] %v1007_v49  ;;  %v1004_v51 = vsel %vm5106_vm4, 0, %v1003_v50  ;;  %s4061_s19 = sshll.u32 %s4847_s12, 11 }
  0x56   : > { %4420 = vmatpush3.bf16.msra.mxu0 %v4629_v5  ;;  %1005 = vst [vmem:[#allocation2 + $0x38] sm:$0x1] %v1004_v51  ;;  %v956_v52 = vld [vmem:[#allocation2 + $0x54] sm:$0x1]  ;;  %v953_v54 = vld [vmem:[#allocation2 + $0x48] sm:$0x1] }
  0x57   : > { %4421 = vmatprep.subr.bf16.mxu0 %v4630_v6  ;;  %v957_v53 = vsel %vm5096_vm2, 0, %v956_v52  ;;  %v954_v55 = vsel %vm5096_vm2, 0, %v953_v54  ;;  %v1012_v56 = vld [vmem:[#allocation2 + $0x5c] sm:$0x1]  ;;  %v1009_v58 = vld [vmem:[#allocation2 + $0x50] sm:$0x1] }
  0x58   : > { %958 = vst [vmem:[#allocation2 + $0x54] sm:$0x1] %v957_v53  ;;  %955 = vst [vmem:[#allocation2 + $0x48] sm:$0x1] %v954_v55  ;;  %v1013_v57 = vsel %vm5106_vm4, 0, %v1012_v56  ;;  %v1010_v59 = vsel %vm5106_vm4, 0, %v1009_v58 }
  0x59   : > { %1014 = vst [vmem:[#allocation2 + $0x5c] sm:$0x1] %v1013_v57  ;;  %1011 = vst [vmem:[#allocation2 + $0x50] sm:$0x1] %v1010_v59  ;;  %v962_v60 = vld [vmem:[#allocation2 + $0x6c] sm:$0x1] }
  0x5a   : > { %4422 = vmatpush3.bf16.msra.mxu0 %v4630_v6  ;;  %v959_v61 = vld [vmem:[#allocation2 + $0x60] sm:$0x1]  ;;  %v963_v62 = vsel %vm5096_vm2, 0, %v962_v60  ;;  %v1018_v0 = vld [vmem:[#allocation2 + $0x74] sm:$0x1]  ;;  %s3649_s17 = sshll.u32 %s6147_s29, 4  ;;  %s6209_s17 = int_to_ptr.vmem [resolvable:$true] %s3649_s17 }
  0x5b   : > { %4423 = vmatprep.subr.bf16.mxu0 %v4631_v7  ;;  %v960_v63 = vsel %vm5096_vm2, 0, %v959_v61  ;;  %964 = vst [vmem:[#allocation2 + $0x6c] sm:$0x1] %v963_v62  ;;  %v1015_v1 = vld [vmem:[#allocation2 + $0x68] sm:$0x1]  ;;  %v1019_v2 = vsel %vm5106_vm4, 0, %v1018_v0 }
  0x5c   : > { %961 = vst [vmem:[#allocation2 + $0x60] sm:$0x1] %v960_v63  ;;  %v1016_v3 = vsel %vm5106_vm4, 0, %v1015_v1  ;;  %1020 = vst [vmem:[#allocation2 + $0x74] sm:$0x1] %v1019_v2  ;;  %s6303_s1 = sld [smem:[#allocation19_spill]] }
  0x5d   : > { %1017 = vst [vmem:[#allocation2 + $0x68] sm:$0x1] %v1016_v3  ;;  %v968_v4 = vld [vmem:[#allocation2 + $0x84] sm:$0x1]  ;;  %v965_v5 = vld [vmem:[#allocation2 + $0x78] sm:$0x1] }
  0x5e   : > { %4424 = vmatpush3.bf16.msra.mxu0 %v4631_v7  ;;  %v969_v6 = vsel %vm5096_vm2, 0, %v968_v4  ;;  %v966_v7 = vsel %vm5096_vm2, 0, %v965_v5  ;;  %v1507_v43 = vld [vmem:[#allocation2 + $0xc] sm:$0xf]  ;;  %v1499_v52 = vld [vmem:[#allocation2] sm:$0xf] }
  0x5f   : > { %4425 = vmatprep.subr.bf16.mxu0 %v4632_v8  ;;  %970 = vst [vmem:[#allocation2 + $0x84] sm:$0x1] %v969_v6  ;;  %967 = vst [vmem:[#allocation2 + $0x78] sm:$0x1] %v966_v7  ;;  %v1511_v63 = vld [vmem:[#allocation2 + $0x14] sm:$0x1] }
  0x60   : > { %s4865_s12 = smov [#allocation8]  }
  0x61   : > { %s4775_s18 = sshll.u32 %s4865_s12, 4  ;;  %s4776_s18 = int_to_ptr.vmem [resolvable:$false] %s4775_s18 }
  0x62   : > { %4426 = vmatpush3.bf16.msra.mxu0 %v4632_v8  ;;  %v1024_v8 = vld [vmem:[#allocation2 + $0x8c] sm:$0x1]  ;;  %s6206_s30 = scalar_lea.hbm %s6303_s1, %s4061_s19  ;;  %s4777_s22 = scalar_lea.vmem %s4776_s18, 4096 }
  0x63   : > { %p4778_p6 = scmp.lt.s32.totalorder %s6209_s17, %s4776_s18 }
  0x65   : > { %4428 = vmatmul.mubr.bf16.vlgmr.msra.gmra.mxu0 %v4634_v9  ;;  %v1021_v9 = vld [vmem:[#allocation2 + $0x80] sm:$0x1] }
  0x66   : > { %4431 = vmatprep.mubr.bf16.mxu0 %v4635_v10  ;;  %v1025_v10 = vsel %vm5106_vm4, 0, %v1024_v8 }
  0x67   : > { %1026 = vst [vmem:[#allocation2 + $0x8c] sm:$0x1] %v1025_v10 }
  0x6d   : > { %4432 = vmatmul.mubr.bf16.gmra.mxu0 %v4636_v11  ;;  %v1022_v11 = vsel %vm5106_vm4, 0, %v1021_v9 }
  0x6e   : > { %4435 = vmatprep.mubr.bf16.mxu0 %v4637_v12  ;;  %1023 = vst [vmem:[#allocation2 + $0x80] sm:$0x1] %v1022_v11  ;;  %v974_v12 = vld [vmem:[#allocation2 + $0x9c] sm:$0x1] }
  0x75   : > { %4436 = vmatmul.mubr.bf16.gmra.mxu0 %v4638_v13  ;;  %v971_v13 = vld [vmem:[#allocation2 + $0x90] sm:$0x1] }
  0x76   : > { %4439 = vmatprep.mubr.bf16.mxu0 %v4639_v14  ;;  %v975_v14 = vsel %vm5096_vm2, 0, %v974_v12 }
  0x77   : > { %976 = vst [vmem:[#allocation2 + $0x9c] sm:$0x1] %v975_v14  ;;  %v4861_v14 = vmov 0  }
  0x7d   : > { %4440 = vmatmul.mubr.bf16.gmra.mxu0 %v4640_v15  ;;  %v972_v15 = vsel %vm5096_vm2, 0, %v971_v13 }
  0x7e   : > { %4443 = vmatprep.mubr.bf16.mxu0 %v4641_v16  ;;  %973 = vst [vmem:[#allocation2 + $0x90] sm:$0x1] %v972_v15  ;;  %v1030_v16 = vld [vmem:[#allocation2 + $0xa4] sm:$0x1] }
  0x85   : > { %4444 = vmatmul.mubr.bf16.gmra.mxu0 %v4642_v17  ;;  %v1027_v17 = vld [vmem:[#allocation2 + $0x98] sm:$0x1] }
  0x86   : > { %4447 = vmatprep.mubr.bf16.mxu0 %v4643_v18  ;;  %v1031_v18 = vsel %vm5106_vm4, 0, %v1030_v16 }
  0x87   : > { %1032 = vst [vmem:[#allocation2 + $0xa4] sm:$0x1] %v1031_v18 }
  0x8d   : > { %4448 = vmatmul.mubr.bf16.gmra.mxu0 %v4644_v19  ;;  %v1028_v19 = vsel %vm5106_vm4, 0, %v1027_v17  ;;  %v1504_v17 = vld [vmem:[#allocation2 + $0x8] sm:$0x1] }
  0x8e   : > { %4451 = vmatprep.mubr.bf16.mxu0 %v4645_v20  ;;  %1029 = vst [vmem:[#allocation2 + $0x98] sm:$0x1] %v1028_v19  ;;  %v5165_v20 = vld [vmem:[%s6264_s4] ss:$0 sm:$0xff] }
  0x95   : > { %4452 = vmatmul.mubr.bf16.gmra.mxu0 %v4646_v21 }
  0x96   : > { %4455 = vmatprep.mubr.bf16.mxu0 %v4647_v22 }
  0x9d   : > { %4456 = vmatmul.mubr.bf16.gmra.mxu0 %v4648_v23 }
  0x9e   : > { %4459 = vmatprep.mubr.bf16.mxu0 %v4649_v24 }
  0xa5   : > { %4460 = vmatmul.mubr.bf16.gmra.mxu0 %v4650_v25 }
 0x125   : > { %v4429_v21 = vpop.f32.mrf.mxu0 }
 0x126   : > { %v744_v22 = vadd.f32 %v4429_v21, %v5165_v20 }
 0x127   : > { %v735_v23 = vpop.f32.mrf.mxu0 }
 0x128   : > { %v880_v24 = vmax.f32 %v744_v22, 0.0  ;;  %v736_v25 = vadd.f32 %v5165_v20, %v735_v23 }
 0x129   : > { %v4430_v27 = vpop.f32.mrf.mxu0 }
 0x12a   : > { %v3995_v28 = vpack.c.bf16 %v880_v24, %v880_v24  ;;  %v878_v29 = vmax.f32 %v736_v25, 0.0  ;;  %v747_v30 = vadd.f32 %v4430_v27, %v5165_v20  ;;  %v1521_v27 = vld [vmem:[#allocation2 + $0x24] sm:$0xf] }
 0x12b   : > { %v738_v32 = vpop.f32.mrf.mxu0 }
 0x12c   : > { %v1155_v33 = vshrl.u32 %v3995_v28, 16  ;;  %v3993_v34 = vpack.c.bf16 %v878_v29, %v878_v29  ;;  %v881_v35 = vmax.f32 %v747_v30, 0.0  ;;  %v739_v36 = vadd.f32 %v5165_v20, %v738_v32 }
 0x12d   : > { %v4433_v37 = vpop.f32.mrf.mxu0  ;;  %v1158_v39 = vshll.u32 %v3995_v28, 16 }
 0x12e   : > { %v1157_v38 = vrot.slane %v1155_v33, 7  ;;  %v1138_v40 = vshrl.u32 %v3993_v34, 16  ;;  %v3996_v41 = vpack.c.bf16 %v881_v35, %v881_v35  ;;  %v1141_v44 = vshll.u32 %v3993_v34, 16 }
 0x12f   : > { %v879_v45 = vmax.f32 %v739_v36, 0.0  ;;  %v760_v46 = vadd.f32 %v4433_v37, %v5165_v20  ;;  %v751_v47 = vpop.f32.mrf.mxu0 }
 0x130   : > { %v1160_v48 = vor.u32 %v1158_v39, %v1157_v38  ;;  %v1161_v49 = vrot.slane %v1157_v38, 4  ;;  %v1140_v50 = vrot.slane %v1138_v40, 7  ;;  %v1163_v51 = vshrl.u32 %v3996_v41, 16 }
 0x131   : > { %v1166_v53 = vshll.u32 %v3996_v41, 16  ;;  %v3994_v54 = vpack.c.bf16 %v879_v45, %v879_v45  ;;  %v884_v55 = vmax.f32 %v760_v46, 0.0  ;;  %v752_v56 = vadd.f32 %v5165_v20, %v751_v47  ;;  %v4434_v57 = vpop.f32.mrf.mxu0  ;;  %v1514_v45 = vld [vmem:[#allocation2 + $0x18] sm:$0xf] }
 0x132   : > { %v1508_v58 = vsel %vm5173_vm7, %v1160_v48, %v1507_v43  ;;  %v1143_v59 = vor.u32 %v1141_v44, %v1140_v50  ;;  %v1144_v60 = vrot.slane %v1140_v50, 4  ;;  %v1165_v61 = vrot.slane %v1163_v51, 7  ;;  %v4675_v43 = vld [vmem:[%s6265_s5 + $0x78] sm:$0xff]  }
 0x133   : > { %1509 = vst [vmem:[#allocation2 + $0xc] sm:$0xf] %v1508_v58  ;;  %v1146_v0 = vshrl.u32 %v3994_v54, 16  ;;  %v1149_v1 = vshll.u32 %v3994_v54, 16  ;;  %v3999_v2 = vpack.c.bf16 %v884_v55, %v884_v55  ;;  %v882_v3 = vmax.f32 %v752_v56, 0.0  ;;  %v754_v4 = vpop.f32.mrf.mxu0  ;;  %v4676_v50 = vld [vmem:[%s6265_s5 + $0x38] sm:$0xff]   ;;  %4263 = vmatprep.subr.bf16.mxu0 %v4675_v43  ;;  %4535 = vmatprep.subr.bf16.mxu1 %v4675_v43 }
 0x134   : > { %v1500_v5 = vsel %vm5173_vm7, %v1143_v59, %v1499_v52  ;;  %v1168_v6 = vor.u32 %v1166_v53, %v1165_v61  ;;  %v1170_v7 = vrot.slane %v1165_v61, 4  ;;  %v763_v8 = vadd.f32 %v4434_v57, %v5165_v20  ;;  %v1525_v54 = vld [vmem:[#allocation2 + $0x2c] sm:$0x1]  ;;  %v1518_v57 = vld [vmem:[#allocation2 + $0x20] sm:$0x1]  ;;  %4264 = vmatpush3.bf16.msra.mxu0 %v4676_v50  ;;  %4543 = vmatpush3.bf16.msra.mxu1 %v4676_v50 }
 0x135   : > { %1501 = vst [vmem:[#allocation2] sm:$0xf] %v1500_v5  ;;  %v1148_v9 = vrot.slane %v1146_v0, 7  ;;  %v1189_v10 = vshrl.u32 %v3999_v2, 16  ;;  %v1192_v11 = vshll.u32 %v3999_v2, 16  ;;  %v3997_v12 = vpack.c.bf16 %v882_v3, %v882_v3  ;;  %v4437_v13 = vpop.f32.mrf.mxu0 }
 0x136   : > { %1630 = vst.msk [vmem:[#allocation2] sm:$0xf] %vm1497_vm5, %v4861_v14  ;;  %v1169_v15 = vsel %vm5183_vm8, %v1161_v49, %v1168_v6  ;;  %v1512_v16 = vsel %vm5096_vm2, %v1170_v7, %v1511_v63  ;;  %v885_v18 = vmax.f32 %v763_v8, 0.0  ;;  %v755_v19 = vadd.f32 %v5165_v20, %v754_v4  ;;  %v4677_v4 = vld [vmem:[%s6265_s5 + $0x70] sm:$0xff]  }
 0x137   : > { %1510 = vst.msk [vmem:[#allocation2 + $0x10] sm:$0xf] %vm1497_vm5, %v1169_v15  ;;  %1513 = vst [vmem:[#allocation2 + $0x14] sm:$0x1] %v1512_v16  ;;  %v1151_v21 = vor.u32 %v1149_v1, %v1148_v9  ;;  %v1153_v22 = vrot.slane %v1148_v9, 4  ;;  %v1191_v23 = vrot.slane %v1189_v10, 7  ;;  %v767_v25 = vpop.f32.mrf.mxu0  ;;  %v776_v32 = vadd.f32 %v4437_v13, %v5165_v20  ;;  %4265 = vmatprep.subr.bf16.mxu0 %v4677_v4 }
 0x138   : > { %v1172_v24 = vshrl.u32 %v3997_v12, 16  ;;  %v1175_v28 = vshll.u32 %v3997_v12, 16  ;;  %v4000_v29 = vpack.c.bf16 %v885_v18, %v885_v18  ;;  %v883_v30 = vmax.f32 %v755_v19, 0.0  ;;  %v4678_v9 = vld [vmem:[%s6265_s5 + $0x30] sm:$0xff]   ;;  %v1535_v18 = vld [vmem:[#allocation2 + $0x3c] sm:$0xf]  ;;  %4536 = vmatprep.subr.bf16.mxu1 %v4677_v4 }
 0x139   : > { %v1152_v33 = vsel %vm5183_vm8, %v1144_v60, %v1151_v21  ;;  %v1505_v34 = vsel %vm5096_vm2, %v1153_v22, %v1504_v17  ;;  %v1194_v35 = vor.u32 %v1192_v11, %v1191_v23  ;;  %v1195_v36 = vrot.slane %v1191_v23, 4  ;;  %v4438_v37 = vpop.f32.mrf.mxu0  ;;  %4266 = vmatpush3.bf16.msra.mxu0 %v4678_v9  ;;  %4544 = vmatpush3.bf16.msra.mxu1 %v4678_v9 }
 0x13a   : > { %1503 = vst.msk [vmem:[#allocation2 + $0x4] sm:$0xf] %vm1497_vm5, %v1152_v33  ;;  %1506 = vst [vmem:[#allocation2 + $0x8] sm:$0x1] %v1505_v34  ;;  %v5204_v38 = vrot.slane %v1172_v24, 7  ;;  %v1197_v39 = vshrl.u32 %v4000_v29, 16  ;;  %v3998_v41 = vpack.c.bf16 %v883_v30, %v883_v30  ;;  %v768_v47 = vadd.f32 %v5165_v20, %v767_v25 }
 0x13b   : > { %v1200_v40 = vshll.u32 %v4000_v29, 16  ;;  %1631 = vst.msk [vmem:[#allocation2 + $0x4] sm:$0xf] %vm1497_vm5, %v4861_v14  ;;  %v1522_v44 = vsel %vm5173_vm7, %v1194_v35, %v1521_v27  ;;  %v888_v46 = vmax.f32 %v776_v32, 0.0  ;;  %v779_v48 = vadd.f32 %v4438_v37, %v5165_v20  ;;  %v770_v49 = vpop.f32.mrf.mxu0  ;;  %v1528_v25 = vld [vmem:[#allocation2 + $0x30] sm:$0xf] }
 0x13c   : > { %1633 = vst.msk [vmem:[#allocation2 + $0x8] sm:$0x1] %vm932_vm0, %v4861_v14  ;;  %1523 = vst [vmem:[#allocation2 + $0x24] sm:$0xf] %v1522_v44  ;;  %v1177_v51 = vor.u32 %v1175_v28, %v5204_v38  ;;  %v1178_v52 = vrot.slane %v5204_v38, 4  ;;  %v1199_v53 = vrot.slane %v1197_v39, 7  ;;  %v771_v28 = vadd.f32 %v5165_v20, %v770_v49 }
 0x13d   : > { %v1180_v55 = vshrl.u32 %v3998_v41, 16  ;;  %v1183_v56 = vshll.u32 %v3998_v41, 16  ;;  %v4003_v58 = vpack.c.bf16 %v888_v46, %v888_v46  ;;  %v886_v59 = vmax.f32 %v768_v47, 0.0  ;;  %v4441_v61 = vpop.f32.mrf.mxu0  ;;  %v4680_v35 = vld [vmem:[%s6265_s5 + $0x68] sm:$0xff]   ;;  %v1539_v47 = vld [vmem:[#allocation2 + $0x44] sm:$0x1] }
 0x13e   : > { %v889_v60 = vmax.f32 %v779_v48, 0.0  ;;  %v1515_v63 = vsel %vm5173_vm7, %v1177_v51, %v1514_v45  ;;  %v1202_v0 = vor.u32 %v1200_v40, %v1199_v53  ;;  %v1204_v1 = vrot.slane %v1199_v53, 4  ;;  %v5224_v3 = vld [vmem:[#allocation2 + $0xc] sm:$0xff]   ;;  %v5238_v15 = vld [vmem:[#allocation2 + $0x14] ss:$0 sps:$4 sm:$0x11]   ;;  %4267 = vmatprep.subr.bf16.mxu0 %v4680_v35  ;;  %4537 = vmatprep.subr.bf16.mxu1 %v4680_v35 }
 0x13f   : > { %v1182_v2 = vrot.slane %v1180_v55, 7  ;;  %1516 = vst [vmem:[#allocation2 + $0x18] sm:$0xf] %v1515_v63  ;;  %v1223_v5 = vshrl.u32 %v4003_v58, 16  ;;  %v1226_v6 = vshll.u32 %v4003_v58, 16  ;;  %v4001_v7 = vpack.c.bf16 %v886_v59, %v886_v59  ;;  %2131 = vrot.lane.b32.xlu1 %v5224_v3, %s4862_s25  ;;  %v5240_v16 = vpop.f32.mrf.mxu0  ;;  %v4681_v48 = vld [vmem:[%s6265_s5 + $0x28] sm:$0xff]  }
 0x140   : > { %v4004_v8 = vpack.c.bf16 %v889_v60, %v889_v60  ;;  %v1203_v10 = vsel %vm5183_vm8, %v1195_v36, %v1202_v0  ;;  %v1526_v11 = vsel %vm5096_vm2, %v1204_v1, %v1525_v54  ;;  %v887_v36 = vmax.f32 %v771_v28, 0.0  ;;  %v4682_v53 = vld [vmem:[%s6265_s5 + $0x60] sm:$0xff]   ;;  %4268 = vmatpush3.bf16.msra.mxu0 %v4681_v48  ;;  %4545 = vmatpush3.bf16.msra.mxu1 %v4681_v48 }
 0x141   : > { %v1185_v12 = vor.u32 %v1183_v56, %v1182_v2  ;;  %v1187_v13 = vrot.slane %v1182_v2, 4  ;;  %1524 = vst.msk [vmem:[#allocation2 + $0x28] sm:$0xf] %vm1497_vm5, %v1203_v10  ;;  %1527 = vst [vmem:[#allocation2 + $0x2c] sm:$0x1] %v1526_v11  ;;  %v1225_v17 = vrot.slane %v1223_v5, 7  ;;  %v792_v40 = vadd.f32 %v4441_v61, %v5165_v20  ;;  %v4442_v41 = vpop.f32.mrf.mxu0  ;;  %4269 = vmatprep.subr.bf16.mxu0 %v4682_v53 }
 0x142   : > { %v1206_v19 = vshrl.u32 %v4001_v7, 16  ;;  %v1209_v21 = vshll.u32 %v4001_v7, 16  ;;  %v1231_v22 = vshrl.u32 %v4004_v8, 16  ;;  %v1234_v27 = vshll.u32 %v4004_v8, 16  ;;  %v5248_v29 = vld [vmem:[#allocation2] sm:$0xff]   ;;  %4538 = vmatprep.subr.bf16.mxu1 %v4682_v53  ;;  %v4689_v53 = vld [vmem:[%s6265_s5 + $0x10] sm:$0xff]  }
 0x143   : > { %v1186_v23 = vsel %vm5183_vm8, %v1178_v52, %v1185_v12  ;;  %v1519_v24 = vsel %vm5096_vm2, %v1187_v13, %v1518_v57  ;;  %v1228_v30 = vor.u32 %v1226_v6, %v1225_v17  ;;  %v1229_v32 = vrot.slane %v1225_v17, 4  ;;  %v5258_v39 = vld [vmem:[#allocation2 + $0x8] ss:$0 sps:$4 sm:$0x11]   ;;  %v4683_v58 = vld [vmem:[%s6265_s5 + $0x20] sm:$0xff]   ;;  %v786_v1 = vpop.f32.mrf.mxu0  ;;  %v4685_v17 = vld [vmem:[%s6265_s5 + $0x58] sm:$0xff]  }
 0x144   : > { %1517 = vst.msk [vmem:[#allocation2 + $0x1c] sm:$0xf] %vm1497_vm5, %v1186_v23  ;;  %1520 = vst [vmem:[#allocation2 + $0x20] sm:$0x1] %v1519_v24  ;;  %v5251_v33 = vrot.slane %v1206_v19, 7  ;;  %v1233_v34 = vrot.slane %v1231_v22, 7  ;;  %v4002_v50 = vpack.c.bf16 %v887_v36, %v887_v36  ;;  %v784_v7 = vadd.f32 %v5165_v20, %v5240_v16  ;;  %4270 = vmatpush3.bf16.msra.mxu0 %v4683_v58 }
 0x145   : > { %v2049_v37 = vrot.slane %v5224_v3, 1  ;;  %v2050_v38 = vrot.slane %v5238_v15, 1  ;;  %v1536_v43 = vsel %vm5173_vm7, %v1228_v30, %v1535_v18  ;;  %v2046_v52 = vrot.slane %v5248_v29, 1  ;;  %v1532_v2 = vld [vmem:[#allocation2 + $0x38] sm:$0x1]  ;;  %4546 = vmatpush3.bf16.msra.mxu1 %v4683_v58  ;;  %4271 = vmatprep.subr.bf16.mxu0 %v4685_v17 }
 0x146   : > { %v1211_v44 = vor.u32 %v1209_v21, %v5251_v33  ;;  %v1212_v45 = vrot.slane %v5251_v33, 4  ;;  %v1236_v46 = vor.u32 %v1234_v27, %v1233_v34  ;;  %1537 = vst [vmem:[#allocation2 + $0x3c] sm:$0xf] %v1536_v43  ;;  %v1238_v49 = vrot.slane %v1233_v34, 4  ;;  %v4686_v24 = vld [vmem:[%s6265_s5 + $0x18] sm:$0xff]   ;;  %4539 = vmatprep.subr.bf16.mxu1 %v4685_v17 }
 0x147   : > { %v2051_v51 = vsel %vm2045_vm9, %v2049_v37, %v2050_v38  ;;  %v2047_v56 = vrot.slane %v5258_v39, 1  ;;  %v1834_v57 = vshrl.u32 %v5224_v3, 16  ;;  %v1214_v60 = vshrl.u32 %v4002_v50, 16  ;;  %v1549_v37 = vld [vmem:[#allocation2 + $0x54] sm:$0xf] }
 0x148   : > { %v1529_v54 = vsel %vm5173_vm7, %v1211_v44, %v1528_v25  ;;  %v1237_v55 = vsel %vm5183_vm8, %v1229_v32, %v1236_v46  ;;  %2181 = vrot.lane.b32.xlu0 %v2051_v51, %s4863_s9  ;;  %2096 = vrot.lane.b32.xlu1 %v2051_v51, %s4864_s16  ;;  %v1540_v59 = vsel %vm5096_vm2, %v1238_v49, %v1539_v47  ;;  %v1217_v61 = vshll.u32 %v4002_v50, 16  ;;  %v5287_v63 = vld [vmem:[#allocation2 + $0x24] sm:$0xff]  }
 0x149   : > { %1530 = vst [vmem:[#allocation2 + $0x30] sm:$0xf] %v1529_v54  ;;  %1538 = vst.msk [vmem:[#allocation2 + $0x40] sm:$0xf] %vm1497_vm5, %v1237_v55  ;;  %v1836_v0 = vshll.u32 %v5224_v3, 16  ;;  %v2048_v4 = vsel %vm2045_vm9, %v2046_v52, %v2047_v56  ;;  %v1841_v5 = vshll.u32 %v5238_v15, 16  ;;  %v795_v3 = vadd.f32 %v4442_v41, %v5165_v20  ;;  %4272 = vmatpush3.bf16.msra.mxu0 %v4686_v24 }
 0x14a   : > { %1541 = vst [vmem:[#allocation2 + $0x44] sm:$0x1] %v1540_v59  ;;  %v892_v6 = vmax.f32 %v792_v40, 0.0  ;;  %v1216_v8 = vrot.slane %v1214_v60, 7  ;;  %v2055_v10 = vrot.slane %v5287_v63, 1  ;;  %v890_v13 = vmax.f32 %v784_v7, 0.0  ;;  %v5322_v40 = vpop.f32.mrf.mxu0  ;;  %4547 = vmatpush3.bf16.msra.mxu1 %v4686_v24 }
 0x14b   : > { %v1838_v9 = vrot.slane %v1836_v0, 1  ;;  %v1843_v11 = vrot.slane %v1841_v5, 1  ;;  %v5299_v15 = vld [vmem:[#allocation2 + $0x2c] ss:$0 sps:$4 sm:$0x11]   ;;  %v787_v16 = vadd.f32 %v5165_v20, %v786_v1  ;;  %v5305_v21 = vld [vmem:[#allocation2 + $0x18] sm:$0xff]  }
 0x14c   : > { %2220 = vrot.lane.b32.xlu0 %v5287_v63, %s4864_s16  ;;  %2094 = vrot.lane.b32.xlu1 %v2048_v4, %s4864_s16  ;;  %v4007_v12 = vpack.c.bf16 %v892_v6, %v892_v6  ;;  %v1219_v18 = vor.u32 %v1217_v61, %v1216_v8  ;;  %v1221_v19 = vrot.slane %v1216_v8, 4  ;;  %v893_v23 = vmax.f32 %v795_v3, 0.0  ;;  %v5311_v32 = vld [vmem:[#allocation2 + $0x20] ss:$0 sps:$4 sm:$0x11]   ;;  %v4688_v41 = vld [vmem:[%s6265_s5 + $0x50] sm:$0xff]   ;;  %v799_v59 = vpop.f32.mrf.mxu0 }
 0x14d   : > { %v1839_v22 = vor.u32 %v1838_v9, %v1834_v57  ;;  %v4005_v28 = vpack.c.bf16 %v890_v13, %v890_v13  ;;  %v2056_v30 = vrot.slane %v5299_v15, 1  ;;  %v891_v48 = vmax.f32 %v787_v16, 0.0  ;;  %4273 = vmatprep.subr.bf16.mxu0 %v4688_v41  ;;  %4540 = vmatprep.subr.bf16.mxu1 %v4688_v41  ;;  %v1542_v55 = vld [vmem:[#allocation2 + $0x48] sm:$0xf]  ;;  %v1553_v1 = vld [vmem:[#allocation2 + $0x5c] sm:$0x1] }
 0x14e   : > { %v1257_v25 = vshrl.u32 %v4007_v12, 16  ;;  %v1260_v27 = vshll.u32 %v4007_v12, 16  ;;  %v1220_v34 = vsel %vm5183_vm8, %v1212_v45, %v1219_v18  ;;  %v1533_v35 = vsel %vm5096_vm2, %v1221_v19, %v1532_v2  ;;  %v4691_v4 = vld [vmem:[%s6265_s5 + $0x48] sm:$0xff]   ;;  %4274 = vmatpush3.bf16.msra.mxu0 %v4689_v53  ;;  %4548 = vmatpush3.bf16.msra.mxu1 %v4689_v53  ;;  %v1546_v3 = vld [vmem:[#allocation2 + $0x50] sm:$0x1]  ;;  %v4446_v19 = vpop.f32.mrf.mxu0 }
 0x14f   : > { %v5320_v36 = vsel %vm1820_vm10, %v1839_v22, %v1843_v11  ;;  %v4008_v38 = vpack.c.bf16 %v893_v23, %v893_v23  ;;  %1531 = vst.msk [vmem:[#allocation2 + $0x34] sm:$0xf] %vm1497_vm5, %v1220_v34  ;;  %1534 = vst [vmem:[#allocation2 + $0x38] sm:$0x1] %v1533_v35  ;;  %v1240_v43 = vshrl.u32 %v4005_v28, 16  ;;  %v1243_v44 = vshll.u32 %v4005_v28, 16  ;;  %4275 = vmatprep.subr.bf16.mxu0 %v4691_v4 }
 0x150   : > { %2218 = vrot.lane.b32.xlu0 %v5305_v21, %s4864_s16  ;;  %2015 = vrot.lane.b32.xlu1 %v5320_v36, %s4863_s9  ;;  %v1259_v33 = vrot.slane %v1257_v25, 7  ;;  %v5333_v45 = vsel %vm2045_vm9, %v2055_v10, %v2056_v30  ;;  %v2052_v51 = vrot.slane %v5305_v21, 1  ;;  %v2053_v52 = vrot.slane %v5311_v32, 1  ;;  %v4692_v9 = vld [vmem:[%s6265_s5 + $0x8] sm:$0xff]   ;;  %v4693_v22 = vld [vmem:[%s6265_s5 + $0x40] sm:$0xff]  }
 0x151   : > { %v1265_v46 = vshrl.u32 %v4008_v38, 16  ;;  %v1268_v47 = vshll.u32 %v4008_v38, 16  ;;  %v1242_v50 = vrot.slane %v1240_v43, 7  ;;  %v4006_v57 = vpack.c.bf16 %v891_v48, %v891_v48  ;;  %4541 = vmatprep.subr.bf16.mxu1 %v4691_v4  ;;  %v4694_v35 = vld [vmem:[%s6265_s5] sm:$0xff]   ;;  %v802_v43 = vpop.f32.mrf.mxu0 }
 0x152   : > { %v1262_v49 = vor.u32 %v1260_v27, %v1259_v33  ;;  %v1263_v54 = vrot.slane %v1259_v33, 4  ;;  %v1824_v58 = vshll.u32 %v5248_v29, 16  ;;  %v1822_v2 = vshrl.u32 %v5248_v29, 16  ;;  %4276 = vmatpush3.bf16.msra.mxu0 %v4692_v9  ;;  %4549 = vmatpush3.bf16.msra.mxu1 %v4692_v9 }
 0x153   : > { %v1267_v56 = vrot.slane %v1265_v46, 7  ;;  %v1245_v61 = vor.u32 %v1243_v44, %v1242_v50  ;;  %v1246_v0 = vrot.slane %v1242_v50, 4  ;;  %v1248_v7 = vshrl.u32 %v4006_v57, 16  ;;  %4277 = vmatprep.subr.bf16.mxu0 %v4693_v22  ;;  %4542 = vmatprep.subr.bf16.mxu1 %v4693_v22 }
 0x154   : > { %v1550_v60 = vsel %vm5173_vm7, %v1262_v49, %v1549_v37  ;;  %2185 = vrot.lane.b32.xlu0 %v5333_v45, %s4863_s9  ;;  %2135 = vrot.lane.b32.xlu1 %v5287_v63, %s4862_s25  ;;  %v1251_v8 = vshll.u32 %v4006_v57, 16  ;;  %v5357_v29 = vsel %vm2045_vm9, %v2052_v51, %v2053_v52  ;;  %v1826_v11 = vrot.slane %v1824_v58, 1  ;;  %v5391_v49 = vpop.f32.mrf.mxu0 }
 0x155   : > { %1551 = vst [vmem:[#allocation2 + $0x54] sm:$0xf] %v1550_v60  ;;  %v1270_v5 = vor.u32 %v1268_v47, %v1267_v56  ;;  %v1272_v6 = vrot.slane %v1267_v56, 4  ;;  %v1543_v10 = vsel %vm5173_vm7, %v1245_v61, %v1542_v55  ;;  %v1829_v12 = vshll.u32 %v5258_v39, 16  ;;  %v5400_v56 = vld [vmem:[#allocation2 + $0x3c] sm:$0xff]  }
 0x156   : > { %1544 = vst [vmem:[#allocation2 + $0x48] sm:$0xf] %v1543_v10  ;;  %v1250_v17 = vrot.slane %v1248_v7, 7  ;;  %v1860_v18 = vshll.u32 %v5287_v63, 16  ;;  %v1827_v39 = vor.u32 %v1826_v11, %v1822_v2  ;;  %v1858_v24 = vshrl.u32 %v5287_v63, 16  ;;  %4278 = vmatpush3.bf16.msra.mxu0 %v4694_v35  ;;  %4550 = vmatpush3.bf16.msra.mxu1 %v4694_v35  ;;  %v815_v2 = vpop.f32.mrf.mxu0 }
 0x157   : > { %v1271_v13 = vsel %vm5183_vm8, %v1263_v54, %v1270_v5  ;;  %v1554_v16 = vsel %vm5096_vm2, %v1272_v6, %v1553_v1  ;;  %v1831_v23 = vrot.slane %v1829_v12, 1  ;;  %v1865_v25 = vshll.u32 %v5299_v15, 16 }
 0x158   : > { %1552 = vst.msk [vmem:[#allocation2 + $0x58] sm:$0xf] %vm1497_vm5, %v1271_v13  ;;  %1555 = vst [vmem:[#allocation2 + $0x5c] sm:$0x1] %v1554_v16  ;;  %2183 = vrot.lane.b32.xlu0 %v5357_v29, %s4863_s9  ;;  %v1253_v27 = vor.u32 %v1251_v8, %v1250_v17  ;;  %v1255_v28 = vrot.slane %v1250_v17, 4  ;;  %v1862_v30 = vrot.slane %v1860_v18, 1  ;;  %v808_v38 = vadd.f32 %v5322_v40, %v5165_v20 }
 0x159   : > { %v1848_v34 = vshll.u32 %v5305_v21, 16  ;;  %v1832_v37 = vsel %vm1820_vm10, %v1827_v39, %v1831_v23  ;;  %v1867_v33 = vrot.slane %v1865_v25, 1  ;;  %v800_v46 = vadd.f32 %v5165_v20, %v799_v59  ;;  %v1556_v18 = vld [vmem:[#allocation2 + $0x60] sm:$0xf]  ;;  %v4450_v39 = vpop.f32.mrf.mxu0 }
 0x15a   : > { %v1254_v63 = vsel %vm5183_vm8, %v1246_v0, %v1253_v27  ;;  %v1547_v15 = vsel %vm5096_vm2, %v1255_v28, %v1546_v3  ;;  %2013 = vrot.lane.b32.xlu1 %v1832_v37, %s4863_s9  ;;  %v1863_v41 = vor.u32 %v1862_v30, %v1858_v24  ;;  %v896_v44 = vmax.f32 %v808_v38, 0.0  ;;  %v1563_v0 = vld [vmem:[#allocation2 + $0x6c] sm:$0xf]  ;;  %v1567_v27 = vld [vmem:[#allocation2 + $0x74] sm:$0x1] }
 0x15b   : > { %1545 = vst.msk [vmem:[#allocation2 + $0x4c] sm:$0xf] %vm1497_vm5, %v1254_v63  ;;  %1548 = vst [vmem:[#allocation2 + $0x50] sm:$0x1] %v1547_v15  ;;  %v1850_v47 = vrot.slane %v1848_v34, 1  ;;  %v811_v48 = vadd.f32 %v4446_v19, %v5165_v20  ;;  %v894_v51 = vmax.f32 %v800_v46, 0.0  ;;  %v803_v52 = vadd.f32 %v5165_v20, %v802_v43 }
 0x15c   : > { %v5388_v40 = vsel %vm1820_vm10, %v1863_v41, %v1867_v33  ;;  %v4011_v50 = vpack.c.bf16 %v896_v44, %v896_v44  ;;  %v1846_v53 = vshrl.u32 %v5305_v21, 16  ;;  %v1853_v54 = vshll.u32 %v5311_v32, 16  ;;  %v1560_v37 = vld [vmem:[#allocation2 + $0x68] sm:$0x1]  ;;  %v5418_v63 = vld [vmem:[#allocation2 + $0x30] sm:$0xff]  }
 0x15d   : > { %2019 = vrot.lane.b32.xlu0 %v5388_v40, %s4863_s9  ;;  %v897_v55 = vmax.f32 %v811_v48, 0.0  ;;  %v4009_v59 = vpack.c.bf16 %v894_v51, %v894_v51  ;;  %v895_v60 = vmax.f32 %v803_v52, 0.0  ;;  %v2061_v8 = vrot.slane %v5400_v56, 1  ;;  %v818_v51 = vpop.f32.mrf.mxu0 }
 0x15e   : > { %2133 = vrot.lane.b32.xlu1 %v5305_v21, %s4862_s25  ;;  %v1291_v57 = vshrl.u32 %v4011_v50, 16  ;;  %v1294_v58 = vshll.u32 %v4011_v50, 16  ;;  %v1851_v61 = vor.u32 %v1850_v47, %v1846_v53  ;;  %v4661_v21 = vld [vmem:[#allocation2 + $0x44] ss:$0 sps:$4 sm:$0x11]   ;;  %v1855_v32 = vrot.slane %v1853_v54, 1 }
 0x15f   : > { %v4012_v1 = vpack.c.bf16 %v897_v55, %v897_v55  ;;  %v1274_v5 = vshrl.u32 %v4009_v59, 16  ;;  %v1277_v6 = vshll.u32 %v4009_v59, 16  ;;  %v4010_v7 = vpack.c.bf16 %v895_v60, %v895_v60  ;;  %v5426_v47 = vld [vmem:[#allocation2 + $0x38] ss:$0 sps:$4 sm:$0x11]  }
 0x160   : > { %v1293_v4 = vrot.slane %v1291_v57, 7  ;;  %v1884_v13 = vshll.u32 %v5400_v56, 16  ;;  %v5409_v16 = vsel %vm1820_vm10, %v1851_v61, %v1855_v32  ;;  %v2062_v30 = vrot.slane %v4661_v21, 1  ;;  %v4453_v61 = vpop.f32.mrf.mxu0 }
 0x161   : > { %2267 = vrot.lane.b32.xlu0 %v5388_v40, %s4862_s25  ;;  %v1299_v9 = vshrl.u32 %v4012_v1, 16  ;;  %v1302_v10 = vshll.u32 %v4012_v1, 16  ;;  %v1276_v11 = vrot.slane %v1274_v5, 7  ;;  %v1282_v12 = vshrl.u32 %v4010_v7, 16 }
 0x162   : > { %2100 = vrot.lane.b32.xlu1 %v5333_v45, %s4864_s16  ;;  %v1296_v3 = vor.u32 %v1294_v58, %v1293_v4  ;;  %v1297_v17 = vrot.slane %v1293_v4, 4  ;;  %v1285_v22 = vshll.u32 %v4010_v7, 16  ;;  %v1882_v38 = vshrl.u32 %v5400_v56, 16 }
 0x163   : > { %v1301_v19 = vrot.slane %v1299_v9, 7  ;;  %v1279_v24 = vor.u32 %v1277_v6, %v1276_v11  ;;  %v1280_v25 = vrot.slane %v1276_v11, 4  ;;  %v1284_v28 = vrot.slane %v1282_v12, 7  ;;  %v831_v11 = vpop.f32.mrf.mxu0 }
 0x164   : > { %v1564_v23 = vsel %vm5173_vm7, %v1296_v3, %v1563_v0  ;;  %v1886_v43 = vrot.slane %v1884_v13, 1  ;;  %v1889_v48 = vshll.u32 %v4661_v21, 16  ;;  %v824_v50 = vadd.f32 %v5391_v49, %v5165_v20 }
 0x165   : > { %2265 = vrot.lane.b32.xlu0 %v5409_v16, %s4862_s25  ;;  %1565 = vst [vmem:[#allocation2 + $0x6c] sm:$0xf] %v1564_v23  ;;  %v1304_v34 = vor.u32 %v1302_v10, %v1301_v19  ;;  %v1306_v35 = vrot.slane %v1301_v19, 4  ;;  %v1557_v15 = vsel %vm5173_vm7, %v1279_v24, %v1556_v18  ;;  %v1287_v41 = vor.u32 %v1285_v22, %v1284_v28  ;;  %v1577_v19 = vld [vmem:[#allocation2 + $0x84] sm:$0xf] }
 0x166   : > { %2098 = vrot.lane.b32.xlu1 %v5357_v29, %s4864_s16  ;;  %v1289_v33 = vrot.slane %v1284_v28, 4  ;;  %1558 = vst [vmem:[#allocation2 + $0x60] sm:$0xf] %v1557_v15  ;;  %v816_v54 = vadd.f32 %v5165_v20, %v815_v2  ;;  %v2058_v49 = vrot.slane %v5418_v63, 1  ;;  %v900_v55 = vmax.f32 %v824_v50, 0.0 }
 0x167   : > { %v1305_v44 = vsel %vm5183_vm8, %v1297_v17, %v1304_v34  ;;  %v1568_v46 = vsel %vm5096_vm2, %v1306_v35, %v1567_v27  ;;  %v1288_v52 = vsel %vm5183_vm8, %v1280_v25, %v1287_v41  ;;  %v5443_v57 = vsel %vm2045_vm9, %v2061_v8, %v2062_v30  ;;  %v1570_v27 = vld [vmem:[#allocation2 + $0x78] sm:$0xf]  ;;  %v4454_v41 = vpop.f32.mrf.mxu0 }
 0x168   : > { %1566 = vst.msk [vmem:[#allocation2 + $0x70] sm:$0xf] %vm1497_vm5, %v1305_v44  ;;  %1569 = vst [vmem:[#allocation2 + $0x74] sm:$0x1] %v1568_v46  ;;  %v1561_v53 = vsel %vm5096_vm2, %v1289_v33, %v1560_v37  ;;  %v898_v58 = vmax.f32 %v816_v54, 0.0  ;;  %v827_v59 = vadd.f32 %v4450_v39, %v5165_v20  ;;  %v819_v60 = vadd.f32 %v5165_v20, %v818_v51 }
 0x169   : > { %2222 = vrot.lane.b32.xlu0 %v5418_v63, %s4864_s16  ;;  %1559 = vst.msk [vmem:[#allocation2 + $0x64] sm:$0xf] %vm1497_vm5, %v1288_v52  ;;  %1562 = vst [vmem:[#allocation2 + $0x68] sm:$0x1] %v1561_v53  ;;  %v2059_v0 = vrot.slane %v5426_v47, 1  ;;  %v1887_v1 = vor.u32 %v1886_v43, %v1882_v38  ;;  %v1891_v2 = vrot.slane %v1889_v48, 1  ;;  %v4015_v4 = vpack.c.bf16 %v900_v55, %v900_v55 }
 0x16a   : > { %2224 = vrot.lane.b32.xlu1 %v5400_v56, %s4864_s16  ;;  %v4013_v5 = vpack.c.bf16 %v898_v58, %v898_v58  ;;  %v901_v6 = vmax.f32 %v827_v59, 0.0  ;;  %v899_v21 = vmax.f32 %v819_v60, 0.0  ;;  %v1872_v17 = vshll.u32 %v5418_v63, 16  ;;  %v1581_v38 = vld [vmem:[#allocation2 + $0x8c] sm:$0x1] }
 0x16b   : > { %v1325_v7 = vshrl.u32 %v4015_v4, 16  ;;  %v1328_v32 = vshll.u32 %v4015_v4, 16  ;;  %v5453_v12 = vsel %vm2045_vm9, %v2058_v49, %v2059_v0  ;;  %v5456_v13 = vsel %vm1820_vm10, %v1887_v1, %v1891_v2  ;;  %v5471_v48 = vld [vmem:[%s6265_s5 + $0x88] sm:$0xff]   ;;  %v1574_v54 = vld [vmem:[#allocation2 + $0x80] sm:$0x1]  ;;  %v5480_v49 = vld [vmem:[#allocation2 + $0x54] sm:$0xff]   ;;  %v834_v0 = vpop.f32.mrf.mxu0 }
 0x16c   : > { %v1308_v8 = vshrl.u32 %v4013_v5, 16  ;;  %v1311_v9 = vshll.u32 %v4013_v5, 16  ;;  %v4016_v10 = vpack.c.bf16 %v901_v6, %v901_v6  ;;  %v4014_v3 = vpack.c.bf16 %v899_v21, %v899_v21  ;;  %4463 = vmatprep.subr.bf16.mxu0 %v5471_v48  ;;  %v5482_v55 = vld [vmem:[#allocation2 + $0x5c] ss:$0 sps:$4 sm:$0x11]  }
 0x16d   : > { %2189 = vrot.lane.b32.xlu0 %v5443_v57, %s4863_s9  ;;  %v1327_v18 = vrot.slane %v1325_v7, 7  ;;  %v840_v30 = vadd.f32 %v4453_v61, %v5165_v20  ;;  %v1870_v33 = vshrl.u32 %v5418_v63, 16  ;;  %v1874_v43 = vrot.slane %v1872_v17, 1  ;;  %v5500_v6 = vld [vmem:[%s6264_s4] ss:$0 sm:$0xff] }
 0x16e   : > { %2139 = vrot.lane.b32.xlu1 %v5400_v56, %s4862_s25  ;;  %v1310_v56 = vrot.slane %v1308_v8, 7  ;;  %v1333_v22 = vshrl.u32 %v4016_v10, 16  ;;  %v1336_v39 = vshll.u32 %v4016_v10, 16  ;;  %v1316_v23 = vshrl.u32 %v4014_v3, 16  ;;  %v5507_v8 = vpop.f32.mrf.mxu0 }
 0x16f   : > { %v1330_v24 = vor.u32 %v1328_v32, %v1327_v18  ;;  %v1331_v25 = vrot.slane %v1327_v18, 4  ;;  %v1319_v28 = vshll.u32 %v4014_v3, 16  ;;  %v1877_v44 = vshll.u32 %v5426_v47, 16 }
 0x170   : > { %v1313_v34 = vor.u32 %v1311_v9, %v1310_v56  ;;  %v1314_v35 = vrot.slane %v1310_v56, 4  ;;  %v1335_v37 = vrot.slane %v1333_v22, 7  ;;  %v1318_v15 = vrot.slane %v1316_v23, 7  ;;  %v1591_v22 = vld [vmem:[#allocation2 + $0x9c] sm:$0xf] }
 0x171   : > { %2187 = vrot.lane.b32.xlu0 %v5453_v12, %s4863_s9  ;;  %v1578_v46 = vsel %vm5173_vm7, %v1330_v24, %v1577_v19  ;;  %v904_v61 = vmax.f32 %v840_v30, 0.0  ;;  %v1879_v1 = vrot.slane %v1877_v44, 1  ;;  %v832_v4 = vadd.f32 %v5165_v20, %v831_v11  ;;  %v5517_v23 = vld [vmem:[#allocation2 + $0x50] ss:$0 sps:$4 sm:$0x11]   ;;  %v5519_v30 = vld [vmem:[#allocation2 + $0x48] sm:$0xff]  }
 0x172   : > { %2017 = vrot.lane.b32.xlu1 %v5409_v16, %s4863_s9  ;;  %1579 = vst [vmem:[#allocation2 + $0x84] sm:$0xf] %v1578_v46  ;;  %v1571_v50 = vsel %vm5173_vm7, %v1313_v34, %v1570_v27  ;;  %v1338_v51 = vor.u32 %v1336_v39, %v1335_v37  ;;  %v1340_v52 = vrot.slane %v1335_v37, 4  ;;  %v1321_v53 = vor.u32 %v1319_v28, %v1318_v15  ;;  %v847_v28 = vpop.f32.mrf.mxu0  ;;  %v1584_v37 = vld [vmem:[#allocation2 + $0x90] sm:$0xf] }
 0x173   : > { %1572 = vst [vmem:[#allocation2 + $0x78] sm:$0xf] %v1571_v50  ;;  %v1323_v47 = vrot.slane %v1318_v15, 4  ;;  %v4019_v5 = vpack.c.bf16 %v904_v61, %v904_v61  ;;  %v843_v21 = vadd.f32 %v5500_v6, %v4454_v41  ;;  %v2067_v7 = vrot.slane %v5480_v49, 1 }
 0x174   : > { %v1339_v58 = vsel %vm5183_vm8, %v1331_v25, %v1338_v51  ;;  %v1582_v59 = vsel %vm5096_vm2, %v1340_v52, %v1581_v38  ;;  %v1322_v60 = vsel %vm5183_vm8, %v1314_v35, %v1321_v53  ;;  %v902_v32 = vmax.f32 %v832_v4, 0.0  ;;  %v4458_v61 = vpop.f32.mrf.mxu0 }
 0x175   : > { %2271 = vrot.lane.b32.xlu0 %v5456_v13, %s4862_s25  ;;  %1580 = vst.msk [vmem:[#allocation2 + $0x88] sm:$0xf] %vm1497_vm5, %v1339_v58  ;;  %1583 = vst [vmem:[#allocation2 + $0x8c] sm:$0x1] %v1582_v59  ;;  %v1575_v2 = vsel %vm5096_vm2, %v1323_v47, %v1574_v54  ;;  %v835_v20 = vadd.f32 %v5500_v6, %v834_v0  ;;  %v2068_v9 = vrot.slane %v5482_v55, 1  ;;  %v1359_v10 = vshrl.u32 %v4019_v5, 16 }
 0x176   : > { %2137 = vrot.lane.b32.xlu1 %v5418_v63, %s4862_s25  ;;  %v1875_v63 = vor.u32 %v1874_v43, %v1870_v33  ;;  %1573 = vst.msk [vmem:[#allocation2 + $0x7c] sm:$0xf] %vm1497_vm5, %v1322_v60  ;;  %1576 = vst [vmem:[#allocation2 + $0x80] sm:$0x1] %v1575_v2  ;;  %v1362_v3 = vshll.u32 %v4019_v5, 16  ;;  %v905_v11 = vmax.f32 %v843_v21, 0.0  ;;  %v4017_v18 = vpack.c.bf16 %v902_v32, %v902_v32 }
 0x177   : > { %v903_v19 = vmax.f32 %v835_v20, 0.0  ;;  %v1361_v56 = vrot.slane %v1359_v10, 7  ;;  %v5522_v34 = vsel %vm2045_vm9, %v2067_v7, %v2068_v9  ;;  %v1908_v41 = vshll.u32 %v5480_v49, 16  ;;  %v1595_v43 = vld [vmem:[#allocation2 + $0xa4] sm:$0x1] }
 0x178   : > { %v5511_v17 = vsel %vm1820_vm10, %v1875_v63, %v1879_v1  ;;  %v4020_v39 = vpack.c.bf16 %v905_v11, %v905_v11  ;;  %v1342_v24 = vshrl.u32 %v4017_v18, 16  ;;  %v1345_v25 = vshll.u32 %v4017_v18, 16  ;;  %v1588_v60 = vld [vmem:[#allocation2 + $0x98] sm:$0x1]  ;;  %v980_v32 = vld [vmem:[#allocation2 + $0xb4] sm:$0x1] }
 0x179   : > { %2228 = vrot.lane.b32.xlu0 %v5480_v49, %s4864_s16  ;;  %v4018_v27 = vpack.c.bf16 %v903_v19, %v903_v19  ;;  %v1364_v35 = vor.u32 %v1362_v3, %v1361_v56  ;;  %v2064_v50 = vrot.slane %v5519_v30, 1  ;;  %v1365_v51 = vrot.slane %v1361_v56, 4  ;;  %v977_v20 = vld [vmem:[#allocation2 + $0xa8] sm:$0x1]  ;;  %v1036_v19 = vld [vmem:[#allocation2 + $0xbc] sm:$0x1]  ;;  %v850_v56 = vpop.f32.mrf.mxu0 }
 0x17a   : > { %2104 = vrot.lane.b32.xlu1 %v5443_v57, %s4864_s16  ;;  %v1367_v38 = vshrl.u32 %v4020_v39, 16  ;;  %v1370_v15 = vshll.u32 %v4020_v39, 16  ;;  %v1344_v33 = vrot.slane %v1342_v24, 7  ;;  %v2065_v54 = vrot.slane %v5517_v23, 1 }
 0x17b   : > { %v1350_v44 = vshrl.u32 %v4018_v27, 16  ;;  %v1353_v46 = vshll.u32 %v4018_v27, 16  ;;  %v1592_v52 = vsel %vm5173_vm7, %v1364_v35, %v1591_v22  ;;  %v1906_v0 = vshrl.u32 %v5480_v49, 16 }
 0x17c   : > { %v1369_v53 = vrot.slane %v1367_v38, 7  ;;  %1593 = vst [vmem:[#allocation2 + $0x9c] sm:$0xf] %v1592_v52  ;;  %v1347_v47 = vor.u32 %v1345_v25, %v1344_v33  ;;  %v1348_v58 = vrot.slane %v1344_v33, 4  ;;  %v1913_v63 = vshll.u32 %v5482_v55, 16 }
 0x17d   : > { %2269 = vrot.lane.b32.xlu0 %v5511_v17, %s4862_s25  ;;  %v1352_v59 = vrot.slane %v1350_v44, 7  ;;  %v1910_v4 = vrot.slane %v1908_v41, 1  ;;  %v5546_v10 = vsel %vm2045_vm9, %v2064_v50, %v2065_v54  ;;  %v856_v18 = vadd.f32 %v5500_v6, %v5507_v8  ;;  %v1033_v25 = vld [vmem:[#allocation2 + $0xb0] sm:$0x1]  ;;  %v5694_v26 = vld [vmem:[#allocation2 + $0x78] sm:$0xff]  }
 0x17e   : > { %2102 = vrot.lane.b32.xlu1 %v5453_v12, %s4864_s16  ;;  %v1372_v1 = vor.u32 %v1370_v15, %v1369_v53  ;;  %v1374_v2 = vrot.slane %v1369_v53, 4  ;;  %v1585_v5 = vsel %vm5173_vm7, %v1347_v47, %v1584_v37  ;;  %v1896_v22 = vshll.u32 %v5519_v30, 16 }
 0x17f   : > { %v1355_v21 = vor.u32 %v1353_v46, %v1352_v59  ;;  %v1357_v7 = vrot.slane %v1352_v59, 4  ;;  %1586 = vst [vmem:[#allocation2 + $0x90] sm:$0xf] %v1585_v5  ;;  %v848_v39 = vadd.f32 %v5500_v6, %v847_v28  ;;  %v978_v24 = vsel %vm5096_vm2, 0, %v977_v20 }
 0x180   : > { %v1373_v9 = vsel %vm5183_vm8, %v1365_v51, %v1372_v1  ;;  %v1596_v55 = vsel %vm5096_vm2, %v1374_v2, %v1595_v43  ;;  %v1911_v27 = vor.u32 %v1910_v4, %v1906_v0  ;;  %v1915_v35 = vrot.slane %v1913_v63, 1  ;;  %979 = vst [vmem:[#allocation2 + $0xa8] sm:$0x1] %v978_v24  ;;  %v4461_v0 = vpop.f32.mrf.mxu0 }
 0x181   : > { %2226 = vrot.lane.b32.xlu0 %v5519_v30, %s4864_s16  ;;  %1594 = vst.msk [vmem:[#allocation2 + $0xa0] sm:$0xf] %vm1497_vm5, %v1373_v9  ;;  %1597 = vst [vmem:[#allocation2 + $0xa4] sm:$0x1] %v1596_v55  ;;  %v1356_v3 = vsel %vm5183_vm8, %v1348_v58, %v1355_v21  ;;  %v1589_v11 = vsel %vm5096_vm2, %v1357_v7, %v1588_v60  ;;  %v908_v37 = vmax.f32 %v856_v18, 0.0  ;;  %v906_v38 = vmax.f32 %v848_v39, 0.0 }
 0x182   : > { %2023 = vrot.lane.b32.xlu1 %v5456_v13, %s4863_s9  ;;  %1587 = vst.msk [vmem:[#allocation2 + $0x94] sm:$0xf] %vm1497_vm5, %v1356_v3  ;;  %1590 = vst [vmem:[#allocation2 + $0x98] sm:$0x1] %v1589_v11  ;;  %v859_v8 = vadd.f32 %v5500_v6, %v4458_v61  ;;  %v1037_v15 = vsel %vm5106_vm4, 0, %v1036_v19  ;;  %v851_v28 = vadd.f32 %v5500_v6, %v850_v56  ;;  %v1901_v41 = vshll.u32 %v5517_v23, 16  ;;  %v863_v39 = vpop.f32.mrf.mxu0 }
 0x183   : > { %v4023_v33 = vpack.c.bf16 %v908_v37, %v908_v37  ;;  %1038 = vst [vmem:[#allocation2 + $0xbc] sm:$0x1] %v1037_v15  ;;  %v1034_v44 = vsel %vm5106_vm4, 0, %v1033_v25  ;;  %v1894_v46 = vshrl.u32 %v5519_v30, 16  ;;  %v1898_v50 = vrot.slane %v1896_v22, 1  ;;  %v5579_v23 = vld [vmem:[#allocation2 + $0x6c] sm:$0xff]  }
 0x184   : > { %v909_v43 = vmax.f32 %v859_v8, 0.0  ;;  %v4021_v51 = vpack.c.bf16 %v906_v38, %v906_v38  ;;  %v907_v52 = vmax.f32 %v851_v28, 0.0  ;;  %1035 = vst [vmem:[#allocation2 + $0xb0] sm:$0x1] %v1034_v44  ;;  %v5575_v53 = vsel %vm1820_vm10, %v1911_v27, %v1915_v35  ;;  %v986_v28 = vld [vmem:[#allocation2 + $0xcc] sm:$0x1] }
 0x185   : > { %2193 = vrot.lane.b32.xlu0 %v5522_v34, %s4863_s9  ;;  %v1393_v54 = vshrl.u32 %v4023_v33, 16  ;;  %v1396_v47 = vshll.u32 %v4023_v33, 16  ;;  %v1903_v63 = vrot.slane %v1901_v41, 1  ;;  %v1899_v5 = vor.u32 %v1898_v50, %v1894_v46  ;;  %v5583_v21 = vld [vmem:[#allocation2 + $0x74] ss:$0 sps:$4 sm:$0x11]  }
 0x186   : > { %2143 = vrot.lane.b32.xlu1 %v5480_v49, %s4862_s25  ;;  %v981_v49 = vsel %vm5096_vm2, 0, %v980_v32  ;;  %v4024_v58 = vpack.c.bf16 %v909_v43, %v909_v43  ;;  %v1376_v59 = vshrl.u32 %v4021_v51, 16  ;;  %v1379_v60 = vshll.u32 %v4021_v51, 16 }
 0x187   : > { %982 = vst [vmem:[#allocation2 + $0xb4] sm:$0x1] %v981_v49  ;;  %v4022_v61 = vpack.c.bf16 %v907_v52, %v907_v52  ;;  %v1395_v1 = vrot.slane %v1393_v54, 7  ;;  %v1598_v20 = vld [vmem:[#allocation2 + $0xa8] sm:$0xf]  ;;  %v872_v37 = vadd.f32 %v5500_v6, %v4461_v0  ;;  %v864_v41 = vadd.f32 %v5500_v6, %v863_v39 }
 0x188   : > { %v1401_v2 = vshrl.u32 %v4024_v58, 16  ;;  %v1404_v4 = vshll.u32 %v4024_v58, 16  ;;  %v1378_v32 = vrot.slane %v1376_v59, 7  ;;  %v5596_v33 = vsel %vm1820_vm10, %v1899_v5, %v1903_v63  ;;  %v983_v54 = vld [vmem:[#allocation2 + $0xc0] sm:$0x1] }
 0x189   : > { %2191 = vrot.lane.b32.xlu0 %v5546_v10, %s4863_s9  ;;  %v1384_v9 = vshrl.u32 %v4022_v61, 16  ;;  %v1398_v55 = vor.u32 %v1396_v47, %v1395_v1  ;;  %v1399_v3 = vrot.slane %v1395_v1, 4  ;;  %v1387_v18 = vshll.u32 %v4022_v61, 16  ;;  %v4462_v47 = vpop.f32.mrf.mxu0  ;;  %v1042_v58 = vld [vmem:[#allocation2 + $0xd4] sm:$0x1]  ;;  %v5613_v59 = vld [vmem:[#allocation2 + $0x60] sm:$0xff]  }
 0x18a   : > { %2021 = vrot.lane.b32.xlu1 %v5511_v17, %s4863_s9  ;;  %v1403_v11 = vrot.slane %v1401_v2, 7  ;;  %v1381_v19 = vor.u32 %v1379_v60, %v1378_v32  ;;  %v1382_v56 = vrot.slane %v1378_v32, 4  ;;  %v1609_v22 = vld [vmem:[#allocation2 + $0xbc] sm:$0x1]  ;;  %v2073_v46 = vrot.slane %v5579_v23, 1 }
 0x18b   : > { %v1386_v49 = vrot.slane %v1384_v9, 7  ;;  %v1602_v35 = vld [vmem:[#allocation2 + $0xb0] sm:$0x1]  ;;  %v2074_v50 = vrot.slane %v5583_v21, 1  ;;  %v912_v61 = vmax.f32 %v872_v37, 0.0  ;;  %v987_v0 = vsel %vm5096_vm2, 0, %v986_v28 }
 0x18c   : > { %v1406_v25 = vor.u32 %v1404_v4, %v1403_v11  ;;  %v1408_v27 = vrot.slane %v1403_v11, 4  ;;  %v1599_v8 = vsel %vm5173_vm7, %v1381_v19, %v1598_v20  ;;  %v5615_v60 = vld [vmem:[#allocation2 + $0x68] ss:$0 sps:$4 sm:$0x11]   ;;  %v1932_v63 = vshll.u32 %v5579_v23, 16 }
 0x18d   : > { %2275 = vrot.lane.b32.xlu0 %v5575_v53, %s4862_s25  ;;  %v1389_v38 = vor.u32 %v1387_v18, %v1386_v49  ;;  %v1391_v15 = vrot.slane %v1386_v49, 4  ;;  %1600 = vst [vmem:[#allocation2 + $0xa8] sm:$0xf] %v1599_v8  ;;  %988 = vst [vmem:[#allocation2 + $0xcc] sm:$0x1] %v987_v0  ;;  %v910_v1 = vmax.f32 %v864_v41, 0.0  ;;  %v4027_v4 = vpack.c.bf16 %v912_v61, %v912_v61 }
 0x18e   : > { %2141 = vrot.lane.b32.xlu1 %v5519_v30, %s4862_s25  ;;  %v1605_v7 = vld [vmem:[#allocation2 + $0xb4] sm:$0xf]  ;;  %v1407_v43 = vsel %vm5183_vm8, %v1399_v3, %v1406_v25  ;;  %v1610_v44 = vsel %vm5096_vm2, %v1408_v27, %v1609_v22  ;;  %v2070_v2 = vrot.slane %v5613_v59, 1  ;;  %v984_v5 = vsel %vm5096_vm2, 0, %v983_v54  ;;  %v1039_v3 = vld [vmem:[#allocation2 + $0xc8] sm:$0x1] }
 0x18f   : > { %v1606_v24 = vsel %vm5173_vm7, %v1398_v55, %v1605_v7  ;;  %1608 = vst.msk [vmem:[#allocation2 + $0xb8] sm:$0xf] %vm1497_vm5, %v1407_v43  ;;  %1611 = vst [vmem:[#allocation2 + $0xbc] sm:$0x1] %v1610_v44  ;;  %v1390_v51 = vsel %vm5183_vm8, %v1382_v56, %v1389_v38  ;;  %v1603_v52 = vsel %vm5096_vm2, %v1391_v15, %v1602_v35  ;;  %v1043_v9 = vsel %vm5106_vm4, 0, %v1042_v58  ;;  %v866_v55 = vpop.f32.mrf.mxu0 }
 0x190   : > { %1607 = vst [vmem:[#allocation2 + $0xb4] sm:$0xf] %v1606_v24  ;;  %1601 = vst.msk [vmem:[#allocation2 + $0xac] sm:$0xf] %vm1497_vm5, %v1390_v51  ;;  %v5627_v7 = vsel %vm2045_vm9, %v2073_v46, %v2074_v50  ;;  %v4025_v32 = vpack.c.bf16 %v910_v1, %v910_v1  ;;  %v875_v20 = vadd.f32 %v5500_v6, %v4462_v47  ;;  %v2071_v11 = vrot.slane %v5615_v60, 1 }
 0x191   : > { %2232 = vrot.lane.b32.xlu0 %v5579_v23, %s4864_s16  ;;  %1604 = vst [vmem:[#allocation2 + $0xb0] sm:$0x1] %v1603_v52  ;;  %985 = vst [vmem:[#allocation2 + $0xc0] sm:$0x1] %v984_v5  ;;  %v1930_v18 = vshrl.u32 %v5579_v23, 16  ;;  %v1427_v19 = vshrl.u32 %v4027_v4, 16  ;;  %v867_v35 = vadd.f32 %v5500_v6, %v866_v55 }
 0x192   : > { %2108 = vrot.lane.b32.xlu1 %v5522_v34, %s4864_s16  ;;  %v1430_v56 = vshll.u32 %v4027_v4, 16  ;;  %1044 = vst [vmem:[#allocation2 + $0xd4] sm:$0x1] %v1043_v9  ;;  %v1934_v22 = vrot.slane %v1932_v63, 1  ;;  %v1410_v49 = vshrl.u32 %v4025_v32, 16  ;;  %v1413_v39 = vshll.u32 %v4025_v32, 16 }
 0x193   : > { %v913_v24 = vmax.f32 %v875_v20, 0.0  ;;  %v1937_v25 = vshll.u32 %v5583_v21, 16  ;;  %v1429_v27 = vrot.slane %v1427_v19, 7  ;;  %v1040_v37 = vsel %vm5106_vm4, 0, %v1039_v3 }
 0x194   : > { %v1412_v8 = vrot.slane %v1410_v49, 7  ;;  %1041 = vst [vmem:[#allocation2 + $0xc8] sm:$0x1] %v1040_v37  ;;  %v5645_v15 = vsel %vm2045_vm9, %v2070_v2, %v2071_v11  ;;  %v1619_v21 = vld [vmem:[#allocation2 + $0xcc] sm:$0xf]  ;;  %v911_v41 = vmax.f32 %v867_v35, 0.0  ;;  %v1935_v43 = vor.u32 %v1934_v22, %v1930_v18 }
 0x195   : > { %2273 = vrot.lane.b32.xlu0 %v5596_v33, %s4862_s25  ;;  %v4028_v38 = vpack.c.bf16 %v913_v24, %v913_v24  ;;  %v1432_v28 = vor.u32 %v1430_v56, %v1429_v27  ;;  %v1939_v46 = vrot.slane %v1937_v25, 1  ;;  %v1920_v50 = vshll.u32 %v5613_v59, 16  ;;  %v5672_v56 = vld [vmem:[#allocation2 + $0x84] sm:$0xff]   ;;  %v4673_v25 = vld [vmem:[#allocation2 + $0x8c] ss:$0 sps:$4 sm:$0x11]  }
 0x196   : > { %2106 = vrot.lane.b32.xlu1 %v5546_v10, %s4864_s16  ;;  %v1415_v6 = vor.u32 %v1413_v39, %v1412_v8  ;;  %v4026_v54 = vpack.c.bf16 %v911_v41, %v911_v41  ;;  %v1433_v47 = vrot.slane %v1429_v27, 4  ;;  %v1918_v2 = vshrl.u32 %v5613_v59, 16  ;;  %v4674_v35 = vld [vmem:[#allocation2 + $0x80] ss:$0 sps:$4 sm:$0x11]  }
 0x197   : > { %v1435_v44 = vshrl.u32 %v4028_v38, 16  ;;  %v1438_v31 = vshll.u32 %v4028_v38, 16  ;;  %v1620_v51 = vsel %vm5173_vm7, %v1432_v28, %v1619_v21  ;;  %v1925_v4 = vshll.u32 %v5615_v60, 16 }
 0x198   : > { %v1612_v52 = vld [vmem:[#allocation2 + $0xc0] sm:$0xf]  ;;  %1621 = vst [vmem:[#allocation2 + $0xcc] sm:$0xf] %v1620_v51  ;;  %v1418_v63 = vshrl.u32 %v4026_v54, 16  ;;  %v1421_v1 = vshll.u32 %v4026_v54, 16  ;;  %v5661_v42 = vsel %vm1820_vm10, %v1935_v43, %v1939_v46 }
 0x199   : > { %2230 = vrot.lane.b32.xlu0 %v5613_v59, %s4864_s16  ;;  %v1613_v58 = vsel %vm5173_vm7, %v1415_v6, %v1612_v52  ;;  %v1437_v61 = vrot.slane %v1435_v44, 7  ;;  %1635 = vst.msk [vmem:[#allocation2 + $0xcc] sm:$0xf] %vm1497_vm5, %v4861_v14  ;;  %v1623_v0 = vld [vmem:[#allocation2 + $0xd4] sm:$0x1]  ;;  %v1922_v20 = vrot.slane %v1920_v50, 1 }
 0x19a   : > { %2027 = vrot.lane.b32.xlu1 %v5575_v53, %s4863_s9  ;;  %1614 = vst [vmem:[#allocation2 + $0xc0] sm:$0xf] %v1613_v58  ;;  %v1416_v9 = vrot.slane %v1412_v8, 4  ;;  %v1420_v55 = vrot.slane %v1418_v63, 7  ;;  %v1927_v49 = vrot.slane %v1925_v4, 1  ;;  %v2079_v62 = vrot.slane %v5672_v56, 1 }
 0x19b   : > { %v1440_v5 = vor.u32 %v1438_v31, %v1437_v61  ;;  %v1442_v32 = vrot.slane %v1437_v61, 4  ;;  %v1616_v18 = vld [vmem:[#allocation2 + $0xc8] sm:$0x1]  ;;  %v1923_v22 = vor.u32 %v1922_v20, %v1918_v2  ;;  %v2080_v27 = vrot.slane %v4673_v25, 1 }
 0x19c   : > { %v1423_v60 = vor.u32 %v1421_v1, %v1420_v55  ;;  %v1425_v19 = vrot.slane %v1420_v55, 4  ;;  %v1956_v37 = vshll.u32 %v5672_v56, 16  ;;  %v2076_v28 = vrot.slane %v5694_v26, 1  ;;  %v5733_v1 = vld [vmem:[#allocation2 + $0x9c] sm:$0xff]  }
 0x19d   : > { %2197 = vrot.lane.b32.xlu0 %v5627_v7, %s4863_s9  ;;  %v1441_v3 = vsel %vm5183_vm8, %v1433_v47, %v1440_v5  ;;  %v1624_v11 = vsel %vm5096_vm2, %v1442_v32, %v1623_v0  ;;  %v5703_v8 = vsel %vm2045_vm9, %v2079_v62, %v2080_v27  ;;  %v2077_v21 = vrot.slane %v4674_v35, 1  ;;  %v4687_v20 = vld [vmem:[#allocation2 + $0xa4] ss:$0 sps:$4 sm:$0x11]  }
 0x19e   : > { %2147 = vrot.lane.b32.xlu1 %v5579_v23, %s4862_s25  ;;  %1622 = vst.msk [vmem:[#allocation2 + $0xd0] sm:$0xf] %vm1497_vm5, %v1441_v3  ;;  %1625 = vst [vmem:[#allocation2 + $0xd4] sm:$0x1] %v1624_v11  ;;  %v1424_v39 = vsel %vm5183_vm8, %v1416_v9, %v1423_v60  ;;  %v1617_v24 = vsel %vm5096_vm2, %v1425_v19, %v1616_v18  ;;  %v1954_v41 = vshrl.u32 %v5672_v56, 16  ;;  %v1958_v43 = vrot.slane %v1956_v37, 1 }
 0x19f   : > { %1636 = vst.msk [vmem:[#allocation2 + $0xd0] sm:$0xf] %vm1497_vm5, %v4861_v14  ;;  %1615 = vst.msk [vmem:[#allocation2 + $0xc4] sm:$0xf] %vm1497_vm5, %v1424_v39  ;;  %v1961_v6 = vshll.u32 %v4673_v25, 16  ;;  %v5714_v44 = vsel %vm2045_vm9, %v2076_v28, %v2077_v21  ;;  %v1944_v50 = vshll.u32 %v5694_v26, 16 }
 0x1a0   : > { %1637 = vst.msk [vmem:[#allocation2 + $0xd4] sm:$0x1] %vm932_vm0, %v4861_v14  ;;  %1618 = vst [vmem:[#allocation2 + $0xc8] sm:$0x1] %v1617_v24  ;;  %v5688_v14 = vsel %vm1820_vm10, %v1923_v22, %v1927_v49  ;;  %v1959_v31 = vor.u32 %v1958_v43, %v1954_v41  ;;  %v1942_v47 = vshrl.u32 %v5694_v26, 16  ;;  %v1949_v61 = vshll.u32 %v4674_v35, 16 }
 0x1a1   : > { %2195 = vrot.lane.b32.xlu0 %v5645_v15, %s4863_s9  ;;  %v1963_v46 = vrot.slane %v1961_v6, 1  ;;  %v1946_v58 = vrot.slane %v1944_v50, 1  ;;  %v5752_v11 = vld [vmem:[#allocation2 + $0x90] sm:$0xff]   ;;  %v2085_v18 = vrot.slane %v5733_v1, 1  ;;  %v2086_v60 = vrot.slane %v4687_v20, 1 }
 0x1a2   : > { %2025 = vrot.lane.b32.xlu1 %v5596_v33, %s4863_s9  ;;  %v1951_v4 = vrot.slane %v1949_v61, 1  ;;  %v4690_v19 = vld [vmem:[#allocation2 + $0x98] ss:$0 sps:$4 sm:$0x11]   ;;  %v1980_v22 = vshll.u32 %v5733_v1, 16  ;;  %v2082_v24 = vrot.slane %v5752_v11, 1 }
 0x1a3   : > { %v5724_v54 = vsel %vm1820_vm10, %v1959_v31, %v1963_v46  ;;  %v1947_v2 = vor.u32 %v1946_v58, %v1942_v47  ;;  %v5761_v39 = vsel %vm2045_vm9, %v2085_v18, %v2086_v60  ;;  %v2083_v62 = vrot.slane %v4690_v19, 1  ;;  %v4708_v46 = vld [vmem:[#allocation2] sm:$0xff]  }
 0x1a4   : > { %v1978_v27 = vshrl.u32 %v5733_v1, 16  ;;  %v1982_v35 = vrot.slane %v1980_v22, 1  ;;  %v1985_v37 = vshll.u32 %v4687_v20, 16  ;;  %v1968_v31 = vshll.u32 %v5752_v11, 16 }
 0x1a5   : > { %2279 = vrot.lane.b32.xlu0 %v5661_v42, %s4862_s25  ;;  %v5742_v9 = vsel %vm1820_vm10, %v1947_v2, %v1951_v4  ;;  %v5774_v41 = vsel %vm2045_vm9, %v2082_v24, %v2083_v62  ;;  %v1966_v2 = vshrl.u32 %v5752_v11, 16  ;;  %v1973_v20 = vshll.u32 %v4690_v19, 16  ;;  %v5798_v62 = vld [vmem:[#allocation2 + $0xb4] sm:$0xff]  }
 0x1a6   : > { %2145 = vrot.lane.b32.xlu1 %v5613_v59, %s4862_s25  ;;  %v1983_v43 = vor.u32 %v1982_v35, %v1978_v27  ;;  %v1987_v6 = vrot.slane %v1985_v37, 1  ;;  %v1970_v4 = vrot.slane %v1968_v31, 1  ;;  %v4697_v37 = vld [vmem:[#allocation2 + $0xb0] ss:$0 sps:$4 sm:$0x11]  }
 0x1a7   : > { %v5823_v31 = vld [vmem:[#allocation2 + $0xbc] ss:$0 sps:$4 sm:$0x11]  }
 0x1a8   : > { %v5785_v61 = vsel %vm1820_vm10, %v1983_v43, %v1987_v6  ;;  %v1971_v35 = vor.u32 %v1970_v4, %v1966_v2  ;;  %v2089_v2 = vrot.slane %v4697_v37, 1  ;;  %v2002_v4 = vshrl.u32 %v5798_v62, 16 }
 0x1a9   : > { %2236 = vrot.lane.b32.xlu0 %v5672_v56, %s4864_s16 }
 0x1aa   : > { %2112 = vrot.lane.b32.xlu1 %v5627_v7, %s4864_s16 }
 0x1ad   : > { %2277 = vrot.lane.b32.xlu0 %v5688_v14, %s4862_s25 }
 0x1ae   : > { %2110 = vrot.lane.b32.xlu1 %v5645_v15, %s4864_s16 }
 0x1b1   : > { %2234 = vrot.lane.b32.xlu0 %v5694_v26, %s4864_s16  ;;  %v5705_v38 = vpop.permute.xlu1 %2131 }
 0x1b2   : > { %2031 = vrot.lane.b32.xlu1 %v5661_v42, %s4863_s9 }
 0x1b5   : > { %2201 = vrot.lane.b32.xlu0 %v5703_v8, %s4863_s9 }
 0x1b6   : > { %2151 = vrot.lane.b32.xlu1 %v5672_v56, %s4862_s25 }
 0x1b9   : > { %2199 = vrot.lane.b32.xlu0 %v5714_v44, %s4863_s9 }
 0x1ba   : > { %v2182_v51 = vpop.permute.xlu0 %2181  ;;  %v5719_v52 = vpop.permute.xlu1 %2096  ;;  %2029 = vrot.lane.b32.xlu1 %v5688_v14, %s4863_s9 }
 0x1bb   : > { %v2417_v18 = vsel %vm2300_vm11, %v5320_v36, %v2182_v51  ;;  %v1975_v36 = vrot.slane %v1973_v20, 1 }
 0x1bd   : > { %2283 = vrot.lane.b32.xlu0 %v5724_v54, %s4862_s25  ;;  %v5819_v6 = vsel %vm1820_vm10, %v1971_v35, %v1975_v36  ;;  %v1997_v35 = vshll.u32 %v4697_v37, 16 }
 0x1be   : > { %v5729_v0 = vpop.permute.xlu0 %2220  ;;  %v2095_v63 = vpop.permute.xlu1 %2094  ;;  %2149 = vrot.lane.b32.xlu1 %v5694_v26, %s4862_s25 }
 0x1c1   : > { %2240 = vrot.lane.b32.xlu0 %v5733_v1, %s4864_s16 }
 0x1c2   : > { %v2219_v5 = vpop.permute.xlu0 %2218  ;;  %v5737_v32 = vpop.permute.xlu1 %2015  ;;  %2116 = vrot.lane.b32.xlu1 %v5703_v8, %s4864_s16 }
 0x1c3   : > { %v2464_v24 = vsel %vm2333_vm12, %v2417_v18, %v2219_v5 }
 0x1c5   : > { %2281 = vrot.lane.b32.xlu0 %v5742_v9, %s4862_s25 }
 0x1c6   : > { %v5746_v55 = vpop.permute.xlu0 %2185  ;;  %2114 = vrot.lane.b32.xlu1 %v5714_v44, %s4864_s16  ;;  %v5750_v3 = vpop.permute.xlu1 %2135 }
 0x1c9   : > { %2238 = vrot.lane.b32.xlu0 %v5752_v11, %s4864_s16 }
 0x1ca   : > { %v2184_v49 = vpop.permute.xlu0 %2183  ;;  %2035 = vrot.lane.b32.xlu1 %v5724_v54, %s4863_s9 }
 0x1cb   : > { %v2420_v60 = vsel %vm2300_vm11, %v5409_v16, %v2184_v49  ;;  %v4701_v16 = vld [vmem:[%s6265_s5 + $0x80] sm:$0xff]  }
 0x1cc   : > { %v2014_v25 = vpop.permute.xlu1 %2013 }
 0x1cd   : > { %2205 = vrot.lane.b32.xlu0 %v5761_v39, %s4863_s9  ;;  %v2302_v50 = vsel %vm2300_vm11, %v4708_v46, %v2014_v25  ;;  %v4709_v46 = vld [vmem:[#allocation2 + $0xc] sm:$0xff]  }
 0x1ce   : > { %2155 = vrot.lane.b32.xlu1 %v5733_v1, %s4862_s25  ;;  %v2335_v22 = vsel %vm2333_vm12, %v2302_v50, %v2095_v63  ;;  %v2466_v63 = vsel %vm2333_vm12, %v2420_v60, %v5729_v0  ;;  %v2004_v0 = vshll.u32 %v5798_v62, 16  ;;  %v2304_v50 = vsel %vm2300_vm11, %v4709_v46, %v5737_v32 }
 0x1cf   : > { %v5769_v28 = vpop.permute.xlu0 %2019  ;;  %v2368_v51 = vsel %vm2366_vm13, %v2335_v22, %v5705_v38  ;;  %v5821_v38 = vld [vmem:[#allocation2 + $0xa8] sm:$0xff]   ;;  %v2337_v18 = vsel %vm2333_vm12, %v2304_v50, %v5719_v52  ;;  %v2009_v60 = vshll.u32 %v5823_v31, 16  ;;  %v1999_v50 = vrot.slane %v1997_v35, 1 }
 0x1d0   : > { %v5771_v21 = vpop.permute.xlu1 %2133  ;;  %v2006_v32 = vrot.slane %v2004_v0, 1  ;;  %v1992_v22 = vshll.u32 %v5821_v38, 16  ;;  %v1990_v52 = vshrl.u32 %v5821_v38, 16  ;;  %v2423_v35 = vsel %vm2300_vm11, %v5388_v40, %v5746_v55  ;;  %v5903_v55 = vld [vmem:[#allocation2 + $0xcc] sm:$0xff]  }
 0x1d1   : > { %2203 = vrot.lane.b32.xlu0 %v5774_v41, %s4863_s9 }
 0x1d2   : > { %2033 = vrot.lane.b32.xlu1 %v5742_v9, %s4863_s9 }
 0x1d3   : > { %v2268_v47 = vpop.permute.xlu0 %2267 }
 0x1d4   : > { %v5782_v58 = vpop.permute.xlu1 %2100  ;;  %v2499_v5 = vsel %vm2366_vm13, %v2466_v63, %v2268_v47  ;;  %v2088_v47 = vrot.slane %v5821_v38, 1  ;;  %v2011_v63 = vrot.slane %v2009_v60, 1 }
 0x1d5   : > { %2287 = vrot.lane.b32.xlu0 %v5785_v61, %s4862_s25 }
 0x1d6   : > { %2153 = vrot.lane.b32.xlu1 %v5752_v11, %s4862_s25 }
 0x1d7   : > { %v2266_v25 = vpop.permute.xlu0 %2265 }
 0x1d8   : > { %v5800_v19 = vpop.permute.xlu1 %2098  ;;  %v2496_v27 = vsel %vm2366_vm13, %v2464_v24, %v2266_v25  ;;  %v2371_v24 = vsel %vm2366_vm13, %v2337_v18, %v5771_v21  ;;  %v4710_v21 = vld [vmem:[#allocation2 + $0x24] sm:$0xff]  }
 0x1d9   : > { %2244 = vrot.lane.b32.xlu0 %v5798_v62, %s4864_s16  ;;  %2774 = vmatprep.mubr.bf16.mxu0 %v2496_v27  ;;  %v5849_v27 = vsel %vm2045_vm9, %v2088_v47, %v2089_v2  ;;  %v2308_v0 = vsel %vm2300_vm11, %v4710_v21, %v5769_v28  ;;  %v4702_v21 = vld [vmem:[#allocation2 + $0xc8] ss:$0 sps:$4 sm:$0x11]  }
 0x1da   : > { %2120 = vrot.lane.b32.xlu1 %v5761_v39, %s4864_s16  ;;  %2775 = vmatmul.mubr.bf16.vlgmr.msra.gmra.mxu0 %v2368_v51  ;;  %v2007_v51 = vor.u32 %v2006_v32, %v2002_v4 }
 0x1db   : > { %v5815_v49 = vpop.permute.xlu0 %2222  ;;  %2782 = vmatprep.mubr.bf16.mxu0 %v2499_v5  ;;  %4464 = vmatpush3.bf16.msra.mxu0 %v5471_v48  ;;  %v1994_v5 = vrot.slane %v1992_v22, 1 }
 0x1dc   : > { %v2225_v43 = vpop.permute.xlu1 %2224  ;;  %4465 = vmatprep.subr.bf16.mxu0 %v4701_v16  ;;  %v5864_v2 = vsel %vm1820_vm10, %v2007_v51, %v2011_v63 }
 0x1dd   : > { %2285 = vrot.lane.b32.xlu0 %v5819_v6, %s4862_s25  ;;  %v1995_v18 = vor.u32 %v1994_v5, %v1990_v52  ;;  %v4700_v52 = vld [vmem:[#allocation2 + $0xc0] sm:$0xff]  }
 0x1de   : > { %2118 = vrot.lane.b32.xlu1 %v5774_v41, %s4864_s16 }
 0x1df   : > { %v5832_v48 = vpop.permute.xlu0 %2189  ;;  %4466 = vmatpush3.bf16.msra.mxu0 %v4701_v16  ;;  %v5878_v22 = vsel %vm1820_vm10, %v1995_v18, %v1999_v50  ;;  %v2167_v50 = vshrl.u32 %v4700_v52, 16 }
 0x1e0   : > { %v5836_v20 = vpop.permute.xlu1 %2139 }
 0x1e1   : > { %2242 = vrot.lane.b32.xlu0 %v5821_v38, %s4864_s16 }
 0x1e2   : > { %2039 = vrot.lane.b32.xlu1 %v5785_v61, %s4863_s9  ;;  %2783 = vmatmul.mubr.bf16.gmra.mxu0 %v2371_v24  ;;  %v2091_v24 = vrot.slane %v5798_v62, 1 }
 0x1e3   : > { %v2188_v25 = vpop.permute.xlu0 %2187 }
 0x1e4   : > { %v2426_v36 = vsel %vm2300_vm11, %v5511_v17, %v2188_v25  ;;  %v2018_v16 = vpop.permute.xlu1 %2017  ;;  %v2341_v17 = vsel %vm2333_vm12, %v2308_v0, %v5782_v58  ;;  %v2092_v25 = vrot.slane %v5823_v31, 1  ;;  %v2169_v0 = vshll.u32 %v4700_v52, 16 }
 0x1e5   : > { %2207 = vrot.lane.b32.xlu0 %v5849_v27, %s4863_s9  ;;  %v2470_v37 = vsel %vm2333_vm12, %v2426_v36, %v2225_v43  ;;  %v4711_v43 = vld [vmem:[#allocation2 + $0x18] sm:$0xff]  }
 0x1e6   : > { %2037 = vrot.lane.b32.xlu1 %v5819_v6, %s4863_s9  ;;  %v2306_v58 = vsel %vm2300_vm11, %v4711_v43, %v2018_v16  ;;  %v2468_v16 = vsel %vm2333_vm12, %v2423_v35, %v5815_v49  ;;  %v5894_v31 = vsel %vm2045_vm9, %v2091_v24, %v2092_v25  ;;  %v2178_v49 = vrot.slane %v4700_v52, 1 }
 0x1e7   : > { %v2272_v46 = vpop.permute.xlu0 %2271  ;;  %v2339_v36 = vsel %vm2333_vm12, %v2306_v58, %v5800_v19  ;;  %v2254_v24 = vshrl.u32 %v5903_v55, 16 }
 0x1e8   : > { %v2138_v47 = vpop.permute.xlu1 %2137  ;;  %v2505_v4 = vsel %vm2366_vm13, %v2470_v37, %v2272_v46  ;;  %v2374_v40 = vsel %vm2366_vm13, %v2339_v36, %v5750_v3  ;;  %v2179_v37 = vrot.slane %v4702_v21, 1  ;;  %v5910_v3 = vld [vmem:[#allocation2 + $0xd4] ss:$0 sps:$4 sm:$0x11]  }
 0x1e9   : > { %2291 = vrot.lane.b32.xlu0 %v5864_v2, %s4862_s25  ;;  %2798 = vmatprep.mubr.bf16.mxu1 %v2505_v4  ;;  %v2377_v28 = vsel %vm2366_vm13, %v2341_v17, %v2138_v47  ;;  %v2171_v17 = vrot.slane %v2169_v0, 1  ;;  %v2174_v47 = vshll.u32 %v4702_v21, 16  ;;  %v2256_v4 = vshll.u32 %v5903_v55, 16 }
 0x1ea   : > { %2157 = vrot.lane.b32.xlu1 %v5821_v38, %s4862_s25  ;;  %2799 = vmatmul.mubr.bf16.vlgmr.msra.gmra.mxu1 %v2377_v28  ;;  %v2261_v35 = vshll.u32 %v5910_v3, 16 }
 0x1eb   : > { %v5873_v32 = vpop.permute.xlu0 %2228  ;;  %v2172_v43 = vor.u32 %v2171_v17, %v2167_v50  ;;  %v2176_v58 = vrot.slane %v2174_v47, 1  ;;  %v2258_v25 = vrot.slane %v2256_v4, 1  ;;  %v2429_v17 = vsel %vm2300_vm11, %v5456_v13, %v5832_v48 }
 0x1ec   : > { %v5875_v60 = vpop.permute.xlu1 %2104 }
 0x1ed   : > { %2289 = vrot.lane.b32.xlu0 %v5878_v22, %s4862_s25 }
 0x1ee   : > { %2122 = vrot.lane.b32.xlu1 %v5849_v27, %s4864_s16 }
 0x1ef   : > { %v2270_v51 = vpop.permute.xlu0 %2269 }
 0x1f0   : > { %v2103_v63 = vpop.permute.xlu1 %2102  ;;  %v2502_v5 = vsel %vm2366_vm13, %v2468_v16, %v2270_v51  ;;  %v5931_v51 = vsel %vm1820_vm10, %v2172_v43, %v2176_v58 }
 0x1f1   : > { %2209 = vrot.lane.b32.xlu0 %v5894_v31, %s4863_s9  ;;  %2790 = vmatprep.mubr.bf16.mxu0 %v2502_v5  ;;  %v2263_v5 = vrot.slane %v2261_v35, 1 }
 0x1f2   : > { %2159 = vrot.lane.b32.xlu1 %v5798_v62, %s4862_s25  ;;  %2791 = vmatmul.mubr.bf16.gmra.mxu0 %v2374_v40  ;;  %v4712_v40 = vld [vmem:[#allocation2 + $0x30] sm:$0xff]  }
 0x1f3   : > { %v2227_v19 = vpop.permute.xlu0 %2226  ;;  %4467 = vmatprep.mubr.msk.bf16.mxu0 %vm2300_vm11, %v5357_v29  ;;  %v5918_v29 = vsel %vm2045_vm9, %v2178_v49, %v2179_v37 }
 0x1f4   : > { %v2024_v46 = vpop.permute.xlu1 %2023  ;;  %v2472_v47 = vsel %vm2333_vm12, %v2429_v17, %v2227_v19 }
 0x1f5   : > { %2246 = vrot.lane.b32.xlu0 %v4700_v52, %s4864_s16 }
 0x1f6   : > { %2041 = vrot.lane.b32.xlu1 %v5878_v22, %s4863_s9 }
 0x1f7   : > { %v5913_v18 = vpop.permute.xlu0 %2193 }
 0x1f8   : > { %v5915_v28 = vpop.permute.xlu1 %2143 }
 0x1f9   : > { %2211 = vrot.lane.b32.xlu0 %v5918_v29, %s4863_s9 }
 0x1fa   : > { %2043 = vrot.lane.b32.xlu1 %v5864_v2, %s4863_s9  ;;  %4468 = vmatmul.mubr.msk.bf16.vlgmr.msra.gmra.mxu0 %vm2300_vm11, %v5333_v45  ;;  %v2259_v45 = vor.u32 %v2258_v25, %v2254_v24  ;;  %s4771_s9 = scalar_lea.vmem %s6209_s17, 2048 }
 0x1fb   : > { %v2192_v36 = vpop.permute.xlu0 %2191  ;;  %4471 = vmatprep.mubr.msk.bf16.mxu0 %vm2300_vm11, %v5453_v12  ;;  %p4772_p8 = scmp.ne.s32.totalorder %s6209_s17, %s4771_s9  ;;  %p4779_p4 = scmp.lt.s32.totalorder %s4777_s22, %s4771_s9 }
 0x1fc   : > { %v2022_v16 = vpop.permute.xlu1 %2021  ;;  %v2264_v12 = vsel %vm1820_vm10, %v2259_v45, %v2263_v5 }
 0x1fd   : > { %2293 = vrot.lane.b32.xlu0 %v5931_v51, %s4862_s25  ;;  %v2310_v49 = vsel %vm2300_vm11, %v4712_v40, %v2022_v16  ;;  %v4714_v40 = vld [vmem:[#allocation2 + $0x54] sm:$0xff]   ;;  %p4773_p2 = pnand %p4772_p8, %p4968_p9  ;;  %p4780_p7 = por %p4779_p4, %p4778_p6 }
 0x1fe   : > { %2124 = vrot.lane.b32.xlu1 %v5894_v31, %s4864_s16 }
 0x1ff   : > { %v2276_v21 = vpop.permute.xlu0 %2275  ;;  %p4774_p5 = pneg %p4773_p2 }
 0x200   : > { %v2142_v0 = vpop.permute.xlu1 %2141 }
 0x201   : > { %2248 = vrot.lane.b32.xlu0 %v5903_v55, %s4864_s16  ;;  %p4781_p1 = pnand %p4780_p7, %p4774_p5 }
 0x202   : > { %2161 = vrot.lane.b32.xlu1 %v4700_v52, %s4862_s25  ;;  %4472 = vmatmul.mubr.msk.bf16.gmra.mxu0 %vm2300_vm11, %v5443_v57  ;;  %v2432_v52 = vsel %vm2300_vm11, %v5596_v33, %v2192_v36  ;;  %v2343_v57 = vsel %vm2333_vm12, %v2310_v49, %v2103_v63  ;;  %v4713_v63 = vld [vmem:[#allocation2 + $0x3c] sm:$0xff]  }
 0x203   : > { %v2233_v37 = vpop.permute.xlu0 %2232  ;;  %4475 = vmatprep.mubr.msk.bf16.mxu0 %vm2300_vm11, %v5546_v10  ;;  %v2380_v10 = vsel %vm2366_vm13, %v2343_v57, %v5836_v20  ;;  %v2474_v24 = vsel %vm2333_vm12, %v2432_v52, %v5873_v32  ;;  %v2312_v19 = vsel %vm2300_vm11, %v4713_v63, %v2024_v46 }
 0x204   : > { %v2109_v50 = vpop.permute.xlu1 %2108  ;;  %v2511_v13 = vsel %vm2366_vm13, %v2474_v24, %v2276_v21  ;;  %v2345_v32 = vsel %vm2333_vm12, %v2312_v19, %v5875_v60 }
 0x205   : > { %2295 = vrot.lane.b32.xlu0 %v2264_v12, %s4862_s25  ;;  %v2383_v35 = vsel %vm2366_vm13, %v2345_v32, %v2142_v0  ;;  %s3633_s25 = scalar_lea.sflag [#allocation5], %s5031_s11 }
 0x207   : > { %v2274_v4 = vpop.permute.xlu0 %2273 }
 0x208   : > { %v2107_v43 = vpop.permute.xlu1 %2106  ;;  %v2508_v58 = vsel %vm2366_vm13, %v2472_v47, %v2274_v4  ;;  %v2298_v47 = vrot.slane %v5910_v3, 1 }
 0x209   : > { %2806 = vmatprep.mubr.bf16.mxu1 %v2508_v58 }
 0x20a   : > { %2807 = vmatmul.mubr.bf16.gmra.mxu1 %v2380_v10  ;;  %4476 = vmatmul.mubr.msk.bf16.gmra.mxu0 %vm2300_vm11, %v5522_v34 }
 0x20b   : > { %v2231_v33 = vpop.permute.xlu0 %2230  ;;  %2814 = vmatprep.mubr.bf16.mxu1 %v2511_v13  ;;  %4479 = vmatprep.mubr.msk.bf16.mxu0 %vm2300_vm11, %v5645_v15 }
 0x20c   : > { %v2028_v48 = vpop.permute.xlu1 %2027 }
 0x20d   : > { %v2316_v49 = vsel %vm2300_vm11, %v4714_v40, %v2028_v48 }
 0x20f   : > { %v2198_v25 = vpop.permute.xlu0 %2197 }
 0x210   : > { %v5965_v20 = vpop.permute.xlu1 %2147 }
 0x212   : > { %2815 = vmatmul.mubr.bf16.gmra.mxu1 %v2383_v35  ;;  %4480 = vmatmul.mubr.msk.bf16.gmra.mxu0 %vm2300_vm11, %v5627_v7  ;;  %v2435_v7 = vsel %vm2300_vm11, %v5575_v53, %v5913_v18 }
 0x213   : > { %v2196_v34 = vpop.permute.xlu0 %2195  ;;  %4483 = vmatprep.mubr.msk.bf16.mxu0 %vm2300_vm11, %v5714_v44  ;;  %v2476_v21 = vsel %vm2333_vm12, %v2435_v7, %v2231_v33 }
 0x214   : > { %v2026_v15 = vpop.permute.xlu1 %2025  ;;  %v2438_v44 = vsel %vm2300_vm11, %v5688_v14, %v2196_v34 }
 0x215   : > { %v2314_v46 = vsel %vm2300_vm11, %v5519_v30, %v2026_v15  ;;  %v2478_v12 = vsel %vm2333_vm12, %v2438_v44, %v2233_v37 }
 0x216   : > { %v2347_v5 = vsel %vm2333_vm12, %v2314_v46, %v2107_v43 }
 0x217   : > { %v2280_v36 = vpop.permute.xlu0 %2279 }
 0x218   : > { %v2146_v16 = vpop.permute.xlu1 %2145  ;;  %v2517_v53 = vsel %vm2366_vm13, %v2478_v12, %v2280_v36 }
 0x21a   : > { %4484 = vmatmul.mubr.msk.bf16.gmra.mxu0 %vm2300_vm11, %v5703_v8 }
 0x21b   : > { %v2237_v60 = vpop.permute.xlu0 %2236  ;;  %4487 = vmatprep.mubr.msk.bf16.mxu0 %vm2300_vm11, %v5774_v41  ;;  %v2386_v41 = vsel %vm2366_vm13, %v2347_v5, %v5915_v28  ;;  %v2349_v28 = vsel %vm2333_vm12, %v2316_v49, %v2109_v50 }
 0x21c   : > { %v2113_v45 = vpop.permute.xlu1 %2112  ;;  %v2389_v37 = vsel %vm2366_vm13, %v2349_v28, %v2146_v16 }
 0x21f   : > { %v2278_v8 = vpop.permute.xlu0 %2277 }
 0x220   : > { %v2111_v0 = vpop.permute.xlu1 %2110  ;;  %v2514_v30 = vsel %vm2366_vm13, %v2476_v21, %v2278_v8 }
 0x221   : > { %2822 = vmatprep.mubr.bf16.mxu1 %v2514_v30 }
 0x222   : > { %2823 = vmatmul.mubr.bf16.gmra.mxu1 %v2386_v41  ;;  %4488 = vmatmul.mubr.msk.bf16.gmra.mxu0 %vm2300_vm11, %v5761_v39  ;;  %v4705_v39 = vld [vmem:[%s6267_s7 + $0x8] sm:$0xff]  }
 0x223   : > { %v2235_v14 = vpop.permute.xlu0 %2234  ;;  %2830 = vmatprep.mubr.bf16.mxu1 %v2517_v53  ;;  %4491 = vmatprep.mubr.msk.bf16.mxu0 %vm2300_vm11, %v5849_v27  ;;  %v2297_v27 = vrot.slane %v5903_v55, 1 }
 0x224   : > { %v2032_v18 = vpop.permute.xlu1 %2031  ;;  %4499 = vmatprep.subr.bf16.mxu1 %v4705_v39 }
 0x225   : > { %4500 = vmatpush3.bf16.msra.mxu1 %v4705_v39  ;;  %v2299_v43 = vsel %vm2045_vm9, %v2297_v27, %v2298_v47  ;;  %v2320_v32 = vsel %vm2300_vm11, %v5579_v23, %v2032_v18 }
 0x226   : > { %v2353_v15 = vsel %vm2333_vm12, %v2320_v32, %v2113_v45 }
 0x227   : > { %v2202_v17 = vpop.permute.xlu0 %2201 }
 0x228   : > { %v2152_v52 = vpop.permute.xlu1 %2151  ;;  %v2447_v45 = vsel %vm2300_vm11, %v5724_v54, %v2202_v17 }
 0x22a   : > { %2831 = vmatmul.mubr.bf16.gmra.mxu1 %v2389_v37  ;;  %4492 = vmatmul.mubr.msk.bf16.gmra.mxu0 %vm2300_vm11, %v5894_v31 }
 0x22b   : > { %v2200_v57 = vpop.permute.xlu0 %2199  ;;  %4495 = vmatprep.mubr.msk.bf16.mxu0 %vm2300_vm11, %v5918_v29  ;;  %v2441_v29 = vsel %vm2300_vm11, %v5661_v42, %v2198_v25 }
 0x22c   : > { %v2030_v4 = vpop.permute.xlu1 %2029  ;;  %v2444_v55 = vsel %vm2300_vm11, %v5742_v9, %v2200_v57  ;;  %v2480_v13 = vsel %vm2333_vm12, %v2441_v29, %v2235_v14 }
 0x22d   : > { %v2318_v31 = vsel %vm2300_vm11, %v5613_v59, %v2030_v4  ;;  %v2482_v19 = vsel %vm2333_vm12, %v2444_v55, %v2237_v60  ;;  %v4706_v60 = vld [vmem:[%s6267_s7] sm:$0xff]  }
 0x22e   : > { %v2351_v3 = vsel %vm2333_vm12, %v2318_v31, %v2111_v0  ;;  %4501 = vmatprep.subr.bf16.mxu1 %v4706_v60 }
 0x22f   : > { %v2284_v50 = vpop.permute.xlu0 %2283  ;;  %v2392_v59 = vsel %vm2366_vm13, %v2351_v3, %v5965_v20  ;;  %4502 = vmatpush3.bf16.msra.mxu1 %v4706_v60 }
 0x230   : > { %v2150_v58 = vpop.permute.xlu1 %2149  ;;  %v2523_v42 = vsel %vm2366_vm13, %v2482_v19, %v2284_v50 }
 0x231   : > { %v2395_v36 = vsel %vm2366_vm13, %v2353_v15, %v2150_v58 }
 0x232   : > { %4496 = vmatmul.mubr.msk.bf16.gmra.mxu0 %vm2300_vm11, %v2299_v43 }
 0x233   : > { %v2241_v10 = vpop.permute.xlu0 %2240 }
 0x234   : > { %v2117_v24 = vpop.permute.xlu1 %2116 }
 0x237   : > { %v2282_v33 = vpop.permute.xlu0 %2281 }
 0x238   : > { %v2115_v48 = vpop.permute.xlu1 %2114  ;;  %v2520_v63 = vsel %vm2366_vm13, %v2480_v13, %v2282_v33 }
 0x239   : > { %2838 = vmatprep.mubr.bf16.mxu1 %v2520_v63 }
 0x23a   : > { %2839 = vmatmul.mubr.bf16.gmra.mxu1 %v2392_v59 }
 0x23b   : > { %v2239_v25 = vpop.permute.xlu0 %2238  ;;  %2846 = vmatprep.mubr.bf16.mxu1 %v2523_v42 }
 0x23c   : > { %v2036_v9 = vpop.permute.xlu1 %2035  ;;  %v2484_v0 = vsel %vm2333_vm12, %v2447_v45, %v2239_v25 }
 0x23f   : > { %v2206_v35 = vpop.permute.xlu0 %2205 }
 0x240   : > { %v2156_v34 = vpop.permute.xlu1 %2155  ;;  %v2453_v57 = vsel %vm2300_vm11, %v5785_v61, %v2206_v35 }
 0x242   : > { %2847 = vmatmul.mubr.bf16.gmra.mxu1 %v2395_v36 }
 0x243   : > { %v2204_v16 = vpop.permute.xlu0 %2203 }
 0x244   : > { %v2034_v20 = vpop.permute.xlu1 %2033  ;;  %v2450_v21 = vsel %vm2300_vm11, %v5819_v6, %v2204_v16  ;;  %v2324_v6 = vsel %vm2300_vm11, %v5672_v56, %v2036_v9 }
 0x245   : > { %v2322_v23 = vsel %vm2300_vm11, %v5694_v26, %v2034_v20  ;;  %v2486_v26 = vsel %vm2333_vm12, %v2450_v21, %v2241_v10  ;;  %v2357_v17 = vsel %vm2333_vm12, %v2324_v6, %v2117_v24 }
 0x246   : > { %v2355_v8 = vsel %vm2333_vm12, %v2322_v23, %v2115_v48 }
 0x247   : > { %v2288_v46 = vpop.permute.xlu0 %2287  ;;  %v2398_v53 = vsel %vm2366_vm13, %v2355_v8, %v2152_v52 }
 0x248   : > { %v2154_v7 = vpop.permute.xlu1 %2153  ;;  %v2529_v14 = vsel %vm2366_vm13, %v2486_v26, %v2288_v46 }
 0x249   : > { %v2401_v28 = vsel %vm2366_vm13, %v2357_v17, %v2154_v7 }
 0x24b   : > { %v2245_v44 = vpop.permute.xlu0 %2244 }
 0x24c   : > { %v2121_v5 = vpop.permute.xlu1 %2120 }
 0x24f   : > { %v2286_v30 = vpop.permute.xlu0 %2285 }
 0x250   : > { %v2119_v41 = vpop.permute.xlu1 %2118  ;;  %v2526_v12 = vsel %vm2366_vm13, %v2484_v0, %v2286_v30 }
 0x251   : > { %2854 = vmatprep.mubr.bf16.mxu1 %v2526_v12 }
 0x252   : > { %2855 = vmatmul.mubr.bf16.gmra.mxu1 %v2398_v53 }
 0x253   : > { %v2243_v54 = vpop.permute.xlu0 %2242  ;;  %2862 = vmatprep.mubr.bf16.mxu1 %v2529_v14 }
 0x254   : > { %v2040_v18 = vpop.permute.xlu1 %2039  ;;  %v2488_v47 = vsel %vm2333_vm12, %v2453_v57, %v2243_v54  ;;  %v6081_v54 = vld [vmem:[%s6266_s6] ss:$0 sm:$0xff] }
 0x257   : > { %v2208_v40 = vpop.permute.xlu0 %2207 }
 0x258   : > { %v2038_v49 = vpop.permute.xlu1 %2037  ;;  %v2456_v27 = vsel %vm2300_vm11, %v5878_v22, %v2208_v40  ;;  %v2328_v22 = vsel %vm2300_vm11, %v5733_v1, %v2040_v18 }
 0x259   : > { %v2326_v52 = vsel %vm2300_vm11, %v5752_v11, %v2038_v49  ;;  %v2490_v11 = vsel %vm2333_vm12, %v2456_v27, %v2245_v44  ;;  %v2361_v55 = vsel %vm2333_vm12, %v2328_v22, %v2121_v5 }
 0x25a   : > { %2863 = vmatmul.mubr.bf16.gmra.mxu1 %v2401_v28  ;;  %v2359_v56 = vsel %vm2333_vm12, %v2326_v52, %v2119_v41 }
 0x25b   : > { %v2292_v37 = vpop.permute.xlu0 %2291  ;;  %v2404_v58 = vsel %vm2366_vm13, %v2359_v56, %v2156_v34 }
 0x25c   : > { %v2158_v39 = vpop.permute.xlu1 %2157  ;;  %v2535_v31 = vsel %vm2366_vm13, %v2490_v11, %v2292_v37 }
 0x25d   : > { %v2407_v3 = vsel %vm2366_vm13, %v2361_v55, %v2158_v39 }
 0x25f   : > { %v2290_v4 = vpop.permute.xlu0 %2289 }
 0x260   : > { %v2123_v50 = vpop.permute.xlu1 %2122  ;;  %v2532_v43 = vsel %vm2366_vm13, %v2488_v47, %v2290_v4 }
 0x261   : > { %2870 = vmatprep.mubr.bf16.mxu1 %v2532_v43 }
 0x262   : > { %2871 = vmatmul.mubr.bf16.gmra.mxu1 %v2404_v58 }
 0x263   : > { %v2210_v61 = vpop.permute.xlu0 %2209  ;;  %2878 = vmatprep.mubr.bf16.mxu1 %v2535_v31 }
 0x264   : > { %v2160_v10 = vpop.permute.xlu1 %2159  ;;  %v2459_v63 = vsel %vm2300_vm11, %v5864_v2, %v2210_v61 }
 0x267   : > { %v2247_v24 = vpop.permute.xlu0 %2246 }
 0x268   : > { %v2042_v29 = vpop.permute.xlu1 %2041  ;;  %v2492_v19 = vsel %vm2333_vm12, %v2459_v63, %v2247_v24 }
 0x269   : > { %v2330_v13 = vsel %vm2300_vm11, %v5821_v38, %v2042_v29 }
 0x26a   : > { %2879 = vmatmul.mubr.bf16.gmra.mxu1 %v2407_v3  ;;  %v2363_v59 = vsel %vm2333_vm12, %v2330_v13, %v2123_v50 }
 0x26b   : > { %v2212_v33 = vpop.permute.xlu0 %2211  ;;  %v2410_v9 = vsel %vm2366_vm13, %v2363_v59, %v2160_v10 }
 0x26c   : > { %v2044_v48 = vpop.permute.xlu1 %2043  ;;  %v2462_v38 = vsel %vm2300_vm11, %v5931_v51, %v2212_v33 }
 0x26d   : > { %v2332_v2 = vsel %vm2300_vm11, %v5798_v62, %v2044_v48 }
 0x26f   : > { %v2294_v1 = vpop.permute.xlu0 %2293 }
 0x270   : > { %v2125_v42 = vpop.permute.xlu1 %2124  ;;  %v2538_v25 = vsel %vm2366_vm13, %v2492_v19, %v2294_v1 }
 0x271   : > { %2886 = vmatprep.mubr.bf16.mxu1 %v2538_v25  ;;  %v2365_v36 = vsel %vm2333_vm12, %v2332_v2, %v2125_v42 }
 0x272   : > { %2887 = vmatmul.mubr.bf16.gmra.mxu1 %v2410_v9 }
 0x273   : > { %v2249_v32 = vpop.permute.xlu0 %2248 }
 0x274   : > { %v2162_v35 = vpop.permute.xlu1 %2161  ;;  %v2494_v34 = vsel %vm2333_vm12, %v2462_v38, %v2249_v32 }
 0x275   : > { %v2413_v20 = vsel %vm2366_vm13, %v2365_v36, %v2162_v35 }
 0x277   : > { %v2296_v15 = vpop.permute.xlu0 %2295 }
 0x278   : > { %v2541_v16 = vsel %vm2366_vm13, %v2494_v34, %v2296_v15 }
 0x279   : > { %2894 = vmatprep.mubr.bf16.mxu1 %v2541_v16 }
 0x27a   : > { %2895 = vmatmul.mubr.bf16.gmra.mxu1 %v2413_v20 }
 0x29a   : > { %v4279_v46 = vpop.f32.mrf.mxu0 }
 0x29c   : > { %v4280_v60 = vpop.f32.mrf.mxu0 }
 0x29d   : > { %v4281_v12 = vadd.f32 %v4280_v60, %v4279_v46 }
 0x29e   : > { %v4282_v7 = vpop.f32.mrf.mxu0 }
 0x29f   : > { %v2777_v49 = vadd.f32 %v4281_v12, %v6081_v54 }
 0x2a0   : > { %v4283_v23 = vpop.f32.mrf.mxu0 }
 0x2a1   : > { %v4284_v6 = vadd.f32 %v4283_v23, %v4282_v7 }
 0x2a2   : > { %v4285_v51 = vpop.f32.mrf.mxu0 }
 0x2a3   : > { %v2780_v27 = vadd.f32 %v4284_v6, %v6081_v54 }
 0x2a4   : > { %v4286_v44 = vpop.f32.mrf.mxu0 }
 0x2a5   : > { %v4287_v26 = vadd.f32 %v4286_v44, %v4285_v51 }
 0x2a6   : > { %v4288_v5 = vpop.f32.mrf.mxu0 }
 0x2a7   : > { %v2785_v52 = vadd.f32 %v4287_v26, %v6081_v54 }
 0x2a8   : > { %v4289_v45 = vpop.f32.mrf.mxu0 }
 0x2a9   : > { %v4290_v53 = vadd.f32 %v4289_v45, %v4288_v5 }
 0x2aa   : > { %v4297_v62 = vpop.f32.mrf.mxu1 }
 0x2ab   : > { %v2788_v17 = vadd.f32 %v4290_v53, %v6081_v54 }
 0x2ac   : > { %v4298_v0 = vpop.f32.mrf.mxu1 }
 0x2ad   : > { %v4299_v58 = vadd.f32 %v4298_v0, %v4297_v62 }
 0x2ae   : > { %v4300_v14 = vpop.f32.mrf.mxu1 }
 0x2af   : > { %v2801_v48 = vadd.f32 %v4299_v58, %v6081_v54 }
 0x2b0   : > { %v4301_v28 = vpop.f32.mrf.mxu1 }
 0x2b1   : > { %v4302_v4 = vadd.f32 %v4301_v28, %v4300_v14 }
 0x2b2   : > { %v4291_v21 = vpop.f32.mrf.mxu0 }
 0x2b3   : > { %v2804_v13 = vadd.f32 %v4302_v4, %v6081_v54 }
 0x2b4   : > { %v4292_v8 = vpop.f32.mrf.mxu0 }
 0x2b5   : > { %v4293_v50 = vadd.f32 %v4292_v8, %v4291_v21 }
 0x2b6   : > { %v4294_v30 = vpop.f32.mrf.mxu0 }
 0x2b7   : > { %v2793_v3 = vadd.f32 %v4293_v50, %v6081_v54 }
 0x2b8   : > { %v4295_v41 = vpop.f32.mrf.mxu0 }
 0x2b9   : > { %v4296_v61 = vadd.f32 %v4295_v41, %v4294_v30 }
 0x2ba   : > { %v4469_v18 = vpop.f32.mrf.mxu0 }
 0x2bb   : > { %v2946_v56 = vadd.f32 %v4469_v18, %v2785_v52  ;;  %v2796_v1 = vadd.f32 %v4296_v61, %v6081_v54 }
 0x2bc   : > { %v2937_v40 = vpop.f32.mrf.mxu0 }
 0x2bd   : > { %v2938_v39 = vadd.f32 %v2937_v40, %v2777_v49  ;;  %v3066_v24 = vmax.f32 %v2946_v56, 0.0 }
 0x2be   : > { %v4470_v37 = vpop.f32.mrf.mxu0 }
 0x2bf   : > { %v2949_v57 = vadd.f32 %v4470_v37, %v2788_v17  ;;  %v3064_v10 = vmax.f32 %v2938_v39, 0.0 }
 0x2c0   : > { %v2940_v47 = vpop.f32.mrf.mxu0 }
 0x2c1   : > { %v2941_v43 = vadd.f32 %v2940_v47, %v2780_v27  ;;  %v3067_v11 = vmax.f32 %v2949_v57, 0.0 }
 0x2c2   : > { %v4473_v31 = vpop.f32.mrf.mxu0 }
 0x2c3   : > { %v3065_v22 = vmax.f32 %v2941_v43, 0.0  ;;  %v3097_v33 = vpack.c.bf16 %v3067_v11, %v3066_v24  ;;  %v2962_v42 = vadd.f32 %v4473_v31, %v2801_v48 }
 0x2c4   : > { %v2953_v29 = vpop.f32.mrf.mxu0 }
 0x2c5   : > { %v3096_v55 = vpack.c.bf16 %v3065_v22, %v3064_v10  ;;  %v2954_v59 = vadd.f32 %v2953_v29, %v2793_v3  ;;  %v3070_v15 = vmax.f32 %v2962_v42, 0.0 }
 0x2c6   : > { %v4474_v63 = vpop.f32.mrf.mxu0 }
 0x2c7   : > { %v2965_v19 = vadd.f32 %v4474_v63, %v2804_v13  ;;  %4503 = vmatprep.mubr.msk.bf16.mxu1 %vm2300_vm11, %v3096_v55  ;;  %v3068_v2 = vmax.f32 %v2954_v59, 0.0 }
 0x2c8   : > { %v2956_v25 = vpop.f32.mrf.mxu0  ;;  %4504 = vmatmul.mubr.msk.bf16.vlgmr.msra.gmra.mxu1 %vm2300_vm11, %v3097_v33 }
 0x2c9   : > { %v2957_v9 = vadd.f32 %v2956_v25, %v2796_v1  ;;  %v3071_v32 = vmax.f32 %v2965_v19, 0.0 }
 0x2ca   : > { %v4303_v38 = vpop.f32.mrf.mxu1  ;;  %v4477_v35 = vpop.f32.mrf.mxu0 }
 0x2cb   : > { %v3069_v34 = vmax.f32 %v2957_v9, 0.0  ;;  %v3099_v60 = vpack.c.bf16 %v3071_v32, %v3070_v15 }
 0x2cc   : > { %v4304_v36 = vpop.f32.mrf.mxu1  ;;  %v2969_v16 = vpop.f32.mrf.mxu0 }
 0x2cd   : > { %v3098_v20 = vpack.c.bf16 %v3069_v34, %v3068_v2  ;;  %v4305_v46 = vadd.f32 %v4304_v36, %v4303_v38 }
 0x2ce   : > { %v4306_v7 = vpop.f32.mrf.mxu1  ;;  %v4478_v51 = vpop.f32.mrf.mxu0 }
 0x2cf   : > { %v2809_v23 = vadd.f32 %v4305_v46, %v6081_v54  ;;  %4507 = vmatprep.mubr.msk.bf16.mxu1 %vm2300_vm11, %v3098_v20 }
 0x2d0   : > { %v4307_v44 = vpop.f32.mrf.mxu1  ;;  %4508 = vmatmul.mubr.msk.bf16.gmra.mxu1 %vm2300_vm11, %v3099_v60  ;;  %v2972_v8 = vpop.f32.mrf.mxu0 }
 0x2d1   : > { %v4308_v5 = vadd.f32 %v4307_v44, %v4306_v7  ;;  %v2970_v62 = vadd.f32 %v2969_v16, %v2809_v23 }
 0x2d2   : > { %v4309_v45 = vpop.f32.mrf.mxu1  ;;  %v4481_v39 = vpop.f32.mrf.mxu0 }
 0x2d3   : > { %v2812_v21 = vadd.f32 %v4308_v5, %v6081_v54  ;;  %v3072_v53 = vmax.f32 %v2970_v62, 0.0 }
 0x2d4   : > { %v4310_v0 = vpop.f32.mrf.mxu1  ;;  %v2985_v56 = vpop.f32.mrf.mxu0 }
 0x2d5   : > { %v2973_v30 = vadd.f32 %v2972_v8, %v2812_v21  ;;  %v4311_v41 = vadd.f32 %v4310_v0, %v4309_v45 }
 0x2d6   : > { %v4312_v12 = vpop.f32.mrf.mxu1  ;;  %v4482_v58 = vpop.f32.mrf.mxu0 }
 0x2d7   : > { %v3073_v26 = vmax.f32 %v2973_v30, 0.0  ;;  %v2817_v14 = vadd.f32 %v4311_v41, %v6081_v54 }
 0x2d8   : > { %v4313_v18 = vpop.f32.mrf.mxu1  ;;  %v2988_v24 = vpop.f32.mrf.mxu0 }
 0x2d9   : > { %v3100_v6 = vpack.c.bf16 %v3073_v26, %v3072_v53  ;;  %v4314_v40 = vadd.f32 %v4313_v18, %v4312_v12  ;;  %v2978_v49 = vadd.f32 %v4477_v35, %v2817_v14 }
 0x2da   : > { %v4485_v35 = vpop.f32.mrf.mxu0 }
 0x2db   : > { %v2820_v17 = vadd.f32 %v4314_v40, %v6081_v54  ;;  %4511 = vmatprep.mubr.msk.bf16.mxu1 %vm2300_vm11, %v3100_v6  ;;  %v3074_v52 = vmax.f32 %v2978_v49, 0.0 }
 0x2dc   : > { %v3001_v15 = vpop.f32.mrf.mxu0 }
 0x2dd   : > { %v2981_v28 = vadd.f32 %v4478_v51, %v2820_v17 }
 0x2de   : > { %v4486_v60 = vpop.f32.mrf.mxu0 }
 0x2df   : > { %v3075_v37 = vmax.f32 %v2981_v28, 0.0 }
 0x2e0   : > { %v3004_v45 = vpop.f32.mrf.mxu0 }
 0x2e1   : > { %v3101_v57 = vpack.c.bf16 %v3075_v37, %v3074_v52 }
 0x2e2   : > { %v4315_v27 = vpop.f32.mrf.mxu1  ;;  %v4489_v28 = vpop.f32.mrf.mxu0 }
 0x2e3   : > { %4512 = vmatmul.mubr.msk.bf16.gmra.mxu1 %vm2300_vm11, %v3101_v57 }
 0x2e4   : > { %v4316_v47 = vpop.f32.mrf.mxu1 }
 0x2e5   : > { %v4317_v4 = vadd.f32 %v4316_v47, %v4315_v27 }
 0x2e6   : > { %v4318_v50 = vpop.f32.mrf.mxu1 }
 0x2e7   : > { %v2825_v43 = vadd.f32 %v4317_v4, %v6081_v54 }
 0x2e8   : > { %v4319_v11 = vpop.f32.mrf.mxu1 }
 0x2e9   : > { %v4320_v31 = vadd.f32 %v4319_v11, %v4318_v50  ;;  %v2986_v10 = vadd.f32 %v2985_v56, %v2825_v43 }
 0x2ea   : > { %v4321_v61 = vpop.f32.mrf.mxu1 }
 0x2eb   : > { %v2828_v22 = vadd.f32 %v4320_v31, %v6081_v54  ;;  %v3076_v33 = vmax.f32 %v2986_v10, 0.0 }
 0x2ec   : > { %v4322_v29 = vpop.f32.mrf.mxu1 }
 0x2ed   : > { %v2989_v55 = vadd.f32 %v2988_v24, %v2828_v22  ;;  %v4323_v3 = vadd.f32 %v4322_v29, %v4321_v61 }
 0x2ee   : > { %v4324_v13 = vpop.f32.mrf.mxu1 }
 0x2ef   : > { %v3077_v48 = vmax.f32 %v2989_v55, 0.0  ;;  %v2833_v63 = vadd.f32 %v4323_v3, %v6081_v54 }
 0x2f0   : > { %v4325_v59 = vpop.f32.mrf.mxu1 }
 0x2f1   : > { %v3102_v19 = vpack.c.bf16 %v3077_v48, %v3076_v33  ;;  %v4326_v1 = vadd.f32 %v4325_v59, %v4324_v13  ;;  %v2994_v42 = vadd.f32 %v4481_v39, %v2833_v63  ;;  %v3017_v39 = vpop.f32.mrf.mxu0 }
 0x2f3   : > { %v2836_v25 = vadd.f32 %v4326_v1, %v6081_v54  ;;  %4515 = vmatprep.mubr.msk.bf16.mxu1 %vm2300_vm11, %v3102_v19  ;;  %v3078_v32 = vmax.f32 %v2994_v42, 0.0  ;;  %v4490_v4 = vpop.f32.mrf.mxu0 }
 0x2f5   : > { %v2997_v9 = vadd.f32 %v4482_v58, %v2836_v25  ;;  %v3020_v61 = vpop.f32.mrf.mxu0 }
 0x2f7   : > { %v3079_v38 = vmax.f32 %v2997_v9, 0.0  ;;  %v4493_v33 = vpop.f32.mrf.mxu0 }
 0x2f9   : > { %v3103_v2 = vpack.c.bf16 %v3079_v38, %v3078_v32  ;;  %v3033_v25 = vpop.f32.mrf.mxu0 }
 0x2fa   : > { %v4327_v34 = vpop.f32.mrf.mxu1 }
 0x2fb   : > { %4516 = vmatmul.mubr.msk.bf16.gmra.mxu1 %vm2300_vm11, %v3103_v2 }
 0x2fc   : > { %v4328_v36 = vpop.f32.mrf.mxu1 }
 0x2fd   : > { %v4329_v16 = vadd.f32 %v4328_v36, %v4327_v34  ;;  %v4494_v36 = vpop.f32.mrf.mxu0 }
 0x2fe   : > { %v4330_v20 = vpop.f32.mrf.mxu1 }
 0x2ff   : > { %v2841_v46 = vadd.f32 %v4329_v16, %v6081_v54 }
 0x300   : > { %v4331_v7 = vpop.f32.mrf.mxu1 }
 0x301   : > { %v4332_v23 = vadd.f32 %v4331_v7, %v4330_v20  ;;  %v3002_v44 = vadd.f32 %v3001_v15, %v2841_v46 }
 0x302   : > { %v4333_v51 = vpop.f32.mrf.mxu1 }
 0x303   : > { %v2844_v5 = vadd.f32 %v4332_v23, %v6081_v54  ;;  %v3080_v30 = vmax.f32 %v3002_v44, 0.0 }
 0x304   : > { %v4334_v62 = vpop.f32.mrf.mxu1 }
 0x305   : > { %v3005_v21 = vadd.f32 %v3004_v45, %v2844_v5  ;;  %v4335_v8 = vadd.f32 %v4334_v62, %v4333_v51  ;;  %v3036_v51 = vpop.f32.mrf.mxu0 }
 0x306   : > { %v4336_v0 = vpop.f32.mrf.mxu1 }
 0x307   : > { %v3081_v41 = vmax.f32 %v3005_v21, 0.0  ;;  %v2849_v12 = vadd.f32 %v4335_v8, %v6081_v54  ;;  %v4497_v21 = vpop.f32.mrf.mxu0 }
 0x308   : > { %v4337_v53 = vpop.f32.mrf.mxu1 }
 0x309   : > { %v3104_v26 = vpack.c.bf16 %v3081_v41, %v3080_v30  ;;  %v4338_v14 = vadd.f32 %v4337_v53, %v4336_v0  ;;  %v3010_v18 = vadd.f32 %v4485_v35, %v2849_v12 }
 0x30b   : > { %v2852_v6 = vadd.f32 %v4338_v14, %v6081_v54  ;;  %4519 = vmatprep.mubr.msk.bf16.mxu1 %vm2300_vm11, %v3104_v26  ;;  %v3082_v49 = vmax.f32 %v3010_v18, 0.0  ;;  %v3049_v14 = vpop.f32.mrf.mxu0 }
 0x30d   : > { %v3013_v40 = vadd.f32 %v4486_v60, %v2852_v6 }
 0x30f   : > { %v3083_v17 = vmax.f32 %v3013_v40, 0.0 }
 0x311   : > { %v3105_v52 = vpack.c.bf16 %v3083_v17, %v3082_v49 }
 0x312   : > { %v4339_v37 = vpop.f32.mrf.mxu1 }
 0x313   : > { %4520 = vmatmul.mubr.msk.bf16.gmra.mxu1 %vm2300_vm11, %v3105_v52  ;;  %v4498_v52 = vpop.f32.mrf.mxu0 }
 0x314   : > { %v4340_v57 = vpop.f32.mrf.mxu1 }
 0x315   : > { %v4341_v27 = vadd.f32 %v4340_v57, %v4339_v37 }
 0x316   : > { %v4342_v56 = vpop.f32.mrf.mxu1 }
 0x317   : > { %v2857_v47 = vadd.f32 %v4341_v27, %v6081_v54 }
 0x318   : > { %v4343_v50 = vpop.f32.mrf.mxu1 }
 0x319   : > { %v4344_v43 = vadd.f32 %v4343_v50, %v4342_v56  ;;  %v3018_v11 = vadd.f32 %v3017_v39, %v2857_v47  ;;  %v3052_v50 = vpop.f32.mrf.mxu0 }
 0x31a   : > { %v4345_v58 = vpop.f32.mrf.mxu1 }
 0x31b   : > { %v2860_v31 = vadd.f32 %v4344_v43, %v6081_v54  ;;  %v3084_v55 = vmax.f32 %v3018_v11, 0.0 }
 0x31c   : > { %v4346_v10 = vpop.f32.mrf.mxu1 }
 0x31d   : > { %v3021_v22 = vadd.f32 %v3020_v61, %v2860_v31  ;;  %v4347_v24 = vadd.f32 %v4346_v10, %v4345_v58 }
 0x31e   : > { %v4348_v29 = vpop.f32.mrf.mxu1 }
 0x31f   : > { %v3085_v3 = vmax.f32 %v3021_v22, 0.0  ;;  %v2865_v13 = vadd.f32 %v4347_v24, %v6081_v54 }
 0x320   : > { %v4349_v48 = vpop.f32.mrf.mxu1 }
 0x321   : > { %v3106_v63 = vpack.c.bf16 %v3085_v3, %v3084_v55  ;;  %v4350_v59 = vadd.f32 %v4349_v48, %v4348_v29  ;;  %v3026_v1 = vadd.f32 %v4489_v28, %v2865_v13 }
 0x322   : > { %v4351_v19 = vpop.f32.mrf.mxu1 }
 0x323   : > { %v2868_v42 = vadd.f32 %v4350_v59, %v6081_v54  ;;  %4523 = vmatprep.mubr.msk.bf16.mxu1 %vm2300_vm11, %v3106_v63  ;;  %v3086_v2 = vmax.f32 %v3026_v1, 0.0 }
 0x324   : > { %v4352_v9 = vpop.f32.mrf.mxu1 }
 0x325   : > { %v3029_v32 = vadd.f32 %v4490_v4, %v2868_v42  ;;  %v4353_v38 = vadd.f32 %v4352_v9, %v4351_v19  ;;  %v6134_v42 = vld [vmem:[%s6268_s8] ss:$0 sm:$0xff] }
 0x326   : > { %v4354_v35 = vpop.f32.mrf.mxu1 }
 0x327   : > { %v3087_v34 = vmax.f32 %v3029_v32, 0.0  ;;  %v2873_v15 = vadd.f32 %v4353_v38, %v6081_v54  ;;  %v4063_v32 = vld [vmem:[%s5063_s15] sm:$0xff]  }
 0x328   : > { %v4355_v16 = vpop.f32.mrf.mxu1 }
 0x329   : > { %v3107_v20 = vpack.c.bf16 %v3087_v34, %v3086_v2  ;;  %v4356_v46 = vadd.f32 %v4355_v16, %v4354_v35  ;;  %v3034_v7 = vadd.f32 %v3033_v25, %v2873_v15  ;;  %v4207_v25 = vld [vmem:[%s5063_s15 + $0x8] sm:$0xff]   ;;  %v4064_v34 = vunpack.c.l.bf16 %v4063_v32 }
 0x32a   : > { %v4357_v60 = vpop.f32.mrf.mxu1  ;;  %v4068_v38 = vunpack.c.l.bf16 %v4207_v25  ;;  %v4069_v15 = vunpack.c.h.bf16 %v4207_v25 }
 0x32b   : > { %v2876_v23 = vadd.f32 %v4356_v46, %v6081_v54  ;;  %4524 = vmatmul.mubr.msk.bf16.gmra.mxu1 %vm2300_vm11, %v3107_v20  ;;  %v3088_v8 = vmax.f32 %v3034_v7, 0.0  ;;  %v4065_v46 = vunpack.c.h.bf16 %v4063_v32 }
 0x32c   : > { %v4358_v44 = vpop.f32.mrf.mxu1 }
 0x32d   : > { %v3037_v5 = vadd.f32 %v3036_v51, %v2876_v23  ;;  %v4359_v45 = vadd.f32 %v4358_v44, %v4357_v60  ;;  %v4209_v60 = vld [vmem:[%s5063_s15 + $0x18] sm:$0xff]  }
 0x32e   : > { %v4360_v62 = vpop.f32.mrf.mxu1 }
 0x32f   : > { %v3089_v0 = vmax.f32 %v3037_v5, 0.0  ;;  %v2881_v30 = vadd.f32 %v4359_v45, %v6081_v54  ;;  %v4208_v5 = vld [vmem:[%s5063_s15 + $0x10] sm:$0xff]  }
 0x330   : > { %v4361_v41 = vpop.f32.mrf.mxu1 }
 0x331   : > { %v3108_v12 = vpack.c.bf16 %v3089_v0, %v3088_v8  ;;  %v4362_v53 = vadd.f32 %v4361_v41, %v4360_v62  ;;  %v3042_v18 = vadd.f32 %v4493_v33, %v2881_v30  ;;  %v4076_v62 = vunpack.c.l.bf16 %v4209_v60 }
 0x332   : > { %v4363_v26 = vpop.f32.mrf.mxu1 }
 0x333   : > { %v2884_v6 = vadd.f32 %v4362_v53, %v6081_v54  ;;  %4527 = vmatprep.mubr.msk.bf16.mxu1 %vm2300_vm11, %v3108_v12  ;;  %v3090_v37 = vmax.f32 %v3042_v18, 0.0  ;;  %v4072_v12 = vunpack.c.l.bf16 %v4208_v5  ;;  %v4077_v53 = vunpack.c.h.bf16 %v4209_v60 }
 0x334   : > { %v4364_v40 = vpop.f32.mrf.mxu1 }
 0x335   : > { %v3045_v49 = vadd.f32 %v4494_v36, %v2884_v6  ;;  %v4365_v17 = vadd.f32 %v4364_v40, %v4363_v26 }
 0x336   : > { %v4366_v28 = vpop.f32.mrf.mxu1 }
 0x337   : > { %v3091_v39 = vmax.f32 %v3045_v49, 0.0  ;;  %v2889_v57 = vadd.f32 %v4365_v17, %v6081_v54 }
 0x338   : > { %v4367_v27 = vpop.f32.mrf.mxu1 }
 0x339   : > { %v3109_v56 = vpack.c.bf16 %v3091_v39, %v3090_v37  ;;  %v4368_v47 = vadd.f32 %v4367_v27, %v4366_v28  ;;  %v3050_v43 = vadd.f32 %v3049_v14, %v2889_v57 }
 0x33a   : > { %v4369_v4 = vpop.f32.mrf.mxu1 }
 0x33b   : > { %4528 = vmatmul.mubr.msk.bf16.gmra.mxu1 %vm2300_vm11, %v3109_v56  ;;  %v2892_v58 = vadd.f32 %v4368_v47, %v6081_v54  ;;  %v3092_v22 = vmax.f32 %v3050_v43, 0.0 }
 0x33c   : > { %v4370_v11 = vpop.f32.mrf.mxu1 }
 0x33d   : > { %v4371_v31 = vadd.f32 %v4370_v11, %v4369_v4  ;;  %v3053_v61 = vadd.f32 %v3052_v50, %v2892_v58 }
 0x33e   : > { %v4372_v10 = vpop.f32.mrf.mxu1 }
 0x33f   : > { %v2897_v24 = vadd.f32 %v4371_v31, %v6081_v54  ;;  %v3093_v29 = vmax.f32 %v3053_v61, 0.0  ;;  %v4211_v31 = vld [vmem:[%s5063_s15 + $0x28] sm:$0xff]  }
 0x340   : > { %v4373_v55 = vpop.f32.mrf.mxu1 }
 0x341   : > { %v3110_v3 = vpack.c.bf16 %v3093_v29, %v3092_v22  ;;  %v4374_v13 = vadd.f32 %v4373_v55, %v4372_v10  ;;  %v3058_v33 = vadd.f32 %v4497_v21, %v2897_v24  ;;  %v4210_v10 = vld [vmem:[%s5063_s15 + $0x20] sm:$0xff]   ;;  %v4084_v24 = vunpack.c.l.bf16 %v4211_v31 }
 0x343   : > { %v2900_v48 = vadd.f32 %v4374_v13, %v6081_v54  ;;  %4531 = vmatprep.mubr.msk.bf16.mxu1 %vm2300_vm11, %v3110_v3  ;;  %v3094_v59 = vmax.f32 %v3058_v33, 0.0  ;;  %v4080_v3 = vunpack.c.l.bf16 %v4210_v10  ;;  %v4085_v13 = vunpack.c.h.bf16 %v4211_v31 }
 0x345   : > { %v3061_v63 = vadd.f32 %v4498_v52, %v2900_v48  ;;  %v4073_v52 = vunpack.c.h.bf16 %v4208_v5 }
 0x347   : > { %v3095_v19 = vmax.f32 %v3061_v63, 0.0 }
 0x349   : > { %v3111_v1 = vpack.c.bf16 %v3095_v19, %v3094_v59  ;;  %v4081_v59 = vunpack.c.h.bf16 %v4210_v10 }
 0x34b   : > { %4532 = vmatmul.mubr.msk.bf16.gmra.mxu1 %vm2300_vm11, %v3111_v1 }
 0x388   : > { %v4505_v9 = vpop.f32.mrf.mxu1 }
 0x389   : > { %v3226_v54 = vadd.f32 %v4505_v9, %v6134_v42 }
 0x38a   : > { %v3217_v35 = vpop.f32.mrf.mxu1 }
 0x38b   : > { %v3218_v2 = vadd.f32 %v6134_v42, %v3217_v35  ;;  %v3410_v16 = vadd.f32 %v4068_v38, %v3226_v54 }
 0x38c   : > { %v4506_v36 = vpop.f32.mrf.mxu1 }
 0x38d   : > { %v3229_v20 = vadd.f32 %v4506_v36, %v6134_v42  ;;  %v3408_v23 = vadd.f32 %v4064_v34, %v3218_v2  ;;  %v3442_v21 = vmax.f32 %v3410_v16, 0.0  ;;  %v4213_v36 = vld [vmem:[%s5063_s15 + $0x38] sm:$0xff]  }
 0x38e   : > { %v3220_v7 = vpop.f32.mrf.mxu1  ;;  %v4092_v60 = vunpack.c.l.bf16 %v4213_v36 }
 0x38f   : > { %v3411_v51 = vadd.f32 %v4069_v15, %v3229_v20  ;;  %v3221_v44 = vadd.f32 %v6134_v42, %v3220_v7  ;;  %v3440_v26 = vmax.f32 %v3408_v23, 0.0  ;;  %v4212_v20 = vld [vmem:[%s5063_s15 + $0x30] sm:$0xff]  }
 0x390   : > { %v4509_v45 = vpop.f32.mrf.mxu1 }
 0x391   : > { %v3443_v8 = vmax.f32 %v3411_v51, 0.0  ;;  %v3409_v0 = vadd.f32 %v4065_v46, %v3221_v44  ;;  %v3242_v30 = vadd.f32 %v4509_v45, %v6134_v42  ;;  %v4088_v51 = vunpack.c.l.bf16 %v4212_v20 }
 0x392   : > { %v3233_v41 = vpop.f32.mrf.mxu1  ;;  %v4093_v44 = vunpack.c.h.bf16 %v4213_v36 }
 0x393   : > { %v4134_v14 = vpack.c.bf16 %v3443_v8, %v3442_v21  ;;  %v3441_v18 = vmax.f32 %v3409_v0, 0.0  ;;  %v3234_v6 = vadd.f32 %v6134_v42, %v3233_v41  ;;  %v3414_v17 = vadd.f32 %v4076_v62, %v3242_v30 }
 0x394   : > { %v4510_v40 = vpop.f32.mrf.mxu1  ;;  %v4089_v21 = vunpack.c.h.bf16 %v4212_v20 }
 0x395   : > { %4222 = vst [vmem:[%s6147_s29 + $0x8] sm:$0xff] %v4134_v14   ;;  %v4129_v49 = vpack.c.bf16 %v3441_v18, %v3440_v26  ;;  %v3245_v28 = vadd.f32 %v4510_v40, %v6134_v42  ;;  %v3412_v39 = vadd.f32 %v4072_v12, %v3234_v6  ;;  %v3446_v56 = vmax.f32 %v3414_v17, 0.0 }
 0x396   : > { %v3236_v37 = vpop.f32.mrf.mxu1 }
 0x397   : > { %4130 = vst [vmem:[%s6147_s29] sm:$0xff] %v4129_v49   ;;  %v3415_v57 = vadd.f32 %v4077_v53, %v3245_v28  ;;  %v3237_v27 = vadd.f32 %v6134_v42, %v3236_v37  ;;  %v3444_v50 = vmax.f32 %v3412_v39, 0.0  ;;  %v4215_v49 = vld [vmem:[%s5063_s15 + $0x48] sm:$0xff]   ;;  %v4214_v28 = vld [vmem:[%s5063_s15 + $0x40] sm:$0xff]  }
 0x398   : > { %v4100_v37 = vunpack.c.l.bf16 %v4215_v49 }
 0x399   : > { %v3447_v47 = vmax.f32 %v3415_v57, 0.0  ;;  %v3413_v4 = vadd.f32 %v4073_v52, %v3237_v27  ;;  %v4096_v27 = vunpack.c.l.bf16 %v4214_v28 }
 0x39b   : > { %v4144_v43 = vpack.c.bf16 %v3447_v47, %v3446_v56  ;;  %v3445_v58 = vmax.f32 %v3413_v4, 0.0  ;;  %v4101_v56 = vunpack.c.h.bf16 %v4215_v49 }
 0x39d   : > { %4224 = vst [vmem:[%s6147_s29 + $0x18] sm:$0xff] %v4144_v43   ;;  %v4139_v11 = vpack.c.bf16 %v3445_v58, %v3444_v50  ;;  %v4097_v43 = vunpack.c.h.bf16 %v4214_v28 }
 0x39f   : > { %4223 = vst [vmem:[%s6147_s29 + $0x10] sm:$0xff] %v4139_v11  }
 0x3a3   : > { %v4513_v61 = vpop.f32.mrf.mxu1 }
 0x3a4   : > { %v3258_v22 = vadd.f32 %v4513_v61, %v6134_v42 }
 0x3a5   : > { %v3249_v29 = vpop.f32.mrf.mxu1 }
 0x3a6   : > { %v3250_v55 = vadd.f32 %v6134_v42, %v3249_v29  ;;  %v3418_v48 = vadd.f32 %v4084_v24, %v3258_v22 }
 0x3a7   : > { %v4514_v33 = vpop.f32.mrf.mxu1 }
 0x3a8   : > { %v3261_v63 = vadd.f32 %v4514_v33, %v6134_v42  ;;  %v3416_v1 = vadd.f32 %v4080_v3, %v3250_v55  ;;  %v3450_v32 = vmax.f32 %v3418_v48, 0.0  ;;  %v4217_v33 = vld [vmem:[%s5063_s15 + $0x58] sm:$0xff]  }
 0x3a9   : > { %v3252_v19 = vpop.f32.mrf.mxu1 }
 0x3aa   : > { %v3419_v25 = vadd.f32 %v4085_v13, %v3261_v63  ;;  %v3253_v9 = vadd.f32 %v6134_v42, %v3252_v19  ;;  %v3448_v35 = vmax.f32 %v3416_v1, 0.0  ;;  %v4216_v63 = vld [vmem:[%s5063_s15 + $0x50] sm:$0xff]   ;;  %v4108_v19 = vunpack.c.l.bf16 %v4217_v33 }
 0x3ac   : > { %v3451_v54 = vmax.f32 %v3419_v25, 0.0  ;;  %v3417_v38 = vadd.f32 %v4081_v59, %v3253_v9  ;;  %v4104_v9 = vunpack.c.l.bf16 %v4216_v63 }
 0x3ae   : > { %v4154_v2 = vpack.c.bf16 %v3451_v54, %v3450_v32  ;;  %v3449_v34 = vmax.f32 %v3417_v38, 0.0  ;;  %v4109_v32 = vunpack.c.h.bf16 %v4217_v33 }
 0x3b0   : > { %4226 = vst [vmem:[%s6147_s29 + $0x28] sm:$0xff] %v4154_v2   ;;  %v4149_v15 = vpack.c.bf16 %v3449_v34, %v3448_v35  ;;  %v4105_v2 = vunpack.c.h.bf16 %v4216_v63 }
 0x3b2   : > { %4225 = vst [vmem:[%s6147_s29 + $0x20] sm:$0xff] %v4149_v15  }
 0x3bb   : > { %v4517_v16 = vpop.f32.mrf.mxu1 }
 0x3bc   : > { %v3274_v46 = vadd.f32 %v4517_v16, %v6134_v42 }
 0x3bd   : > { %v3265_v7 = vpop.f32.mrf.mxu1 }
 0x3be   : > { %v3266_v23 = vadd.f32 %v6134_v42, %v3265_v7  ;;  %v3422_v45 = vadd.f32 %v4092_v60, %v3274_v46 }
 0x3bf   : > { %v4518_v5 = vpop.f32.mrf.mxu1 }
 0x3c0   : > { %v3277_v62 = vadd.f32 %v4518_v5, %v6134_v42  ;;  %v3420_v0 = vadd.f32 %v4088_v51, %v3266_v23  ;;  %v3454_v12 = vmax.f32 %v3422_v45, 0.0  ;;  %v4219_v5 = vld [vmem:[%s5063_s15 + $0x68] sm:$0xff]  }
 0x3c1   : > { %v3268_v8 = vpop.f32.mrf.mxu1 }
 0x3c2   : > { %v3423_v30 = vadd.f32 %v4093_v44, %v3277_v62  ;;  %v3269_v41 = vadd.f32 %v6134_v42, %v3268_v8  ;;  %v3452_v14 = vmax.f32 %v3420_v0, 0.0  ;;  %v4218_v62 = vld [vmem:[%s5063_s15 + $0x60] sm:$0xff]   ;;  %v4116_v8 = vunpack.c.l.bf16 %v4219_v5 }
 0x3c4   : > { %v3455_v53 = vmax.f32 %v3423_v30, 0.0  ;;  %v3421_v26 = vadd.f32 %v4089_v21, %v3269_v41  ;;  %v4112_v41 = vunpack.c.l.bf16 %v4218_v62 }
 0x3c6   : > { %v4164_v18 = vpack.c.bf16 %v3455_v53, %v3454_v12  ;;  %v3453_v6 = vmax.f32 %v3421_v26, 0.0  ;;  %v4117_v12 = vunpack.c.h.bf16 %v4219_v5 }
 0x3c8   : > { %4228 = vst [vmem:[%s6147_s29 + $0x38] sm:$0xff] %v4164_v18   ;;  %v4159_v40 = vpack.c.bf16 %v3453_v6, %v3452_v14  ;;  %v4113_v18 = vunpack.c.h.bf16 %v4218_v62 }
 0x3ca   : > { %4227 = vst [vmem:[%s6147_s29 + $0x30] sm:$0xff] %v4159_v40  }
 0x3d3   : > { %v4521_v17 = vpop.f32.mrf.mxu1 }
 0x3d4   : > { %v3290_v52 = vadd.f32 %v4521_v17, %v6134_v42 }
 0x3d5   : > { %v3281_v39 = vpop.f32.mrf.mxu1 }
 0x3d6   : > { %v3282_v57 = vadd.f32 %v6134_v42, %v3281_v39  ;;  %v3426_v4 = vadd.f32 %v4100_v37, %v3290_v52 }
 0x3d7   : > { %v4522_v47 = vpop.f32.mrf.mxu1 }
 0x3d8   : > { %v3293_v50 = vadd.f32 %v4522_v47, %v6134_v42  ;;  %v3424_v11 = vadd.f32 %v4096_v27, %v3282_v57  ;;  %v3458_v10 = vmax.f32 %v3426_v4, 0.0  ;;  %v4221_v47 = vld [vmem:[%s5063_s15 + $0x78] sm:$0xff]  }
 0x3d9   : > { %v3284_v58 = vpop.f32.mrf.mxu1 }
 0x3da   : > { %v3427_v31 = vadd.f32 %v4101_v56, %v3293_v50  ;;  %v3285_v61 = vadd.f32 %v6134_v42, %v3284_v58  ;;  %v3456_v29 = vmax.f32 %v3424_v11, 0.0  ;;  %v4220_v50 = vld [vmem:[%s5063_s15 + $0x70] sm:$0xff]   ;;  %v4124_v58 = vunpack.c.l.bf16 %v4221_v47 }
 0x3dc   : > { %v3459_v22 = vmax.f32 %v3427_v31, 0.0  ;;  %v3425_v24 = vadd.f32 %v4097_v43, %v3285_v61  ;;  %v4120_v61 = vunpack.c.l.bf16 %v4220_v50 }
 0x3de   : > { %v4174_v55 = vpack.c.bf16 %v3459_v22, %v3458_v10  ;;  %v3457_v3 = vmax.f32 %v3425_v24, 0.0  ;;  %v4125_v10 = vunpack.c.h.bf16 %v4221_v47 }
 0x3e0   : > { %4230 = vst [vmem:[%s6147_s29 + $0x48] sm:$0xff] %v4174_v55   ;;  %v4169_v13 = vpack.c.bf16 %v3457_v3, %v3456_v29  ;;  %v4121_v55 = vunpack.c.h.bf16 %v4220_v50 }
 0x3e2   : > { %4229 = vst [vmem:[%s6147_s29 + $0x40] sm:$0xff] %v4169_v13  }
 0x3eb   : > { %v4525_v48 = vpop.f32.mrf.mxu1 }
 0x3ec   : > { %v3306_v59 = vadd.f32 %v4525_v48, %v6134_v42 }
 0x3ed   : > { %v3297_v1 = vpop.f32.mrf.mxu1 }
 0x3ee   : > { %v3298_v25 = vadd.f32 %v6134_v42, %v3297_v1  ;;  %v3430_v38 = vadd.f32 %v4108_v19, %v3306_v59 }
 0x3ef   : > { %v4526_v54 = vpop.f32.mrf.mxu1 }
 0x3f0   : > { %v3309_v35 = vadd.f32 %v4526_v54, %v6134_v42  ;;  %v3428_v15 = vadd.f32 %v4104_v9, %v3298_v25  ;;  %v3462_v20 = vmax.f32 %v3430_v38, 0.0 }
 0x3f1   : > { %v3300_v34 = vpop.f32.mrf.mxu1 }
 0x3f2   : > { %v3431_v36 = vadd.f32 %v4109_v32, %v3309_v35  ;;  %v3301_v16 = vadd.f32 %v6134_v42, %v3300_v34  ;;  %v3460_v7 = vmax.f32 %v3428_v15, 0.0 }
 0x3f4   : > { %v3463_v46 = vmax.f32 %v3431_v36, 0.0  ;;  %v3429_v60 = vadd.f32 %v4105_v2, %v3301_v16 }
 0x3f6   : > { %v4184_v23 = vpack.c.bf16 %v3463_v46, %v3462_v20  ;;  %v3461_v51 = vmax.f32 %v3429_v60, 0.0 }
 0x3f8   : > { %4232 = vst [vmem:[%s6147_s29 + $0x58] sm:$0xff] %v4184_v23   ;;  %v4179_v44 = vpack.c.bf16 %v3461_v51, %v3460_v7 }
 0x3fa   : > { %4231 = vst [vmem:[%s6147_s29 + $0x50] sm:$0xff] %v4179_v44  }
 0x3fb   : > { %v4529_v45 = vpop.f32.mrf.mxu1 }
 0x3fc   : > { %v3322_v21 = vadd.f32 %v4529_v45, %v6134_v42 }
 0x3fd   : > { %v3313_v0 = vpop.f32.mrf.mxu1 }
 0x3fe   : > { %v3314_v30 = vadd.f32 %v6134_v42, %v3313_v0  ;;  %v3434_v26 = vadd.f32 %v4116_v8, %v3322_v21 }
 0x3ff   : > { %v4530_v53 = vpop.f32.mrf.mxu1 }
 0x400   : > { %v3325_v14 = vadd.f32 %v4530_v53, %v6134_v42  ;;  %v3432_v40 = vadd.f32 %v4112_v41, %v3314_v30  ;;  %v3466_v28 = vmax.f32 %v3434_v26, 0.0 }
 0x401   : > { %v3316_v6 = vpop.f32.mrf.mxu1 }
 0x402   : > { %v3435_v49 = vadd.f32 %v4117_v12, %v3325_v14  ;;  %v3317_v17 = vadd.f32 %v6134_v42, %v3316_v6  ;;  %v3464_v39 = vmax.f32 %v3432_v40, 0.0 }
 0x404   : > { %v3467_v52 = vmax.f32 %v3435_v49, 0.0  ;;  %v3433_v37 = vadd.f32 %v4113_v18, %v3317_v17 }
 0x406   : > { %v4194_v57 = vpack.c.bf16 %v3467_v52, %v3466_v28  ;;  %v3465_v27 = vmax.f32 %v3433_v37, 0.0 }
 0x408   : > { %4234 = vst [vmem:[%s6147_s29 + $0x68] sm:$0xff] %v4194_v57   ;;  %v4189_v56 = vpack.c.bf16 %v3465_v27, %v3464_v39 }
 0x40a   : > { %4233 = vst [vmem:[%s6147_s29 + $0x60] sm:$0xff] %v4189_v56  }
 0x40b   : > { %v4533_v4 = vpop.f32.mrf.mxu1 }
 0x40c   : > { %v3338_v43 = vadd.f32 %v4533_v4, %v6134_v42 }
 0x40d   : > { %v3329_v11 = vpop.f32.mrf.mxu1 }
 0x40e   : > { %v3330_v31 = vadd.f32 %v6134_v42, %v3329_v11  ;;  %v3438_v24 = vadd.f32 %v4124_v58, %v3338_v43 }
 0x40f   : > { %v4534_v22 = vpop.f32.mrf.mxu1 }
 0x410   : > { %v3341_v29 = vadd.f32 %v4534_v22, %v6134_v42  ;;  %v3436_v13 = vadd.f32 %v4120_v61, %v3330_v31  ;;  %v3470_v63 = vmax.f32 %v3438_v24, 0.0 }
 0x411   : > { %v3332_v3 = vpop.f32.mrf.mxu1 }
 0x412   : > { %v3439_v33 = vadd.f32 %v4125_v10, %v3341_v29  ;;  %v3333_v48 = vadd.f32 %v6134_v42, %v3332_v3  ;;  %v3468_v1 = vmax.f32 %v3436_v13, 0.0 }
 0x414   : > { %v3471_v59 = vmax.f32 %v3439_v33, 0.0  ;;  %v3437_v19 = vadd.f32 %v4121_v55, %v3333_v48 }
 0x416   : > { %v4204_v25 = vpack.c.bf16 %v3471_v59, %v3470_v63  ;;  %v3469_v9 = vmax.f32 %v3437_v19, 0.0 }
 0x418   : > { %4236 = vst [vmem:[%s6147_s29 + $0x78] sm:$0xff] %v4204_v25   ;;  %v4199_v32 = vpack.c.bf16 %v3469_v9, %v3468_v1 }
 0x41a   : > { %4235 = vst [vmem:[%s6147_s29 + $0x70] sm:$0xff] %v4199_v32  }
 0x41b   : > { %4784 = shalt.err (!%p4781_p1)
}
 0x41c   : > { %s4785_s26 = scalar_lea.hbm %s6206_s30, 2048  ;;  %s4789_s23 = scalar_lea.hbm %s6303_s1, 4096 }
 0x41d   : > { %p4786_p10 = scmp.ne.s32.totalorder %s6206_s30, %s4785_s26  ;;  %p4790_p0 = scmp.lt.s32.totalorder %s6206_s30, %s6303_s1 }
 0x41e   : > { %p4791_p8 = scmp.lt.s32.totalorder %s4789_s23, %s4785_s26 }
 0x41f   : > { %p4787_p13 = pnand %p4786_p10, %p4968_p9 }
 0x420   : > { %p4792_p2 = por %p4791_p8, %p4790_p0 }
 0x421   : > { %p4788_p3 = pneg %p4787_p13 }
 0x423   : > { %p4793_p5 = pnand %p4792_p2, %p4788_p3 }
 0x425   : > { %4796 = shalt.err (!%p4793_p5)
}
 0x426   : > { %s4866_s19 = smov 4  }
 0x427   : > { %4555 = dma.vmem_to_hbm [thread:$0]  (%p4968_p9), %s6209_s17, 2048, %s6206_s30, %s3633_s25, %s4864_s16, %s4864_s16, %s4866_s19  }
 0x428 PF: > { %s6304_s27 = sld [smem:[#allocation12_spill]]  ;;  %p4565_p6 = pnand %p3786_p12, %p4975_p11 }
 0x42a   : > { %p4566_p4 = pneg %p4565_p6 }
 0x42e   : > { %s3664_s9 = sand.u32 1, %s6304_s27  }
 0x42f   : > { %s3665_s12 = scalar_lea.sflag [#allocation5], %s3664_s9 }
 0x430   : > { %4830 = dma.done.wait (%p4566_p4), %s3665_s12, 2048  }
 0x431   : > { %4832 = vsyncadd (%p4566_p4), %s3665_s12, 4294965248  ;;  %s28_s14 = sadd.s32 1, %s4855_s14   ;;  %s6306_s11 = sld [smem:[#allocation13_spill]] }
 0x432   : > { %p25_p7 = scmp.ge.s32.totalorder %s28_s14, 4   ;;  %s6307_s15 = sld [smem:[#allocation16_spill]] }
 0x433   : > { %s6308_s16 = sld [smem:[#allocation14_spill]]  ;;  %s6309_s30 = smov %s4839_s10 }
 0x434   : > { %s6312_s12 = smov %s4851_s13 }
 0x435   :  { %27 = sbr.rel (!%p25_p7) target bundleno = 11 (0xb), region = 122 }
 0x437   : > { %s6310_s10 = smov %s6306_s11 }
 0x438   : > { %s6311_s11 = smov %s6307_s15 }
 0x439   : > { %s6313_s13 = smov %s6308_s16 }
 0x43a   :  { %3670 = vsyncpa [#allocation4], 1 }
 0x43b   :  { %3672 = vsyncpa [#allocation4 + $0x1], 1 }
 0x43c   :  { %3673 = vsyncpa [#allocation7], 1 }
 0x43d   :  { %3675 = vsyncpa [#allocation7 + $0x1], 1 }
 0x43e   :  { %3676 = vsyncpa [#allocation5], 1 }
 0x43f   :  { %3678 = vsyncpa [#allocation5 + $0x1], 1 }

</bundles_post_ra>
